<compile_context>
chip_gen: v6e
topology: v6e:2x2x1
jax: 0.10.0
libtpu: 0.0.40
codegen_flags: <defaults>
</compile_context>

<pallas_src>
import jax
import jax.numpy as jnp
from jax.experimental import pallas as pl
from jax.experimental.pallas import tpu as pltpu


# Lane-padded widths (TPU lane width = 128). Zero padding keeps matmul outputs
# lane-dense and lets the padded class / channel lanes stay exactly zero end-to-end.
CIN_PAD = 128   # padded input-image channels (3  -> 128)  -- must equal C1_PAD
C1_PAD = 128    # padded backbone width        (16 -> 128)
NC_PAD = 128    # padded number of classes     (10 -> 128)


# ------------------------------ fused kernel ------------------------------- #

def _gcam_fused_kernel(x_ref, w1_ref, b1_ref, w2_ref, b2_ref, w3_ref, b3_ref,
                       fcw_ref, fcb_ref, out_ref, slab_ref, hm_ref, pad_ref):
    """Whole backbone forward for a block of `ipb` images, entirely in VMEM.

    conv1+bn1+relu -> 2x2 maxpool -> [conv2+bn2+relu -> conv3+bn3 -> +skip -> relu]
    -> global average pool -> fc.  Every 3x3 / stride-1 / pad-1 conv is a single
    MXU matmul with K = 9*128 over an in-VMEM bf16 im2col slab; BN is pre-folded
    into the weights (scale) and biases (shift).
    """
    ipb, hh, wh, _ = x_ref.shape            # hh = H+2, wh = W+2 (1-px halo)
    H, W = hh - 2, wh - 2
    Hp, Wp = H // 2, W // 2
    M1, M2 = H * W, Hp * Wp
    C = w1_ref.shape[1]                     # lane-padded channel width (128)

    def im2col_rows(read_w_slice, h, m, row0):
        """Write one image's 3x3 im2col rows [row0, row0+m) into the bf16 slab."""
        for dw in range(3):                 # 3 unaligned W (sublane) slices / conv
            tmp = read_w_slice(dw)          # [h+2, w, C] f32
            for dh in range(3):             # leading-dim slices: free
                k = dh * 3 + dw
                patch = tmp[dh:dh + h].reshape(m, C).astype(jnp.bfloat16)
                slab_ref[row0:row0 + m, k * C:(k + 1) * C] = patch

    # ------------- conv1 + folded bn1 + relu (one K = 9*C matmul) -------------
    for i in range(ipb):
        im2col_rows(lambda dw: x_ref[i, :, dw:dw + W, :], H, M1, i * M1)
    conv1 = jnp.dot(slab_ref[...], w1_ref[...],
                    preferred_element_type=jnp.float32)
    conv1 = jnp.maximum(conv1 + b1_ref[...], 0.0)               # [ipb*M1, C] f32

    # ------------------------ 2x2 max-pool, stride 2 --------------------------
    # H direction: aligned row re-grouping of the matmul output (no round trip).
    r = conv1.reshape(ipb * Hp, 2 * W, C)
    hm_ref[...] = jnp.maximum(r[:, 0:W, :], r[:, W:2 * W, :])   # [ipb*Hp, W, C]

    # Zero only the 1-px halo border of the single reused padded buffer
    # (interior is fully overwritten below; border re-zeroed every grid step).
    pad_ref[:, 0:1, :, :] = jnp.zeros((ipb, 1, Wp + 2, C), jnp.float32)
    pad_ref[:, Hp + 1:Hp + 2, :, :] = jnp.zeros((ipb, 1, Wp + 2, C), jnp.float32)
    pad_ref[:, :, 0:1, :] = jnp.zeros((ipb, Hp + 2, 1, C), jnp.float32)
    pad_ref[:, :, Wp + 1:Wp + 2, :] = jnp.zeros((ipb, Hp + 2, 1, C), jnp.float32)

    # W direction: sublane-strided ref loads; keep `pooled` live for the skip.
    skips = []
    for i in range(ipb):
        pooled = jnp.maximum(hm_ref[i * Hp:(i + 1) * Hp, pl.ds(0, Wp, 2), :],
                             hm_ref[i * Hp:(i + 1) * Hp, pl.ds(1, Wp, 2), :])
        pad_ref[i, 1:1 + Hp, 1:1 + Wp, :] = pooled              # halo stays zero
        skips.append(pooled.reshape(M2, C))
    skip = skips[0] if ipb == 1 else jnp.concatenate(skips, axis=0)  # [ipb*M2, C]

    # ------------------------- residual basic block ---------------------------
    for i in range(ipb):
        im2col_rows(lambda dw: pad_ref[i, :, dw:dw + Wp, :], Hp, M2, i * M2)
    conv2 = jnp.dot(slab_ref[0:ipb * M2, :], w2_ref[...],
                    preferred_element_type=jnp.float32)
    conv2 = jnp.maximum(conv2 + b2_ref[...], 0.0)               # [ipb*M2, C]

    for i in range(ipb):                    # conv2 back into the same halo buffer
        pad_ref[i, 1:1 + Hp, 1:1 + Wp, :] = \
            conv2[i * M2:(i + 1) * M2].reshape(Hp, Wp, C)
    for i in range(ipb):
        im2col_rows(lambda dw: pad_ref[i, :, dw:dw + Wp, :], Hp, M2, i * M2)
    conv3 = jnp.dot(slab_ref[0:ipb * M2, :], w3_ref[...],
                    preferred_element_type=jnp.float32) + b3_ref[...]

    z = jnp.maximum(conv3 + skip, 0.0)                          # + skip, relu

    # ----------------- head: global average pool + fc (f32) -------------------
    feat = jnp.mean(z.reshape(ipb, M2, C), axis=1)              # [ipb, C]
    logits = jnp.dot(feat, fcw_ref[...],
                     preferred_element_type=jnp.float32) + fcb_ref[...]
    out_ref[...] = logits.reshape(out_ref.shape)                # [ipb, 1, NC_PAD]


# ------------------------ parameter prep (host/glue) ------------------------ #

def _bn_init(c):
    # PyTorch BatchNorm2d defaults (eval mode): gamma=1, beta=0, mean=0, var=1
    return (jnp.ones((c,), jnp.float32), jnp.zeros((c,), jnp.float32),
            jnp.zeros((c,), jnp.float32), jnp.ones((c,), jnp.float32))


def _fold_bn(gamma, beta, mean, var, eps=1e-5):
    scale = gamma / jnp.sqrt(var + eps)
    shift = beta - mean * scale
    return scale, shift


def _prep_conv(w, bn, cin_pad, cout_pad):
    """Fold BN scale into the conv weights, pad lane-dense, flatten taps into K."""
    scale, shift = _fold_bn(*bn)
    wf = w * scale[None, None, :]                                 # [9, cin, cout]
    _, cin, cout = w.shape
    wp = jnp.zeros((9, cin_pad, cout_pad), jnp.float32).at[:, :cin, :cout].set(wf)
    bp = jnp.zeros((1, cout_pad), jnp.float32).at[0, :cout].set(shift)
    # K-major layout: rows [k*cin_pad, (k+1)*cin_pad) hold tap k (k = dh*3 + dw).
    return wp.reshape(9 * cin_pad, cout_pad).astype(jnp.bfloat16), bp


def _prep_fc(w, b, cin_pad, nout_pad):
    cin, nout = w.shape
    wp = jnp.zeros((cin_pad, nout_pad), jnp.float32).at[:cin, :nout].set(w)
    bp = jnp.zeros((1, nout_pad), jnp.float32).at[0, :nout].set(b)
    return wp, bp                     # fc kept in f32 (precision of pooled means)


def init_params(key, num_classes, c_in=3, c1=16):
    ks = jax.random.split(key, 4)

    def conv_w(k, cin, cout):
        # [tap = dh*3+dw, cin, cout], matching the in-kernel im2col tap order
        return 0.1 * jax.random.normal(k, (9, cin, cout), jnp.float32)

    return {
        "conv1_w": conv_w(ks[0], c_in, c1), "bn1": _bn_init(c1),
        "conv2_w": conv_w(ks[1], c1, c1),   "bn2": _bn_init(c1),
        "conv3_w": conv_w(ks[2], c1, c1),   "bn3": _bn_init(c1),
        "fc_w": 0.1 * jax.random.normal(ks[3], (c1, num_classes), jnp.float32),
        "fc_b": jnp.zeros((num_classes,), jnp.float32),
    }


# --------------------------------- forward ---------------------------------- #

def gcam_forward(images_nchw, labels, params, images_per_block=None):
    """Mirrors GCAM.forward(images, labels) -> logits (labels are ignored)."""
    del labels  # GCAM.forward ignores labels and just returns the logits
    assert CIN_PAD == C1_PAD  # required so the im2col slab is reused by all convs
    num_classes = params["fc_w"].shape[1]

    x = jnp.transpose(images_nchw.astype(jnp.float32), (0, 2, 3, 1))  # NCHW->NHWC
    B, H, W, cin = x.shape
    assert H % 2 == 0 and W % 2 == 0, "spatial dims must be even for 2x2 pool"
    Hp, Wp = H // 2, W // 2

    # 1-px spatial halo for the pad-1 conv + lane-pad the input channels.
    x = jnp.pad(x, ((0, 0), (1, 1), (1, 1), (0, CIN_PAD - cin)))

    w1, b1 = _prep_conv(params["conv1_w"], params["bn1"], CIN_PAD, C1_PAD)
    w2, b2 = _prep_conv(params["conv2_w"], params["bn2"], C1_PAD, C1_PAD)
    w3, b3 = _prep_conv(params["conv3_w"], params["bn3"], C1_PAD, C1_PAD)
    fcw, fcb = _prep_fc(params["fc_w"], params["fc_b"], C1_PAD, NC_PAD)

    # Images per grid step: bigger blocks raise the matmul M dim (fills the
    # 256-wide MXU on v6e/v7x); keep the grid length >= 2 so both v7x TCs work.
    if images_per_block is None:
        ipb = 1
        for cand in (8, 4, 2):
            if B % cand == 0 and B // cand >= 2:
                ipb = cand
                break
    else:
        ipb = images_per_block
    assert B % ipb == 0

    const2 = lambda b: (0, 0)

    logits_pad = pl.pallas_call(
        _gcam_fused_kernel,
        out_shape=jax.ShapeDtypeStruct((B, 1, NC_PAD), jnp.float32),
        grid_spec=pltpu.PrefetchScalarGridSpec(
            num_scalar_prefetch=0,
            grid=(B // ipb,),
            in_specs=[
                pl.BlockSpec((ipb, H + 2, W + 2, CIN_PAD),
                             lambda b: (b, 0, 0, 0)),            # image block
                pl.BlockSpec((9 * CIN_PAD, C1_PAD), const2),     # w1 (resident)
                pl.BlockSpec((1, C1_PAD), const2),               # b1
                pl.BlockSpec((9 * C1_PAD, C1_PAD), const2),      # w2
                pl.BlockSpec((1, C1_PAD), const2),               # b2
                pl.BlockSpec((9 * C1_PAD, C1_PAD), const2),      # w3
                pl.BlockSpec((1, C1_PAD), const2),               # b3
                pl.BlockSpec((C1_PAD, NC_PAD), const2),          # fc w (f32)
                pl.BlockSpec((1, NC_PAD), const2),               # fc b
            ],
            out_specs=pl.BlockSpec((ipb, 1, NC_PAD), lambda b: (b, 0, 0)),
            scratch_shapes=[
                pltpu.VMEM((ipb * H * W, 9 * C1_PAD), jnp.bfloat16),  # im2col slab
                pltpu.VMEM((ipb * Hp, W, C1_PAD), jnp.float32),       # H-pooled c1
                pltpu.VMEM((ipb, Hp + 2, Wp + 2, C1_PAD), jnp.float32),  # halo buf
            ],
        ),
        compiler_params=pltpu.CompilerParams(
            dimension_semantics=("parallel",),   # batch blocks shard across TCs
            vmem_limit_bytes=32 * 1024 * 1024,
        ),
    )(x, w1, b1, w2, b2, w3, b3, fcw, fcb)

    return logits_pad[:, 0, :num_classes]        # drop zero-padded class lanes


# ----------------------------------- main ------------------------------------ #

if __name__ == "__main__":
    num_classes = 10
    key = jax.random.PRNGKey(0)
    k_img, k_par = jax.random.split(key)

    images = jax.random.normal(k_img, (2, 3, 16, 16), jnp.float32)  # NCHW
    labels = jnp.array([1, 3], dtype=jnp.int32)          # unused by forward
    params = init_params(k_par, num_classes)

    logits = jax.jit(gcam_forward)(images, labels, params)
    logits = jax.block_until_ready(logits)

    assert logits.shape == (2, num_classes), logits.shape
    assert jnp.all(jnp.isfinite(logits))
    print("KERNEL_OK")
</pallas_src>

<mosaic_0001>
module attributes {stable_mosaic.version = 11 : i64} {
  func.func @_gcam_fused_kernel(%arg0: i32, %arg1: memref<1x18x18x128xf32, #tpu.memory_space<vmem>>, %arg2: memref<1152x128xbf16, #tpu.memory_space<vmem>>, %arg3: memref<1x128xf32, #tpu.memory_space<vmem>>, %arg4: memref<1152x128xbf16, #tpu.memory_space<vmem>>, %arg5: memref<1x128xf32, #tpu.memory_space<vmem>>, %arg6: memref<1152x128xbf16, #tpu.memory_space<vmem>>, %arg7: memref<1x128xf32, #tpu.memory_space<vmem>>, %arg8: memref<128x128xf32, #tpu.memory_space<vmem>>, %arg9: memref<1x128xf32, #tpu.memory_space<vmem>>, %arg10: memref<1x1x128xf32, #tpu.memory_space<vmem>>, %arg11: memref<256x1152xbf16, #tpu.memory_space<vmem>>, %arg12: memref<8x16x128xf32, #tpu.memory_space<vmem>>, %arg13: memref<1x10x10x128xf32, #tpu.memory_space<vmem>>) attributes {dimension_semantics = [#tpu.dimension_semantics<parallel>], iteration_bounds = array<i64: 2>, scalar_prefetch = 0 : i64, scratch_operands = 3 : i64, tpu.core_type = #tpu.core_type<tc>, window_params = [{transform_indices = @transform_0, window_bounds = array<i64: 1, 18, 18, 128>}, {pipeline_mode = #tpu.pipeline_mode<synchronous>, transform_indices = @transform_1, window_bounds = array<i64: 1152, 128>}, {pipeline_mode = #tpu.pipeline_mode<synchronous>, transform_indices = @transform_2, window_bounds = array<i64: 1, 128>}, {pipeline_mode = #tpu.pipeline_mode<synchronous>, transform_indices = @transform_3, window_bounds = array<i64: 1152, 128>}, {pipeline_mode = #tpu.pipeline_mode<synchronous>, transform_indices = @transform_4, window_bounds = array<i64: 1, 128>}, {pipeline_mode = #tpu.pipeline_mode<synchronous>, transform_indices = @transform_5, window_bounds = array<i64: 1152, 128>}, {pipeline_mode = #tpu.pipeline_mode<synchronous>, transform_indices = @transform_6, window_bounds = array<i64: 1, 128>}, {pipeline_mode = #tpu.pipeline_mode<synchronous>, transform_indices = @transform_7, window_bounds = array<i64: 128, 128>}, {pipeline_mode = #tpu.pipeline_mode<synchronous>, transform_indices = @transform_8, window_bounds = array<i64: 1, 128>}, {transform_indices = @transform_9, window_bounds = array<i64: 1, 1, 128>}]} {
    %c0 = arith.constant 0 : index
    %c0_0 = arith.constant 0 : index
    %c0_1 = arith.constant 0 : index
    %c0_2 = arith.constant 0 : index
    %0 = vector.load %arg1[%c0, %c0_0, %c0_1, %c0_2] : memref<1x18x18x128xf32, #tpu.memory_space<vmem>>, vector<1x18x16x128xf32>
    %1 = vector.shape_cast %0 : vector<1x18x16x128xf32> to vector<18x16x128xf32>
    %2 = vector.extract_strided_slice %1 {offsets = [0, 0, 0], sizes = [16, 16, 128], strides = [1, 1, 1]} : vector<18x16x128xf32> to vector<16x16x128xf32>
    %3 = vector.shape_cast %2 : vector<16x16x128xf32> to vector<256x128xf32>
    %4 = arith.truncf %3 : vector<256x128xf32> to vector<256x128xbf16>
    %c0_3 = arith.constant 0 : index
    %c0_4 = arith.constant 0 : index
    %5 = vector.load %arg11[%c0_3, %c0_4] : memref<256x1152xbf16, #tpu.memory_space<vmem>>, vector<256x128xbf16>
    tpu.vector_store %arg11[%c0_3, %c0_4], %4 {strides = array<i32>} : memref<256x1152xbf16, #tpu.memory_space<vmem>>, vector<256x128xbf16>,
    %6 = vector.extract_strided_slice %1 {offsets = [1, 0, 0], sizes = [16, 16, 128], strides = [1, 1, 1]} : vector<18x16x128xf32> to vector<16x16x128xf32>
    %7 = vector.shape_cast %6 : vector<16x16x128xf32> to vector<256x128xf32>
    %8 = arith.truncf %7 : vector<256x128xf32> to vector<256x128xbf16>
    %c0_5 = arith.constant 0 : index
    %c384 = arith.constant 384 : index
    %9 = vector.load %arg11[%c0_5, %c384] : memref<256x1152xbf16, #tpu.memory_space<vmem>>, vector<256x128xbf16>
    tpu.vector_store %arg11[%c0_5, %c384], %8 {strides = array<i32>} : memref<256x1152xbf16, #tpu.memory_space<vmem>>, vector<256x128xbf16>,
    %10 = vector.extract_strided_slice %1 {offsets = [2, 0, 0], sizes = [16, 16, 128], strides = [1, 1, 1]} : vector<18x16x128xf32> to vector<16x16x128xf32>
    %11 = vector.shape_cast %10 : vector<16x16x128xf32> to vector<256x128xf32>
    %12 = arith.truncf %11 : vector<256x128xf32> to vector<256x128xbf16>
    %c0_6 = arith.constant 0 : index
    %c768 = arith.constant 768 : index
    %13 = vector.load %arg11[%c0_6, %c768] : memref<256x1152xbf16, #tpu.memory_space<vmem>>, vector<256x128xbf16>
    tpu.vector_store %arg11[%c0_6, %c768], %12 {strides = array<i32>} : memref<256x1152xbf16, #tpu.memory_space<vmem>>, vector<256x128xbf16>,
    %c0_7 = arith.constant 0 : index
    %c0_8 = arith.constant 0 : index
    %c1 = arith.constant 1 : index
    %c0_9 = arith.constant 0 : index
    %14 = vector.load %arg1[%c0_7, %c0_8, %c1, %c0_9] : memref<1x18x18x128xf32, #tpu.memory_space<vmem>>, vector<1x18x16x128xf32>
    %15 = vector.shape_cast %14 : vector<1x18x16x128xf32> to vector<18x16x128xf32>
    %16 = vector.extract_strided_slice %15 {offsets = [0, 0, 0], sizes = [16, 16, 128], strides = [1, 1, 1]} : vector<18x16x128xf32> to vector<16x16x128xf32>
    %17 = vector.shape_cast %16 : vector<16x16x128xf32> to vector<256x128xf32>
    %18 = arith.truncf %17 : vector<256x128xf32> to vector<256x128xbf16>
    %c0_10 = arith.constant 0 : index
    %c128 = arith.constant 128 : index
    %19 = vector.load %arg11[%c0_10, %c128] : memref<256x1152xbf16, #tpu.memory_space<vmem>>, vector<256x128xbf16>
    tpu.vector_store %arg11[%c0_10, %c128], %18 {strides = array<i32>} : memref<256x1152xbf16, #tpu.memory_space<vmem>>, vector<256x128xbf16>,
    %20 = vector.extract_strided_slice %15 {offsets = [1, 0, 0], sizes = [16, 16, 128], strides = [1, 1, 1]} : vector<18x16x128xf32> to vector<16x16x128xf32>
    %21 = vector.shape_cast %20 : vector<16x16x128xf32> to vector<256x128xf32>
    %22 = arith.truncf %21 : vector<256x128xf32> to vector<256x128xbf16>
    %c0_11 = arith.constant 0 : index
    %c512 = arith.constant 512 : index
    %23 = vector.load %arg11[%c0_11, %c512] : memref<256x1152xbf16, #tpu.memory_space<vmem>>, vector<256x128xbf16>
    tpu.vector_store %arg11[%c0_11, %c512], %22 {strides = array<i32>} : memref<256x1152xbf16, #tpu.memory_space<vmem>>, vector<256x128xbf16>,
    %24 = vector.extract_strided_slice %15 {offsets = [2, 0, 0], sizes = [16, 16, 128], strides = [1, 1, 1]} : vector<18x16x128xf32> to vector<16x16x128xf32>
    %25 = vector.shape_cast %24 : vector<16x16x128xf32> to vector<256x128xf32>
    %26 = arith.truncf %25 : vector<256x128xf32> to vector<256x128xbf16>
    %c0_12 = arith.constant 0 : index
    %c896 = arith.constant 896 : index
    %27 = vector.load %arg11[%c0_12, %c896] : memref<256x1152xbf16, #tpu.memory_space<vmem>>, vector<256x128xbf16>
    tpu.vector_store %arg11[%c0_12, %c896], %26 {strides = array<i32>} : memref<256x1152xbf16, #tpu.memory_space<vmem>>, vector<256x128xbf16>,
    %c0_13 = arith.constant 0 : index
    %c0_14 = arith.constant 0 : index
    %c2 = arith.constant 2 : index
    %c0_15 = arith.constant 0 : index
    %28 = vector.load %arg1[%c0_13, %c0_14, %c2, %c0_15] : memref<1x18x18x128xf32, #tpu.memory_space<vmem>>, vector<1x18x16x128xf32>
    %29 = vector.shape_cast %28 : vector<1x18x16x128xf32> to vector<18x16x128xf32>
    %30 = vector.extract_strided_slice %29 {offsets = [0, 0, 0], sizes = [16, 16, 128], strides = [1, 1, 1]} : vector<18x16x128xf32> to vector<16x16x128xf32>
    %31 = vector.shape_cast %30 : vector<16x16x128xf32> to vector<256x128xf32>
    %32 = arith.truncf %31 : vector<256x128xf32> to vector<256x128xbf16>
    %c0_16 = arith.constant 0 : index
    %c256 = arith.constant 256 : index
    %33 = vector.load %arg11[%c0_16, %c256] : memref<256x1152xbf16, #tpu.memory_space<vmem>>, vector<256x128xbf16>
    tpu.vector_store %arg11[%c0_16, %c256], %32 {strides = array<i32>} : memref<256x1152xbf16, #tpu.memory_space<vmem>>, vector<256x128xbf16>,
    %34 = vector.extract_strided_slice %29 {offsets = [1, 0, 0], sizes = [16, 16, 128], strides = [1, 1, 1]} : vector<18x16x128xf32> to vector<16x16x128xf32>
    %35 = vector.shape_cast %34 : vector<16x16x128xf32> to vector<256x128xf32>
    %36 = arith.truncf %35 : vector<256x128xf32> to vector<256x128xbf16>
    %c0_17 = arith.constant 0 : index
    %c640 = arith.constant 640 : index
    %37 = vector.load %arg11[%c0_17, %c640] : memref<256x1152xbf16, #tpu.memory_space<vmem>>, vector<256x128xbf16>
    tpu.vector_store %arg11[%c0_17, %c640], %36 {strides = array<i32>} : memref<256x1152xbf16, #tpu.memory_space<vmem>>, vector<256x128xbf16>,
    %38 = vector.extract_strided_slice %29 {offsets = [2, 0, 0], sizes = [16, 16, 128], strides = [1, 1, 1]} : vector<18x16x128xf32> to vector<16x16x128xf32>
    %39 = vector.shape_cast %38 : vector<16x16x128xf32> to vector<256x128xf32>
    %40 = arith.truncf %39 : vector<256x128xf32> to vector<256x128xbf16>
    %c0_18 = arith.constant 0 : index
    %c1024 = arith.constant 1024 : index
    %41 = vector.load %arg11[%c0_18, %c1024] : memref<256x1152xbf16, #tpu.memory_space<vmem>>, vector<256x128xbf16>
    tpu.vector_store %arg11[%c0_18, %c1024], %40 {strides = array<i32>} : memref<256x1152xbf16, #tpu.memory_space<vmem>>, vector<256x128xbf16>,
    %c0_19 = arith.constant 0 : index
    %c0_20 = arith.constant 0 : index
    %42 = vector.load %arg11[%c0_19, %c0_20] : memref<256x1152xbf16, #tpu.memory_space<vmem>>, vector<256x1152xbf16>
    %c0_21 = arith.constant 0 : index
    %c0_22 = arith.constant 0 : index
    %43 = vector.load %arg2[%c0_21, %c0_22] : memref<1152x128xbf16, #tpu.memory_space<vmem>>, vector<1152x128xbf16>
    %cst = arith.constant dense<0.000000e+00> : vector<256x128xf32>
    %44 = tpu.matmul %42, %43, %cst {dimension_numbers = #tpu.dot_dimension_numbers<[1], [0], [0], [1], [0, 0, 1, 1], [], []>} : vector<256x1152xbf16>, vector<1152x128xbf16>, vector<256x128xf32> -> vector<256x128xf32>
    %c0_23 = arith.constant 0 : index
    %c0_24 = arith.constant 0 : index
    %45 = vector.load %arg3[%c0_23, %c0_24] : memref<1x128xf32, #tpu.memory_space<vmem>>, vector<1x128xf32>
    %46 = vector.broadcast %45 : vector<1x128xf32> to vector<256x128xf32>
    %47 = arith.addf %44, %46 : vector<256x128xf32>
    %cst_25 = arith.constant 0.000000e+00 : f32
    %48 = vector.broadcast %cst_25 : f32 to vector<256x128xf32>
    %49 = arith.maximumf %47, %48 : vector<256x128xf32>
    %50 = vector.shape_cast %49 : vector<256x128xf32> to vector<8x32x128xf32>
    %51 = vector.extract_strided_slice %50 {offsets = [0, 0, 0], sizes = [8, 16, 128], strides = [1, 1, 1]} : vector<8x32x128xf32> to vector<8x16x128xf32>
    %52 = vector.extract_strided_slice %50 {offsets = [0, 16, 0], sizes = [8, 16, 128], strides = [1, 1, 1]} : vector<8x32x128xf32> to vector<8x16x128xf32>
    %53 = arith.maximumf %51, %52 : vector<8x16x128xf32>
    %c0_26 = arith.constant 0 : index
    %c0_27 = arith.constant 0 : index
    %c0_28 = arith.constant 0 : index
    %54 = vector.load %arg12[%c0_26, %c0_27, %c0_28] : memref<8x16x128xf32, #tpu.memory_space<vmem>>, vector<8x16x128xf32>
    tpu.vector_store %arg12[%c0_26, %c0_27, %c0_28], %53 {strides = array<i32>} : memref<8x16x128xf32, #tpu.memory_space<vmem>>, vector<8x16x128xf32>,
    %cst_29 = arith.constant 0.000000e+00 : f32
    %55 = vector.broadcast %cst_29 : f32 to vector<1x1x10x128xf32>
    %c0_30 = arith.constant 0 : index
    %c0_31 = arith.constant 0 : index
    %c0_32 = arith.constant 0 : index
    %c0_33 = arith.constant 0 : index
    %56 = vector.load %arg13[%c0_30, %c0_31, %c0_32, %c0_33] : memref<1x10x10x128xf32, #tpu.memory_space<vmem>>, vector<1x1x10x128xf32>
    tpu.vector_store %arg13[%c0_30, %c0_31, %c0_32, %c0_33], %55 {strides = array<i32>} : memref<1x10x10x128xf32, #tpu.memory_space<vmem>>, vector<1x1x10x128xf32>,
    %cst_34 = arith.constant 0.000000e+00 : f32
    %57 = vector.broadcast %cst_34 : f32 to vector<1x1x10x128xf32>
    %c0_35 = arith.constant 0 : index
    %c9 = arith.constant 9 : index
    %c0_36 = arith.constant 0 : index
    %c0_37 = arith.constant 0 : index
    %58 = vector.load %arg13[%c0_35, %c9, %c0_36, %c0_37] : memref<1x10x10x128xf32, #tpu.memory_space<vmem>>, vector<1x1x10x128xf32>
    tpu.vector_store %arg13[%c0_35, %c9, %c0_36, %c0_37], %57 {strides = array<i32>} : memref<1x10x10x128xf32, #tpu.memory_space<vmem>>, vector<1x1x10x128xf32>,
    %cst_38 = arith.constant 0.000000e+00 : f32
    %59 = vector.broadcast %cst_38 : f32 to vector<1x10x1x128xf32>
    %c0_39 = arith.constant 0 : index
    %c0_40 = arith.constant 0 : index
    %c0_41 = arith.constant 0 : index
    %c0_42 = arith.constant 0 : index
    %60 = vector.load %arg13[%c0_39, %c0_40, %c0_41, %c0_42] : memref<1x10x10x128xf32, #tpu.memory_space<vmem>>, vector<1x10x1x128xf32>
    tpu.vector_store %arg13[%c0_39, %c0_40, %c0_41, %c0_42], %59 {strides = array<i32>} : memref<1x10x10x128xf32, #tpu.memory_space<vmem>>, vector<1x10x1x128xf32>,
    %cst_43 = arith.constant 0.000000e+00 : f32
    %61 = vector.broadcast %cst_43 : f32 to vector<1x10x1x128xf32>
    %c0_44 = arith.constant 0 : index
    %c0_45 = arith.constant 0 : index
    %c9_46 = arith.constant 9 : index
    %c0_47 = arith.constant 0 : index
    %62 = vector.load %arg13[%c0_44, %c0_45, %c9_46, %c0_47] : memref<1x10x10x128xf32, #tpu.memory_space<vmem>>, vector<1x10x1x128xf32>
    tpu.vector_store %arg13[%c0_44, %c0_45, %c9_46, %c0_47], %61 {strides = array<i32>} : memref<1x10x10x128xf32, #tpu.memory_space<vmem>>, vector<1x10x1x128xf32>,
    %c0_48 = arith.constant 0 : index
    %c0_49 = arith.constant 0 : index
    %c0_50 = arith.constant 0 : index
    %63 = tpu.strided_load %arg12[%c0_48, %c0_49, %c0_50] {strides = array<i32: 1, 2, 1>} : memref<8x16x128xf32, #tpu.memory_space<vmem>>, vector<8x8x128xf32>
    %c0_51 = arith.constant 0 : index
    %c1_52 = arith.constant 1 : index
    %c0_53 = arith.constant 0 : index
    %64 = tpu.strided_load %arg12[%c0_51, %c1_52, %c0_53] {strides = array<i32: 1, 2, 1>} : memref<8x16x128xf32, #tpu.memory_space<vmem>>, vector<8x8x128xf32>
    %65 = arith.maximumf %63, %64 : vector<8x8x128xf32>
    %c0_54 = arith.constant 0 : index
    %c1_55 = arith.constant 1 : index
    %c1_56 = arith.constant 1 : index
    %c0_57 = arith.constant 0 : index
    %66 = vector.load %arg13[%c0_54, %c1_55, %c1_56, %c0_57] : memref<1x10x10x128xf32, #tpu.memory_space<vmem>>, vector<1x8x8x128xf32>
    %67 = vector.shape_cast %66 : vector<1x8x8x128xf32> to vector<8x8x128xf32>
    %68 = vector.shape_cast %65 : vector<8x8x128xf32> to vector<1x8x8x128xf32>
    tpu.vector_store %arg13[%c0_54, %c1_55, %c1_56, %c0_57], %68 {strides = array<i32>} : memref<1x10x10x128xf32, #tpu.memory_space<vmem>>, vector<1x8x8x128xf32>,
    %69 = vector.shape_cast %65 : vector<8x8x128xf32> to vector<64x128xf32>
    %c0_58 = arith.constant 0 : index
    %c0_59 = arith.constant 0 : index
    %c0_60 = arith.constant 0 : index
    %c0_61 = arith.constant 0 : index
    %70 = vector.load %arg13[%c0_58, %c0_59, %c0_60, %c0_61] : memref<1x10x10x128xf32, #tpu.memory_space<vmem>>, vector<1x10x8x128xf32>
    %71 = vector.shape_cast %70 : vector<1x10x8x128xf32> to vector<10x8x128xf32>
    %72 = vector.extract_strided_slice %71 {offsets = [0, 0, 0], sizes = [8, 8, 128], strides = [1, 1, 1]} : vector<10x8x128xf32> to vector<8x8x128xf32>
    %73 = vector.shape_cast %72 : vector<8x8x128xf32> to vector<64x128xf32>
    %74 = arith.truncf %73 : vector<64x128xf32> to vector<64x128xbf16>
    %c0_62 = arith.constant 0 : index
    %c0_63 = arith.constant 0 : index
    %75 = vector.load %arg11[%c0_62, %c0_63] : memref<256x1152xbf16, #tpu.memory_space<vmem>>, vector<64x128xbf16>
    tpu.vector_store %arg11[%c0_62, %c0_63], %74 {strides = array<i32>} : memref<256x1152xbf16, #tpu.memory_space<vmem>>, vector<64x128xbf16>,
    %76 = vector.extract_strided_slice %71 {offsets = [1, 0, 0], sizes = [8, 8, 128], strides = [1, 1, 1]} : vector<10x8x128xf32> to vector<8x8x128xf32>
    %77 = vector.shape_cast %76 : vector<8x8x128xf32> to vector<64x128xf32>
    %78 = arith.truncf %77 : vector<64x128xf32> to vector<64x128xbf16>
    %c0_64 = arith.constant 0 : index
    %c384_65 = arith.constant 384 : index
    %79 = vector.load %arg11[%c0_64, %c384_65] : memref<256x1152xbf16, #tpu.memory_space<vmem>>, vector<64x128xbf16>
    tpu.vector_store %arg11[%c0_64, %c384_65], %78 {strides = array<i32>} : memref<256x1152xbf16, #tpu.memory_space<vmem>>, vector<64x128xbf16>,
    %80 = vector.extract_strided_slice %71 {offsets = [2, 0, 0], sizes = [8, 8, 128], strides = [1, 1, 1]} : vector<10x8x128xf32> to vector<8x8x128xf32>
    %81 = vector.shape_cast %80 : vector<8x8x128xf32> to vector<64x128xf32>
    %82 = arith.truncf %81 : vector<64x128xf32> to vector<64x128xbf16>
    %c0_66 = arith.constant 0 : index
    %c768_67 = arith.constant 768 : index
    %83 = vector.load %arg11[%c0_66, %c768_67] : memref<256x1152xbf16, #tpu.memory_space<vmem>>, vector<64x128xbf16>
    tpu.vector_store %arg11[%c0_66, %c768_67], %82 {strides = array<i32>} : memref<256x1152xbf16, #tpu.memory_space<vmem>>, vector<64x128xbf16>,
    %c0_68 = arith.constant 0 : index
    %c0_69 = arith.constant 0 : index
    %c1_70 = arith.constant 1 : index
    %c0_71 = arith.constant 0 : index
    %84 = vector.load %arg13[%c0_68, %c0_69, %c1_70, %c0_71] : memref<1x10x10x128xf32, #tpu.memory_space<vmem>>, vector<1x10x8x128xf32>
    %85 = vector.shape_cast %84 : vector<1x10x8x128xf32> to vector<10x8x128xf32>
    %86 = vector.extract_strided_slice %85 {offsets = [0, 0, 0], sizes = [8, 8, 128], strides = [1, 1, 1]} : vector<10x8x128xf32> to vector<8x8x128xf32>
    %87 = vector.shape_cast %86 : vector<8x8x128xf32> to vector<64x128xf32>
    %88 = arith.truncf %87 : vector<64x128xf32> to vector<64x128xbf16>
    %c0_72 = arith.constant 0 : index
    %c128_73 = arith.constant 128 : index
    %89 = vector.load %arg11[%c0_72, %c128_73] : memref<256x1152xbf16, #tpu.memory_space<vmem>>, vector<64x128xbf16>
    tpu.vector_store %arg11[%c0_72, %c128_73], %88 {strides = array<i32>} : memref<256x1152xbf16, #tpu.memory_space<vmem>>, vector<64x128xbf16>,
    %90 = vector.extract_strided_slice %85 {offsets = [1, 0, 0], sizes = [8, 8, 128], strides = [1, 1, 1]} : vector<10x8x128xf32> to vector<8x8x128xf32>
    %91 = vector.shape_cast %90 : vector<8x8x128xf32> to vector<64x128xf32>
    %92 = arith.truncf %91 : vector<64x128xf32> to vector<64x128xbf16>
    %c0_74 = arith.constant 0 : index
    %c512_75 = arith.constant 512 : index
    %93 = vector.load %arg11[%c0_74, %c512_75] : memref<256x1152xbf16, #tpu.memory_space<vmem>>, vector<64x128xbf16>
    tpu.vector_store %arg11[%c0_74, %c512_75], %92 {strides = array<i32>} : memref<256x1152xbf16, #tpu.memory_space<vmem>>, vector<64x128xbf16>,
    %94 = vector.extract_strided_slice %85 {offsets = [2, 0, 0], sizes = [8, 8, 128], strides = [1, 1, 1]} : vector<10x8x128xf32> to vector<8x8x128xf32>
    %95 = vector.shape_cast %94 : vector<8x8x128xf32> to vector<64x128xf32>
    %96 = arith.truncf %95 : vector<64x128xf32> to vector<64x128xbf16>
    %c0_76 = arith.constant 0 : index
    %c896_77 = arith.constant 896 : index
    %97 = vector.load %arg11[%c0_76, %c896_77] : memref<256x1152xbf16, #tpu.memory_space<vmem>>, vector<64x128xbf16>
    tpu.vector_store %arg11[%c0_76, %c896_77], %96 {strides = array<i32>} : memref<256x1152xbf16, #tpu.memory_space<vmem>>, vector<64x128xbf16>,
    %c0_78 = arith.constant 0 : index
    %c0_79 = arith.constant 0 : index
    %c2_80 = arith.constant 2 : index
    %c0_81 = arith.constant 0 : index
    %98 = vector.load %arg13[%c0_78, %c0_79, %c2_80, %c0_81] : memref<1x10x10x128xf32, #tpu.memory_space<vmem>>, vector<1x10x8x128xf32>
    %99 = vector.shape_cast %98 : vector<1x10x8x128xf32> to vector<10x8x128xf32>
    %100 = vector.extract_strided_slice %99 {offsets = [0, 0, 0], sizes = [8, 8, 128], strides = [1, 1, 1]} : vector<10x8x128xf32> to vector<8x8x128xf32>
    %101 = vector.shape_cast %100 : vector<8x8x128xf32> to vector<64x128xf32>
    %102 = arith.truncf %101 : vector<64x128xf32> to vector<64x128xbf16>
    %c0_82 = arith.constant 0 : index
    %c256_83 = arith.constant 256 : index
    %103 = vector.load %arg11[%c0_82, %c256_83] : memref<256x1152xbf16, #tpu.memory_space<vmem>>, vector<64x128xbf16>
    tpu.vector_store %arg11[%c0_82, %c256_83], %102 {strides = array<i32>} : memref<256x1152xbf16, #tpu.memory_space<vmem>>, vector<64x128xbf16>,
    %104 = vector.extract_strided_slice %99 {offsets = [1, 0, 0], sizes = [8, 8, 128], strides = [1, 1, 1]} : vector<10x8x128xf32> to vector<8x8x128xf32>
    %105 = vector.shape_cast %104 : vector<8x8x128xf32> to vector<64x128xf32>
    %106 = arith.truncf %105 : vector<64x128xf32> to vector<64x128xbf16>
    %c0_84 = arith.constant 0 : index
    %c640_85 = arith.constant 640 : index
    %107 = vector.load %arg11[%c0_84, %c640_85] : memref<256x1152xbf16, #tpu.memory_space<vmem>>, vector<64x128xbf16>
    tpu.vector_store %arg11[%c0_84, %c640_85], %106 {strides = array<i32>} : memref<256x1152xbf16, #tpu.memory_space<vmem>>, vector<64x128xbf16>,
    %108 = vector.extract_strided_slice %99 {offsets = [2, 0, 0], sizes = [8, 8, 128], strides = [1, 1, 1]} : vector<10x8x128xf32> to vector<8x8x128xf32>
    %109 = vector.shape_cast %108 : vector<8x8x128xf32> to vector<64x128xf32>
    %110 = arith.truncf %109 : vector<64x128xf32> to vector<64x128xbf16>
    %c0_86 = arith.constant 0 : index
    %c1024_87 = arith.constant 1024 : index
    %111 = vector.load %arg11[%c0_86, %c1024_87] : memref<256x1152xbf16, #tpu.memory_space<vmem>>, vector<64x128xbf16>
    tpu.vector_store %arg11[%c0_86, %c1024_87], %110 {strides = array<i32>} : memref<256x1152xbf16, #tpu.memory_space<vmem>>, vector<64x128xbf16>,
    %c0_88 = arith.constant 0 : index
    %c0_89 = arith.constant 0 : index
    %112 = vector.load %arg11[%c0_88, %c0_89] : memref<256x1152xbf16, #tpu.memory_space<vmem>>, vector<64x1152xbf16>
    %c0_90 = arith.constant 0 : index
    %c0_91 = arith.constant 0 : index
    %113 = vector.load %arg4[%c0_90, %c0_91] : memref<1152x128xbf16, #tpu.memory_space<vmem>>, vector<1152x128xbf16>
    %cst_92 = arith.constant dense<0.000000e+00> : vector<64x128xf32>
    %114 = tpu.matmul %112, %113, %cst_92 {dimension_numbers = #tpu.dot_dimension_numbers<[1], [0], [0], [1], [0, 0, 1, 1], [], []>} : vector<64x1152xbf16>, vector<1152x128xbf16>, vector<64x128xf32> -> vector<64x128xf32>
    %c0_93 = arith.constant 0 : index
    %c0_94 = arith.constant 0 : index
    %115 = vector.load %arg5[%c0_93, %c0_94] : memref<1x128xf32, #tpu.memory_space<vmem>>, vector<1x128xf32>
    %116 = vector.broadcast %115 : vector<1x128xf32> to vector<64x128xf32>
    %117 = arith.addf %114, %116 : vector<64x128xf32>
    %cst_95 = arith.constant 0.000000e+00 : f32
    %118 = vector.broadcast %cst_95 : f32 to vector<64x128xf32>
    %119 = arith.maximumf %117, %118 : vector<64x128xf32>
    %120 = vector.shape_cast %119 : vector<64x128xf32> to vector<8x8x128xf32>
    %c0_96 = arith.constant 0 : index
    %c1_97 = arith.constant 1 : index
    %c1_98 = arith.constant 1 : index
    %c0_99 = arith.constant 0 : index
    %121 = vector.load %arg13[%c0_96, %c1_97, %c1_98, %c0_99] : memref<1x10x10x128xf32, #tpu.memory_space<vmem>>, vector<1x8x8x128xf32>
    %122 = vector.shape_cast %121 : vector<1x8x8x128xf32> to vector<8x8x128xf32>
    %123 = vector.shape_cast %120 : vector<8x8x128xf32> to vector<1x8x8x128xf32>
    tpu.vector_store %arg13[%c0_96, %c1_97, %c1_98, %c0_99], %123 {strides = array<i32>} : memref<1x10x10x128xf32, #tpu.memory_space<vmem>>, vector<1x8x8x128xf32>,
    %c0_100 = arith.constant 0 : index
    %c0_101 = arith.constant 0 : index
    %c0_102 = arith.constant 0 : index
    %c0_103 = arith.constant 0 : index
    %124 = vector.load %arg13[%c0_100, %c0_101, %c0_102, %c0_103] : memref<1x10x10x128xf32, #tpu.memory_space<vmem>>, vector<1x10x8x128xf32>
    %125 = vector.shape_cast %124 : vector<1x10x8x128xf32> to vector<10x8x128xf32>
    %126 = vector.extract_strided_slice %125 {offsets = [0, 0, 0], sizes = [8, 8, 128], strides = [1, 1, 1]} : vector<10x8x128xf32> to vector<8x8x128xf32>
    %127 = vector.shape_cast %126 : vector<8x8x128xf32> to vector<64x128xf32>
    %128 = arith.truncf %127 : vector<64x128xf32> to vector<64x128xbf16>
    %c0_104 = arith.constant 0 : index
    %c0_105 = arith.constant 0 : index
    %129 = vector.load %arg11[%c0_104, %c0_105] : memref<256x1152xbf16, #tpu.memory_space<vmem>>, vector<64x128xbf16>
    tpu.vector_store %arg11[%c0_104, %c0_105], %128 {strides = array<i32>} : memref<256x1152xbf16, #tpu.memory_space<vmem>>, vector<64x128xbf16>,
    %130 = vector.extract_strided_slice %125 {offsets = [1, 0, 0], sizes = [8, 8, 128], strides = [1, 1, 1]} : vector<10x8x128xf32> to vector<8x8x128xf32>
    %131 = vector.shape_cast %130 : vector<8x8x128xf32> to vector<64x128xf32>
    %132 = arith.truncf %131 : vector<64x128xf32> to vector<64x128xbf16>
    %c0_106 = arith.constant 0 : index
    %c384_107 = arith.constant 384 : index
    %133 = vector.load %arg11[%c0_106, %c384_107] : memref<256x1152xbf16, #tpu.memory_space<vmem>>, vector<64x128xbf16>
    tpu.vector_store %arg11[%c0_106, %c384_107], %132 {strides = array<i32>} : memref<256x1152xbf16, #tpu.memory_space<vmem>>, vector<64x128xbf16>,
    %134 = vector.extract_strided_slice %125 {offsets = [2, 0, 0], sizes = [8, 8, 128], strides = [1, 1, 1]} : vector<10x8x128xf32> to vector<8x8x128xf32>
    %135 = vector.shape_cast %134 : vector<8x8x128xf32> to vector<64x128xf32>
    %136 = arith.truncf %135 : vector<64x128xf32> to vector<64x128xbf16>
    %c0_108 = arith.constant 0 : index
    %c768_109 = arith.constant 768 : index
    %137 = vector.load %arg11[%c0_108, %c768_109] : memref<256x1152xbf16, #tpu.memory_space<vmem>>, vector<64x128xbf16>
    tpu.vector_store %arg11[%c0_108, %c768_109], %136 {strides = array<i32>} : memref<256x1152xbf16, #tpu.memory_space<vmem>>, vector<64x128xbf16>,
    %c0_110 = arith.constant 0 : index
    %c0_111 = arith.constant 0 : index
    %c1_112 = arith.constant 1 : index
    %c0_113 = arith.constant 0 : index
    %138 = vector.load %arg13[%c0_110, %c0_111, %c1_112, %c0_113] : memref<1x10x10x128xf32, #tpu.memory_space<vmem>>, vector<1x10x8x128xf32>
    %139 = vector.shape_cast %138 : vector<1x10x8x128xf32> to vector<10x8x128xf32>
    %140 = vector.extract_strided_slice %139 {offsets = [0, 0, 0], sizes = [8, 8, 128], strides = [1, 1, 1]} : vector<10x8x128xf32> to vector<8x8x128xf32>
    %141 = vector.shape_cast %140 : vector<8x8x128xf32> to vector<64x128xf32>
    %142 = arith.truncf %141 : vector<64x128xf32> to vector<64x128xbf16>
    %c0_114 = arith.constant 0 : index
    %c128_115 = arith.constant 128 : index
    %143 = vector.load %arg11[%c0_114, %c128_115] : memref<256x1152xbf16, #tpu.memory_space<vmem>>, vector<64x128xbf16>
    tpu.vector_store %arg11[%c0_114, %c128_115], %142 {strides = array<i32>} : memref<256x1152xbf16, #tpu.memory_space<vmem>>, vector<64x128xbf16>,
    %144 = vector.extract_strided_slice %139 {offsets = [1, 0, 0], sizes = [8, 8, 128], strides = [1, 1, 1]} : vector<10x8x128xf32> to vector<8x8x128xf32>
    %145 = vector.shape_cast %144 : vector<8x8x128xf32> to vector<64x128xf32>
    %146 = arith.truncf %145 : vector<64x128xf32> to vector<64x128xbf16>
    %c0_116 = arith.constant 0 : index
    %c512_117 = arith.constant 512 : index
    %147 = vector.load %arg11[%c0_116, %c512_117] : memref<256x1152xbf16, #tpu.memory_space<vmem>>, vector<64x128xbf16>
    tpu.vector_store %arg11[%c0_116, %c512_117], %146 {strides = array<i32>} : memref<256x1152xbf16, #tpu.memory_space<vmem>>, vector<64x128xbf16>,
    %148 = vector.extract_strided_slice %139 {offsets = [2, 0, 0], sizes = [8, 8, 128], strides = [1, 1, 1]} : vector<10x8x128xf32> to vector<8x8x128xf32>
    %149 = vector.shape_cast %148 : vector<8x8x128xf32> to vector<64x128xf32>
    %150 = arith.truncf %149 : vector<64x128xf32> to vector<64x128xbf16>
    %c0_118 = arith.constant 0 : index
    %c896_119 = arith.constant 896 : index
    %151 = vector.load %arg11[%c0_118, %c896_119] : memref<256x1152xbf16, #tpu.memory_space<vmem>>, vector<64x128xbf16>
    tpu.vector_store %arg11[%c0_118, %c896_119], %150 {strides = array<i32>} : memref<256x1152xbf16, #tpu.memory_space<vmem>>, vector<64x128xbf16>,
    %c0_120 = arith.constant 0 : index
    %c0_121 = arith.constant 0 : index
    %c2_122 = arith.constant 2 : index
    %c0_123 = arith.constant 0 : index
    %152 = vector.load %arg13[%c0_120, %c0_121, %c2_122, %c0_123] : memref<1x10x10x128xf32, #tpu.memory_space<vmem>>, vector<1x10x8x128xf32>
    %153 = vector.shape_cast %152 : vector<1x10x8x128xf32> to vector<10x8x128xf32>
    %154 = vector.extract_strided_slice %153 {offsets = [0, 0, 0], sizes = [8, 8, 128], strides = [1, 1, 1]} : vector<10x8x128xf32> to vector<8x8x128xf32>
    %155 = vector.shape_cast %154 : vector<8x8x128xf32> to vector<64x128xf32>
    %156 = arith.truncf %155 : vector<64x128xf32> to vector<64x128xbf16>
    %c0_124 = arith.constant 0 : index
    %c256_125 = arith.constant 256 : index
    %157 = vector.load %arg11[%c0_124, %c256_125] : memref<256x1152xbf16, #tpu.memory_space<vmem>>, vector<64x128xbf16>
    tpu.vector_store %arg11[%c0_124, %c256_125], %156 {strides = array<i32>} : memref<256x1152xbf16, #tpu.memory_space<vmem>>, vector<64x128xbf16>,
    %158 = vector.extract_strided_slice %153 {offsets = [1, 0, 0], sizes = [8, 8, 128], strides = [1, 1, 1]} : vector<10x8x128xf32> to vector<8x8x128xf32>
    %159 = vector.shape_cast %158 : vector<8x8x128xf32> to vector<64x128xf32>
    %160 = arith.truncf %159 : vector<64x128xf32> to vector<64x128xbf16>
    %c0_126 = arith.constant 0 : index
    %c640_127 = arith.constant 640 : index
    %161 = vector.load %arg11[%c0_126, %c640_127] : memref<256x1152xbf16, #tpu.memory_space<vmem>>, vector<64x128xbf16>
    tpu.vector_store %arg11[%c0_126, %c640_127], %160 {strides = array<i32>} : memref<256x1152xbf16, #tpu.memory_space<vmem>>, vector<64x128xbf16>,
    %162 = vector.extract_strided_slice %153 {offsets = [2, 0, 0], sizes = [8, 8, 128], strides = [1, 1, 1]} : vector<10x8x128xf32> to vector<8x8x128xf32>
    %163 = vector.shape_cast %162 : vector<8x8x128xf32> to vector<64x128xf32>
    %164 = arith.truncf %163 : vector<64x128xf32> to vector<64x128xbf16>
    %c0_128 = arith.constant 0 : index
    %c1024_129 = arith.constant 1024 : index
    %165 = vector.load %arg11[%c0_128, %c1024_129] : memref<256x1152xbf16, #tpu.memory_space<vmem>>, vector<64x128xbf16>
    tpu.vector_store %arg11[%c0_128, %c1024_129], %164 {strides = array<i32>} : memref<256x1152xbf16, #tpu.memory_space<vmem>>, vector<64x128xbf16>,
    %c0_130 = arith.constant 0 : index
    %c0_131 = arith.constant 0 : index
    %166 = vector.load %arg11[%c0_130, %c0_131] : memref<256x1152xbf16, #tpu.memory_space<vmem>>, vector<64x1152xbf16>
    %c0_132 = arith.constant 0 : index
    %c0_133 = arith.constant 0 : index
    %167 = vector.load %arg6[%c0_132, %c0_133] : memref<1152x128xbf16, #tpu.memory_space<vmem>>, vector<1152x128xbf16>
    %cst_134 = arith.constant dense<0.000000e+00> : vector<64x128xf32>
    %168 = tpu.matmul %166, %167, %cst_134 {dimension_numbers = #tpu.dot_dimension_numbers<[1], [0], [0], [1], [0, 0, 1, 1], [], []>} : vector<64x1152xbf16>, vector<1152x128xbf16>, vector<64x128xf32> -> vector<64x128xf32>
    %c0_135 = arith.constant 0 : index
    %c0_136 = arith.constant 0 : index
    %169 = vector.load %arg7[%c0_135, %c0_136] : memref<1x128xf32, #tpu.memory_space<vmem>>, vector<1x128xf32>
    %170 = vector.broadcast %169 : vector<1x128xf32> to vector<64x128xf32>
    %171 = arith.addf %168, %170 : vector<64x128xf32>
    %172 = arith.addf %171, %69 : vector<64x128xf32>
    %cst_137 = arith.constant 0.000000e+00 : f32
    %173 = vector.broadcast %cst_137 : f32 to vector<64x128xf32>
    %174 = arith.maximumf %172, %173 : vector<64x128xf32>
    %175 = vector.shape_cast %174 : vector<64x128xf32> to vector<1x64x128xf32>
    %cst_138 = arith.constant dense<0.000000e+00> : vector<1x128xf32>
    %176 = vector.multi_reduction <add>, %175, %cst_138 [1] : vector<1x64x128xf32> to vector<1x128xf32>
    %cst_139 = arith.constant 6.400000e+01 : f32
    %177 = vector.broadcast %cst_139 : f32 to vector<1x128xf32>
    %178 = arith.divf %176, %177 : vector<1x128xf32>
    %c0_140 = arith.constant 0 : index
    %c0_141 = arith.constant 0 : index
    %179 = vector.load %arg8[%c0_140, %c0_141] : memref<128x128xf32, #tpu.memory_space<vmem>>, vector<128x128xf32>
    %cst_142 = arith.constant dense<0.000000e+00> : vector<1x128xf32>
    %180 = tpu.matmul %178, %179, %cst_142 {dimension_numbers = #tpu.dot_dimension_numbers<[1], [0], [0], [1], [0, 0, 1, 1], [], []>} : vector<1x128xf32>, vector<128x128xf32>, vector<1x128xf32> -> vector<1x128xf32>
    %c0_143 = arith.constant 0 : index
    %c0_144 = arith.constant 0 : index
    %181 = vector.load %arg9[%c0_143, %c0_144] : memref<1x128xf32, #tpu.memory_space<vmem>>, vector<1x128xf32>
    %182 = arith.addf %180, %181 : vector<1x128xf32>
    %183 = vector.shape_cast %182 : vector<1x128xf32> to vector<1x1x128xf32>
    %c0_145 = arith.constant 0 : index
    %c0_146 = arith.constant 0 : index
    %c0_147 = arith.constant 0 : index
    %184 = vector.load %arg10[%c0_145, %c0_146, %c0_147] : memref<1x1x128xf32, #tpu.memory_space<vmem>>, vector<1x1x128xf32>
    tpu.vector_store %arg10[%c0_145, %c0_146, %c0_147], %183 {strides = array<i32>} : memref<1x1x128xf32, #tpu.memory_space<vmem>>, vector<1x1x128xf32>,
    return
  }
  func.func @transform_0(%arg0: i32) -> (i32, i32, i32, i32) {
    %c0_i32 = arith.constant 0 : i32
    %c0_i32_0 = arith.constant 0 : i32
    %c0_i32_1 = arith.constant 0 : i32
    %c0_i32_2 = arith.constant 0 : i32
    return %arg0, %c0_i32, %c0_i32_0, %c0_i32_1 : i32, i32, i32, i32
  }
  func.func @transform_1(%arg0: i32) -> (i32, i32) {
    %c0_i32 = arith.constant 0 : i32
    %c0_i32_0 = arith.constant 0 : i32
    %c0_i32_1 = arith.constant 0 : i32
    return %c0_i32, %c0_i32_0 : i32, i32
  }
  func.func @transform_2(%arg0: i32) -> (i32, i32) {
    %c0_i32 = arith.constant 0 : i32
    %c0_i32_0 = arith.constant 0 : i32
    %c0_i32_1 = arith.constant 0 : i32
    return %c0_i32, %c0_i32_0 : i32, i32
  }
  func.func @transform_3(%arg0: i32) -> (i32, i32) {
    %c0_i32 = arith.constant 0 : i32
    %c0_i32_0 = arith.constant 0 : i32
    %c0_i32_1 = arith.constant 0 : i32
    return %c0_i32, %c0_i32_0 : i32, i32
  }
  func.func @transform_4(%arg0: i32) -> (i32, i32) {
    %c0_i32 = arith.constant 0 : i32
    %c0_i32_0 = arith.constant 0 : i32
    %c0_i32_1 = arith.constant 0 : i32
    return %c0_i32, %c0_i32_0 : i32, i32
  }
  func.func @transform_5(%arg0: i32) -> (i32, i32) {
    %c0_i32 = arith.constant 0 : i32
    %c0_i32_0 = arith.constant 0 : i32
    %c0_i32_1 = arith.constant 0 : i32
    return %c0_i32, %c0_i32_0 : i32, i32
  }
  func.func @transform_6(%arg0: i32) -> (i32, i32) {
    %c0_i32 = arith.constant 0 : i32
    %c0_i32_0 = arith.constant 0 : i32
    %c0_i32_1 = arith.constant 0 : i32
    return %c0_i32, %c0_i32_0 : i32, i32
  }
  func.func @transform_7(%arg0: i32) -> (i32, i32) {
    %c0_i32 = arith.constant 0 : i32
    %c0_i32_0 = arith.constant 0 : i32
    %c0_i32_1 = arith.constant 0 : i32
    return %c0_i32, %c0_i32_0 : i32, i32
  }
  func.func @transform_8(%arg0: i32) -> (i32, i32) {
    %c0_i32 = arith.constant 0 : i32
    %c0_i32_0 = arith.constant 0 : i32
    %c0_i32_1 = arith.constant 0 : i32
    return %c0_i32, %c0_i32_0 : i32, i32
  }
  func.func @transform_9(%arg0: i32) -> (i32, i32, i32) {
    %c0_i32 = arith.constant 0 : i32
    %c0_i32_0 = arith.constant 0 : i32
    %c0_i32_1 = arith.constant 0 : i32
    return %arg0, %c0_i32, %c0_i32_0 : i32, i32, i32
  }
}

</mosaic_0001>

<bundles_post_ra>
// kernel: gcam_forward.1
= control target key start
LH: loop header
LB: loop body
LE: loop exit
PB: predicated region body
PF: predicated region fallthrough
CT: control target
= control target key end

     0   :  { %14 = vsyncpa [#allocation6], 0  ;;  %s10769_s0 = inlined_call_operand.vmem [shape: f32[2,18,18,128], index: 0, kind: input, shape index: {}]   ;;  %s10770_s1 = inlined_call_operand.vmem [shape: bf16[1152,128], index: 1, kind: input, shape index: {}]   ;;  %s10771_s2 = inlined_call_operand.vmem [shape: f32[1,128], index: 2, kind: input, shape index: {}]   ;;  %s10772_s3 = inlined_call_operand.vmem [shape: bf16[1152,128], index: 3, kind: input, shape index: {}]   ;;  %s10773_s4 = inlined_call_operand.vmem [shape: f32[1,128], index: 4, kind: input, shape index: {}]   ;;  %s10774_s5 = inlined_call_operand.vmem [shape: bf16[1152,128], index: 5, kind: input, shape index: {}]   ;;  %s10775_s6 = inlined_call_operand.vmem [shape: f32[1,128], index: 6, kind: input, shape index: {}]   ;;  %s10776_s7 = inlined_call_operand.vmem [shape: f32[128,128], index: 7, kind: input, shape index: {}]   ;;  %s10777_s8 = inlined_call_operand.vmem [shape: f32[1,128], index: 8, kind: input, shape index: {}]   ;;  %s10778_s9 = inlined_call_operand.hbm [shape: f32[2,1,128], index: 9, kind: output, shape index: {}]  }
   0x1   :  { %16 = vsyncpa [#allocation6 + $0x1], 0  ;;  %s9207_s30 = smov 0   ;;  %s9209_s10 = smov 0  }
   0x2   :  { %s9211_s11 = smov 0   ;;  %s9213_s12 = smov 0  }
   0x3 LB: > { %s9228_s13 = sadd.s32 4294967295, %s9152_s12   ;;  %s6683_s14 = sadd.s32 4294967294, %s9152_s12   ;;  %s9152_s12 = sphi %s9213_s12, %s10905_s12   ;;  %s9148_s11 = sphi %s9211_s11, %s10904_s11   ;;  %s9144_s10 = sphi %s9209_s10, %s10903_s10   ;;  %s9140_s30 = sphi %s9207_s30, %s10902_s30  }
   0x4   : > { %s9232_s15 = sadd.s32 1, %s9152_s12   ;;  %s223_s16 = sadd.s32 1, %s9148_s11 }
   0x5   : > { %s220_s17 = ssub.s32 %s9152_s12, %s9232_s15  ;;  %p233_p0 = scmp.ne.s32.totalorder %s9148_s11, %s9144_s10 }
   0x6   : > { %p221_p1 = scmp.eq.s32.totalorder %s220_s17, 0  ;;  %p234_p2 = scmp.eq.s32.totalorder %s9228_s13, 1 }
   0x7   : > { %p239_p3 = scmp.ne.s32.totalorder %s9144_s10, %s9140_s30  ;;  %p240_p4 = scmp.eq.s32.totalorder %s6683_s14, 1 }
   0x8   : > { %s9243_s18 = scalar_select %p221_p1, %s9148_s11, %s223_s16  }
   0x9   : > { %p9245_p5 = por %p234_p2, %p233_p0  ;;  %p9249_p6 = por %p240_p4, %p239_p3 }
   0xa   : > { %p6686_p7 = scmp.ge.s32.totalorder %s9152_s12, 1  ;;  %p290_p8 = scmp.lt.s32.totalorder %s9152_s12, 3 }
   0xc   : > { %p291_p9 = pnand %p6686_p7, %p290_p8 }
   0xe   : > { %294 = sbr.rel (%p291_p9) target bundleno = 1363 (0x553), region = 56 }
  0x13   : > { %v8564_v0 = vld [vmem:[%s10770_s1 + $0x78] sm:$0xff]   ;;  %v8568_v4 = vld [vmem:[%s10770_s1 + $0x70] sm:$0xff]   ;;  %v8572_v8 = vld [vmem:[%s10770_s1 + $0x68] sm:$0xff]   ;;  %p325_p10 = scmp.lt.s32.totalorder %s9228_s13, 1  ;;  %vm9155_vm0 = vmmov 0   ;;  %s323_s26 = sand.u32 1, %s9144_s10  }
  0x14   : > { %v8565_v1 = vld [vmem:[%s10770_s1 + $0x38] sm:$0xff]   ;;  %7558 = vmatprep.subr.bf16.mxu0 %v8564_v0  ;;  %v8569_v5 = vld [vmem:[%s10770_s1 + $0x30] sm:$0xff]   ;;  %v8573_v9 = vld [vmem:[%s10770_s1 + $0x28] sm:$0xff]   ;;  %s324_s14 = scalar_lea.vmem [#allocation5], %s323_s26  ;;  %s9156_s25 = smov [#allocation5]  }
  0x15   : > { %v8566_v2 = vld [vmem:[%s10770_s1 + $0xf8] sm:$0xff]   ;;  %7559 = vmatpush3.bf16.msra.mxu0 %v8565_v1  ;;  %v8570_v6 = vld [vmem:[%s10770_s1 + $0xf0] sm:$0xff]   ;;  %v8574_v10 = vld [vmem:[%s10770_s1 + $0xe8] sm:$0xff]   ;;  %s326_s27 = scalar_select %p325_p10, %s9228_s13, 1 }
  0x16   : > { %v8567_v3 = vld [vmem:[%s10770_s1 + $0xb8] sm:$0xff]   ;;  %7670 = vmatprep.subr.bf16.mxu1 %v8566_v2  ;;  %7560 = vmatprep.subr.bf16.mxu0 %v8568_v4  ;;  %v8571_v7 = vld [vmem:[%s10770_s1 + $0xb0] sm:$0xff]   ;;  %v8575_v11 = vld [vmem:[%s10770_s1 + $0xa8] sm:$0xff]   ;;  %s6628_s16 = sshll.u32 %s324_s14, 4  ;;  %s6629_s16 = int_to_ptr.vmem [resolvable:$true] %s6628_s16 }
  0x17   : > { %7671 = vmatpush3.bf16.msra.mxu1 %v8567_v3  ;;  %v8576_v12 = vld [vmem:[%s10770_s1 + $0x60] sm:$0xff]   ;;  %v8580_v16 = vld [vmem:[%s10770_s1 + $0x58] sm:$0xff]   ;;  %v8584_v20 = vld [vmem:[%s10770_s1 + $0x50] sm:$0xff]   ;;  %s8522_s24 = smul.u32 432, %s326_s27  ;;  %s6616_s27 = scalar_lea.sflag [#allocation6], %s323_s26 }
  0x18   : > { %7672 = vmatprep.subr.bf16.mxu1 %v8570_v6  ;;  %v8577_v13 = vld [vmem:[%s10770_s1 + $0x20] sm:$0xff]   ;;  %v8581_v17 = vld [vmem:[%s10770_s1 + $0x18] sm:$0xff]   ;;  %v8585_v21 = vld [vmem:[%s10770_s1 + $0x10] sm:$0xff]   ;;  %s9092_s22 = scalar_lea.vmem %s6629_s16, 16 }
  0x19   : > { %7561 = vmatpush3.bf16.msra.mxu0 %v8569_v5  ;;  %v8578_v14 = vld [vmem:[%s10770_s1 + $0xe0] sm:$0xff]   ;;  %v8582_v18 = vld [vmem:[%s10770_s1 + $0xd8] sm:$0xff]   ;;  %v8586_v22 = vld [vmem:[%s10770_s1 + $0xd0] sm:$0xff]   ;;  %s9347_s23 = scalar_lea.vmem %s10769_s0, %s8522_s24  ;;  %s7339_s24 = sshll.u32 %s9228_s13, 4 }
  0x1a   : > { %7562 = vmatprep.subr.bf16.mxu0 %v8572_v8  ;;  %v8579_v15 = vld [vmem:[%s10770_s1 + $0xa0] sm:$0xff]   ;;  %v8583_v19 = vld [vmem:[%s10770_s1 + $0x98] sm:$0xff]   ;;  %v8587_v23 = vld [vmem:[%s10770_s1 + $0x90] sm:$0xff]   ;;  %p9093_p11 = scmp.ne.s32.totalorder %s6629_s16, %s9092_s22  ;;  %s9096_s13 = sshll.u32 %s9156_s25, 4  ;;  %s9097_s13 = int_to_ptr.vmem [resolvable:$false] %s9096_s13 }
  0x1b   : > { %7673 = vmatpush3.bf16.msra.mxu1 %v8571_v7  ;;  %v8588_v24 = vld [vmem:[%s10770_s1 + $0x48] sm:$0xff]   ;;  %v8592_v28 = vld [vmem:[%s10770_s1 + $0x40] sm:$0xff]   ;;  %v8599_v40 = vld [vmem:[%s10770_s1 + $0x178] sm:$0xff]   ;;  %s9098_s28 = scalar_lea.vmem %s9097_s13, 32  ;;  %p9099_p0 = scmp.lt.s32.totalorder %s6629_s16, %s9097_s13 }
  0x1c   : > { %7674 = vmatprep.subr.bf16.mxu1 %v8574_v10  ;;  %v8589_v25 = vld [vmem:[%s10770_s1 + $0x8] sm:$0xff]   ;;  %v8593_v29 = vld [vmem:[%s10770_s1] sm:$0xff]   ;;  %v333_v41 = vld [vmem:[%s9347_s23 + $0x18] sm:$0xff]  ;;  %p9094_p12 = pnand %p9093_p11, %p9245_p5  ;;  %p9100_p1 = scmp.lt.s32.totalorder %s9098_s28, %s9092_s22 }
  0x1d   : > { %7563 = vmatpush3.bf16.msra.mxu0 %v8573_v9  ;;  %v8590_v26 = vld [vmem:[%s10770_s1 + $0xc8] sm:$0xff]   ;;  %v8594_v30 = vld [vmem:[%s10770_s1 + $0xc0] sm:$0xff]   ;;  %v7344_v43 = vpack.c.bf16 %v333_v41, %v333_v41  ;;  %v335_v52 = vld [vmem:[%s9347_s23 + $0x30] sm:$0xff] }
  0x1e   : > { %7564 = vmatprep.subr.bf16.mxu0 %v8576_v12  ;;  %v8591_v27 = vld [vmem:[%s10770_s1 + $0x88] sm:$0xff]   ;;  %v331_v31 = vld [vmem:[%s9347_s23] sm:$0xff]  ;;  %v336_v53 = vld [vmem:[%s9347_s23 + $0x38] sm:$0xff]  ;;  %v7346_v55 = vpack.c.bf16 %v335_v52, %v335_v52  ;;  %p9095_p13 = pneg %p9094_p12  ;;  %p9101_p2 = por %p9100_p1, %p9099_p0 }
  0x1f   : > { %7675 = vmatpush3.bf16.msra.mxu1 %v8575_v11  ;;  %v332_v32 = vld [vmem:[%s9347_s23 + $0x8] sm:$0xff]  ;;  %v7342_v34 = vpack.c.bf16 %v331_v31, %v331_v31  ;;  %v8597_v39 = vld [vmem:[%s10770_s1 + $0x80] sm:$0xff]   ;;  %535 = vst [vmem:[#allocation2 + $0xc] sm:$0xf] %v7344_v43  ;;  %497 = vst [vmem:[#allocation2 + $0x48] sm:$0xf] %v7344_v43  ;;  %v7347_v56 = vpack.c.bf16 %v336_v53, %v336_v53 }
  0x20   : > { %7676 = vmatprep.subr.bf16.mxu1 %v8578_v14  ;;  %v607_v33 = vld [vmem:[%s9347_s23 + $0x1] sm:$0xff]  ;;  %v7343_v35 = vpack.c.bf16 %v332_v32, %v332_v32  ;;  %v608_v36 = vld [vmem:[%s9347_s23 + $0x9] sm:$0xff]  ;;  %v609_v49 = vld [vmem:[%s9347_s23 + $0x19] sm:$0xff]  ;;  %537 = vst [vmem:[#allocation2 + $0x54] sm:$0xf] %v7346_v55  ;;  %p9102_p3 = pnand %p9101_p2, %p9095_p13 }
  0x21   : > { %7565 = vmatpush3.bf16.msra.mxu0 %v8577_v13  ;;  %v7378_v37 = vpack.c.bf16 %v607_v33, %v607_v33  ;;  %v7379_v38 = vpack.c.bf16 %v608_v36, %v608_v36  ;;  %495 = vst [vmem:[#allocation2] sm:$0xf] %v7342_v34  ;;  %v334_v42 = vld [vmem:[%s9347_s23 + $0x20] sm:$0xff]  ;;  %v884_v46 = vld [vmem:[%s9347_s23 + $0xa] sm:$0xff]  ;;  %v7380_v51 = vpack.c.bf16 %v609_v49, %v609_v49  ;;  %v8602_v0 = vld [vmem:[%s10770_s1 + $0x138] sm:$0xff]  }
  0x22   : > { %7566 = vmatprep.subr.bf16.mxu0 %v8580_v16  ;;  %496 = vst [vmem:[#allocation2 + $0x24] sm:$0xf] %v7343_v35  ;;  %v7345_v44 = vpack.c.bf16 %v334_v42, %v334_v42  ;;  %v883_v45 = vld [vmem:[%s9347_s23 + $0x2] sm:$0xff]  ;;  %v7415_v48 = vpack.c.bf16 %v884_v46, %v884_v46  ;;  %v885_v57 = vld [vmem:[%s9347_s23 + $0x1a] sm:$0xff]  ;;  %v611_v59 = vld [vmem:[%s9347_s23 + $0x31] sm:$0xff] }
  0x23   : > { %7677 = vmatpush3.bf16.msra.mxu1 %v8579_v15  ;;  %771 = vst [vmem:[#allocation2 + $0x4] sm:$0xf] %v7378_v37  ;;  %772 = vst [vmem:[#allocation2 + $0x28] sm:$0xf] %v7379_v38  ;;  %v7414_v47 = vpack.c.bf16 %v883_v45, %v883_v45  ;;  %v610_v50 = vld [vmem:[%s9347_s23 + $0x21] sm:$0xff]  ;;  %v7416_v60 = vpack.c.bf16 %v885_v57, %v885_v57  ;;  %v612_v62 = vld [vmem:[%s9347_s23 + $0x39] sm:$0xff]  ;;  %v7382_v63 = vpack.c.bf16 %v611_v59, %v611_v59 }
  0x24   : > { %7678 = vmatprep.subr.bf16.mxu1 %v8582_v18  ;;  %536 = vst [vmem:[#allocation2 + $0x30] sm:$0xf] %v7345_v44  ;;  %498 = vst [vmem:[#allocation2 + $0x6c] sm:$0xf] %v7345_v44  ;;  %v7381_v54 = vpack.c.bf16 %v610_v50, %v610_v50  ;;  %v886_v58 = vld [vmem:[%s9347_s23 + $0x22] sm:$0xff]  ;;  %v7383_v1 = vpack.c.bf16 %v612_v62, %v612_v62  ;;  %v338_v3 = vld [vmem:[%s9347_s23 + $0x50] sm:$0xff] }
  0x25   : > { %7567 = vmatpush3.bf16.msra.mxu0 %v8581_v17  ;;  %1047 = vst [vmem:[#allocation2 + $0x8] sm:$0xf] %v7414_v47  ;;  %1048 = vst [vmem:[#allocation2 + $0x2c] sm:$0xf] %v7415_v48  ;;  %v7417_v61 = vpack.c.bf16 %v886_v58, %v886_v58  ;;  %v337_v2 = vld [vmem:[%s9347_s23 + $0x48] sm:$0xff]  ;;  %v7349_v5 = vpack.c.bf16 %v338_v3, %v338_v3  ;;  %v887_v6 = vld [vmem:[%s9347_s23 + $0x32] sm:$0xff] }
  0x26   : > { %7568 = vmatprep.subr.bf16.mxu0 %v8584_v20  ;;  %773 = vst [vmem:[#allocation2 + $0x4c] sm:$0xf] %v7380_v51  ;;  %811 = vst [vmem:[#allocation2 + $0x10] sm:$0xf] %v7380_v51  ;;  %v7348_v4 = vpack.c.bf16 %v337_v2, %v337_v2  ;;  %v888_v7 = vld [vmem:[%s9347_s23 + $0x3a] sm:$0xff]  ;;  %v7418_v10 = vpack.c.bf16 %v887_v6, %v887_v6  ;;  %v8613_v12 = vld [vmem:[%s10770_s1 + $0x170] sm:$0xff]  }
  0x27   : > { %7679 = vmatpush3.bf16.msra.mxu1 %v8583_v19  ;;  %774 = vst [vmem:[#allocation2 + $0x70] sm:$0xf] %v7381_v54  ;;  %812 = vst [vmem:[#allocation2 + $0x34] sm:$0xf] %v7381_v54  ;;  %v7419_v11 = vpack.c.bf16 %v888_v7, %v888_v7  ;;  %v8616_v13 = vld [vmem:[%s10770_s1 + $0x130] sm:$0xff]   ;;  %v339_v16 = vld [vmem:[%s9347_s23 + $0x60] sm:$0xff] }
  0x28   : > { %7680 = vmatprep.subr.bf16.mxu1 %v8586_v22  ;;  %538 = vst [vmem:[#allocation2 + $0x78] sm:$0xf] %v7347_v56  ;;  %499 = vst [vmem:[#allocation2 + $0x90] sm:$0xf] %v7346_v55  ;;  %v613_v14 = vld [vmem:[%s9347_s23 + $0x49] sm:$0xff]  ;;  %v614_v15 = vld [vmem:[%s9347_s23 + $0x51] sm:$0xff]  ;;  %v7350_v20 = vpack.c.bf16 %v339_v16, %v339_v16 }
  0x29   : > { %7569 = vmatpush3.bf16.msra.mxu0 %v8585_v21  ;;  %500 = vst [vmem:[#allocation2 + $0xb4] sm:$0xf] %v7347_v56  ;;  %575 = vst [vmem:[#allocation2 + $0x18] sm:$0xf] %v7346_v55  ;;  %v8598_v9 = vld [vmem:[#allocation2] ss:$36 sps:$4 sm:$0xff]   ;;  %v7384_v18 = vpack.c.bf16 %v613_v14, %v613_v14  ;;  %v7385_v19 = vpack.c.bf16 %v614_v15, %v614_v15 }
  0x2a   : > { %7570 = vmatprep.subr.bf16.mxu0 %v8588_v24  ;;  %576 = vst [vmem:[#allocation2 + $0x3c] sm:$0xf] %v7347_v56  ;;  %1049 = vst [vmem:[#allocation2 + $0x50] sm:$0xf] %v7416_v60  ;;  %v8595_v8 = vld [vmem:[#allocation2 + $0x4] ss:$36 sps:$4 sm:$0xff]  }
  0x2b   : > { %7681 = vmatpush3.bf16.msra.mxu1 %v8587_v23  ;;  %1050 = vst [vmem:[#allocation2 + $0x74] sm:$0xf] %v7417_v61  ;;  %1087 = vst [vmem:[#allocation2 + $0x14] sm:$0xf] %v7416_v60  ;;  %2670 = vmatprep.mubr.bf16.mxu0 %v8595_v8  ;;  %v8600_v17 = vld [vmem:[#allocation2 + $0xc] ss:$36 sps:$4 sm:$0xff]  }
  0x2c   : > { %7682 = vmatprep.subr.bf16.mxu1 %v8590_v26  ;;  %1088 = vst [vmem:[#allocation2 + $0x38] sm:$0xf] %v7417_v61  ;;  %775 = vst [vmem:[#allocation2 + $0x94] sm:$0xf] %v7382_v63  ;;  %v8603_v21 = vld [vmem:[#allocation2 + $0x8] ss:$36 sps:$4 sm:$0xff]   ;;  %2831 = vmatprep.mubr.bf16.mxu1 %v8600_v17 }
  0x2d   : > { %7571 = vmatpush3.bf16.msra.mxu0 %v8589_v25  ;;  %813 = vst [vmem:[#allocation2 + $0x58] sm:$0xf] %v7382_v63  ;;  %851 = vst [vmem:[#allocation2 + $0x1c] sm:$0xf] %v7382_v63  ;;  %v340_v22 = vld [vmem:[%s9347_s23 + $0x68] sm:$0xff]  ;;  %v890_v32 = vld [vmem:[%s9347_s23 + $0x52] sm:$0xff] }
  0x2e   : > { %7572 = vmatprep.subr.bf16.mxu0 %v8592_v28  ;;  %776 = vst [vmem:[#allocation2 + $0xb8] sm:$0xf] %v7383_v1  ;;  %814 = vst [vmem:[#allocation2 + $0x7c] sm:$0xf] %v7383_v1  ;;  %v8604_v23 = vld [vmem:[#allocation2 + $0x4c] ss:$36 sps:$4 sm:$0xff]   ;;  %v7351_v24 = vpack.c.bf16 %v340_v22, %v340_v22  ;;  %v7421_v34 = vpack.c.bf16 %v890_v32, %v890_v32 }
  0x2f   : > { %7683 = vmatpush3.bf16.msra.mxu1 %v8591_v27  ;;  %852 = vst [vmem:[#allocation2 + $0x40] sm:$0xf] %v7383_v1  ;;  %539 = vst [vmem:[#allocation2 + $0x9c] sm:$0xf] %v7348_v4  ;;  %v8607_v25 = vld [vmem:[#allocation2 + $0x54] ss:$36 sps:$4 sm:$0xff]  }
  0x30   : > { %7684 = vmatprep.subr.bf16.mxu1 %v8594_v30  ;;  %540 = vst [vmem:[#allocation2 + $0xc0] sm:$0xf] %v7349_v5  ;;  %501 = vst [vmem:[#allocation2 + $0xd8] sm:$0xf] %v7348_v4  ;;  %v8606_v26 = vld [vmem:[#allocation2 + $0x48] ss:$36 sps:$4 sm:$0xff]  }
  0x31   : > { %7573 = vmatpush3.bf16.msra.mxu0 %v8593_v29  ;;  %502 = vst [vmem:[#allocation2 + $0xfc] sm:$0xf] %v7349_v5  ;;  %577 = vst [vmem:[#allocation2 + $0x60] sm:$0xf] %v7348_v4  ;;  %v889_v28 = vld [vmem:[%s9347_s23 + $0x4a] sm:$0xff]  ;;  %v615_v33 = vld [vmem:[%s9347_s23 + $0x61] sm:$0xff] }
  0x32   : > { %7782 = vmatprep.subr.bf16.mxu0 %v8599_v40  ;;  %578 = vst [vmem:[#allocation2 + $0x84] sm:$0xf] %v7349_v5  ;;  %1051 = vst [vmem:[#allocation2 + $0x98] sm:$0xf] %v7418_v10  ;;  %v8609_v29 = vld [vmem:[#allocation2 + $0x50] ss:$36 sps:$4 sm:$0xff]   ;;  %v7420_v30 = vpack.c.bf16 %v889_v28, %v889_v28  ;;  %v7386_v36 = vpack.c.bf16 %v615_v33, %v615_v33 }
  0x33   : > { %7685 = vmatpush3.bf16.msra.mxu1 %v8597_v39  ;;  %1052 = vst [vmem:[#allocation2 + $0xbc] sm:$0xf] %v7419_v11  ;;  %1089 = vst [vmem:[#allocation2 + $0x5c] sm:$0xf] %v7418_v10  ;;  %v616_v35 = vld [vmem:[%s9347_s23 + $0x69] sm:$0xff]  ;;  %v341_v40 = vld [vmem:[%s9347_s23 + $0x78] sm:$0xff] }
  0x34   : > { %1090 = vst [vmem:[#allocation2 + $0x80] sm:$0xf] %v7419_v11  ;;  %1127 = vst [vmem:[#allocation2 + $0x20] sm:$0xf] %v7418_v10  ;;  %2671 = vmatmul.mubr.bf16.vlgmr.msra.gmra.mxu0 %v8598_v9  ;;  %v7387_v37 = vpack.c.bf16 %v616_v35, %v616_v35  ;;  %v8612_v38 = vld [vmem:[#allocation2 + $0x90] ss:$36 sps:$4 sm:$0xff]   ;;  %v7352_v43 = vpack.c.bf16 %v341_v40, %v341_v40 }
  0x35   : > { %1128 = vst [vmem:[#allocation2 + $0x44] sm:$0xf] %v7419_v11  ;;  %7783 = vmatpush3.bf16.msra.mxu0 %v8602_v0  ;;  %777 = vst [vmem:[#allocation2 + $0xdc] sm:$0xf] %v7384_v18  ;;  %2678 = vmatprep.mubr.bf16.mxu0 %v8604_v23  ;;  %v8610_v27 = vld [vmem:[#allocation2 + $0x94] ss:$36 sps:$4 sm:$0xff]  }
  0x36   : > { %7784 = vmatprep.subr.bf16.mxu0 %v8613_v12  ;;  %778 = vst [vmem:[#allocation2 + $0x100] sm:$0xf] %v7385_v19  ;;  %815 = vst [vmem:[#allocation2 + $0xa0] sm:$0xf] %v7384_v18  ;;  %2832 = vmatmul.mubr.bf16.vlgmr.msra.gmra.mxu1 %v8603_v21  ;;  %v8627_v39 = vld [vmem:[%s10770_s1 + $0x168] sm:$0xff]   ;;  %v342_v42 = vld [vmem:[%s9347_s23 + $0x80] sm:$0xff] }
  0x37   : > { %816 = vst [vmem:[#allocation2 + $0xc4] sm:$0xf] %v7385_v19  ;;  %853 = vst [vmem:[#allocation2 + $0x64] sm:$0xf] %v7384_v18  ;;  %2839 = vmatprep.mubr.bf16.mxu1 %v8607_v25  ;;  %v8614_v31 = vld [vmem:[#allocation2 + $0x9c] ss:$36 sps:$4 sm:$0xff]   ;;  %v7353_v46 = vpack.c.bf16 %v342_v42, %v342_v42 }
  0x38   : > { %854 = vst [vmem:[#allocation2 + $0x88] sm:$0xf] %v7385_v19  ;;  %541 = vst [vmem:[#allocation2 + $0xe4] sm:$0xf] %v7350_v20  ;;  %v891_v44 = vld [vmem:[%s9347_s23 + $0x62] sm:$0xff]  ;;  %v892_v45 = vld [vmem:[%s9347_s23 + $0x6a] sm:$0xff] }
  0x39   : > { %503 = vst [vmem:[#allocation2 + $0x120] sm:$0xf] %v7350_v20  ;;  %579 = vst [vmem:[#allocation2 + $0xa8] sm:$0xf] %v7350_v20  ;;  %7785 = vmatpush3.bf16.msra.mxu0 %v8616_v13  ;;  %v7422_v47 = vpack.c.bf16 %v891_v44, %v891_v44  ;;  %v7423_v48 = vpack.c.bf16 %v892_v45, %v892_v45  ;;  %v8630_v49 = vld [vmem:[%s10770_s1 + $0x128] sm:$0xff]   ;;  %v617_v51 = vld [vmem:[%s9347_s23 + $0x79] sm:$0xff] }
  0x3a   : > { %542 = vst [vmem:[#allocation2 + $0x108] sm:$0xf] %v7351_v24  ;;  %504 = vst [vmem:[#allocation2 + $0x144] sm:$0xf] %v7351_v24  ;;  %7786 = vmatprep.subr.bf16.mxu0 %v8627_v39  ;;  %v8617_v50 = vld [vmem:[#allocation2 + $0x98] ss:$36 sps:$4 sm:$0xff]   ;;  %v7388_v54 = vpack.c.bf16 %v617_v51, %v617_v51 }
  0x3b   : > { %580 = vst [vmem:[#allocation2 + $0xcc] sm:$0xf] %v7351_v24  ;;  %1053 = vst [vmem:[#allocation2 + $0xe0] sm:$0xf] %v7420_v30  ;;  %v618_v52 = vld [vmem:[%s9347_s23 + $0x81] sm:$0xff]  ;;  %v343_v53 = vld [vmem:[%s9347_s23 + $0x90] sm:$0xff] }
  0x3c   : > { %2679 = vmatmul.mubr.bf16.gmra.mxu0 %v8606_v26  ;;  %1091 = vst [vmem:[#allocation2 + $0xa4] sm:$0xf] %v7420_v30  ;;  %1129 = vst [vmem:[#allocation2 + $0x68] sm:$0xf] %v7420_v30  ;;  %v7389_v55 = vpack.c.bf16 %v618_v52, %v618_v52  ;;  %v344_v56 = vld [vmem:[%s9347_s23 + $0x98] sm:$0xff]  ;;  %v7354_v57 = vpack.c.bf16 %v343_v53, %v343_v53  ;;  %v894_v59 = vld [vmem:[%s9347_s23 + $0x82] sm:$0xff] }
  0x3d   : > { %2686 = vmatprep.mubr.bf16.mxu0 %v8610_v27  ;;  %1054 = vst [vmem:[#allocation2 + $0x104] sm:$0xf] %v7421_v34  ;;  %1092 = vst [vmem:[#allocation2 + $0xc8] sm:$0xf] %v7421_v34  ;;  %v8618_v41 = vld [vmem:[#allocation2 + $0xdc] ss:$36 sps:$4 sm:$0xff]   ;;  %7787 = vmatpush3.bf16.msra.mxu0 %v8630_v49  ;;  %v7355_v60 = vpack.c.bf16 %v344_v56, %v344_v56  ;;  %v7425_v62 = vpack.c.bf16 %v894_v59, %v894_v59 }
  0x3e   : > { %1130 = vst [vmem:[#allocation2 + $0x8c] sm:$0xf] %v7421_v34  ;;  %779 = vst [vmem:[#allocation2 + $0x124] sm:$0xf] %v7386_v36  ;;  %2840 = vmatmul.mubr.bf16.gmra.mxu1 %v8609_v29  ;;  %v893_v58 = vld [vmem:[%s9347_s23 + $0x7a] sm:$0xff]  ;;  %v619_v63 = vld [vmem:[%s9347_s23 + $0x91] sm:$0xff] }
  0x3f   : > { %817 = vst [vmem:[#allocation2 + $0xe8] sm:$0xf] %v7386_v36  ;;  %855 = vst [vmem:[#allocation2 + $0xac] sm:$0xf] %v7386_v36  ;;  %2847 = vmatprep.mubr.bf16.mxu1 %v8614_v31  ;;  %v7424_v61 = vpack.c.bf16 %v893_v58, %v893_v58  ;;  %v620_v0 = vld [vmem:[%s9347_s23 + $0x99] sm:$0xff]  ;;  %v7390_v1 = vpack.c.bf16 %v619_v63, %v619_v63  ;;  %v345_v6 = vld [vmem:[%s9347_s23 + $0xa8] sm:$0xff] }
  0x40   : > { %780 = vst [vmem:[#allocation2 + $0x148] sm:$0xf] %v7387_v37  ;;  %818 = vst [vmem:[#allocation2 + $0x10c] sm:$0xf] %v7387_v37  ;;  %v7391_v2 = vpack.c.bf16 %v620_v0, %v620_v0  ;;  %v8641_v3 = vld [vmem:[%s10770_s1 + $0x160] sm:$0xff]   ;;  %v346_v7 = vld [vmem:[%s9347_s23 + $0xb0] sm:$0xff]  ;;  %v7356_v8 = vpack.c.bf16 %v345_v6, %v345_v6 }
  0x41   : > { %856 = vst [vmem:[#allocation2 + $0xd0] sm:$0xf] %v7387_v37  ;;  %543 = vst [vmem:[#allocation2 + $0x12c] sm:$0xf] %v7352_v43  ;;  %v8621_v4 = vld [vmem:[#allocation2 + $0xe4] ss:$36 sps:$4 sm:$0xff]   ;;  %7788 = vmatprep.subr.bf16.mxu0 %v8641_v3  ;;  %v7357_v9 = vpack.c.bf16 %v346_v7, %v346_v7 }
  0x42   : > { %505 = vst [vmem:[#allocation2 + $0x168] sm:$0xf] %v7352_v43  ;;  %581 = vst [vmem:[#allocation2 + $0xf0] sm:$0xf] %v7352_v43  ;;  %v8620_v5 = vld [vmem:[#allocation2 + $0xd8] ss:$36 sps:$4 sm:$0xff]  }
  0x43   : > { %544 = vst [vmem:[#allocation2 + $0x150] sm:$0xf] %v7353_v46  ;;  %1055 = vst [vmem:[#allocation2 + $0x128] sm:$0xf] %v7422_v47  ;;  %v895_v10 = vld [vmem:[%s9347_s23 + $0x92] sm:$0xff]  ;;  %v896_v11 = vld [vmem:[%s9347_s23 + $0x9a] sm:$0xff] }
  0x44   : > { %1056 = vst [vmem:[#allocation2 + $0x14c] sm:$0xf] %v7423_v48  ;;  %506 = vst [vmem:[#allocation2 + $0x18c] sm:$0xf] %v7353_v46  ;;  %2687 = vmatmul.mubr.bf16.gmra.mxu0 %v8612_v38  ;;  %v7426_v13 = vpack.c.bf16 %v895_v10, %v895_v10  ;;  %v7427_v14 = vpack.c.bf16 %v896_v11, %v896_v11  ;;  %v8644_v15 = vld [vmem:[%s10770_s1 + $0x120] sm:$0xff]   ;;  %v621_v20 = vld [vmem:[%s9347_s23 + $0xa9] sm:$0xff] }
  0x45   : > { %582 = vst [vmem:[#allocation2 + $0x114] sm:$0xf] %v7353_v46  ;;  %1093 = vst [vmem:[#allocation2 + $0xec] sm:$0xf] %v7422_v47  ;;  %2694 = vmatprep.mubr.bf16.mxu0 %v8618_v41  ;;  %v8623_v16 = vld [vmem:[#allocation2 + $0xe0] ss:$36 sps:$4 sm:$0xff]   ;;  %7789 = vmatpush3.bf16.msra.mxu0 %v8644_v15  ;;  %v7392_v23 = vpack.c.bf16 %v621_v20, %v621_v20 }
  0x46   : > { %1094 = vst [vmem:[#allocation2 + $0x110] sm:$0xf] %v7423_v48  ;;  %1131 = vst [vmem:[#allocation2 + $0xb0] sm:$0xf] %v7422_v47  ;;  %2848 = vmatmul.mubr.bf16.gmra.mxu1 %v8617_v50  ;;  %v8626_v18 = vld [vmem:[#allocation2 + $0x120] ss:$36 sps:$4 sm:$0xff]  }
  0x47   : > { %1132 = vst [vmem:[#allocation2 + $0xd4] sm:$0xf] %v7423_v48  ;;  %781 = vst [vmem:[#allocation2 + $0x16c] sm:$0xf] %v7388_v54  ;;  %2855 = vmatprep.mubr.bf16.mxu1 %v8621_v4  ;;  %v8624_v12 = vld [vmem:[#allocation2 + $0x124] ss:$36 sps:$4 sm:$0xff]  }
  0x48   : > { %782 = vst [vmem:[#allocation2 + $0x190] sm:$0xf] %v7389_v55  ;;  %819 = vst [vmem:[#allocation2 + $0x130] sm:$0xf] %v7388_v54  ;;  %v622_v21 = vld [vmem:[%s9347_s23 + $0xb1] sm:$0xff]  ;;  %v347_v22 = vld [vmem:[%s9347_s23 + $0xc0] sm:$0xff] }
  0x49   : > { %820 = vst [vmem:[#allocation2 + $0x154] sm:$0xf] %v7389_v55  ;;  %857 = vst [vmem:[#allocation2 + $0xf4] sm:$0xf] %v7388_v54  ;;  %v7393_v24 = vpack.c.bf16 %v622_v21, %v622_v21  ;;  %v348_v25 = vld [vmem:[%s9347_s23 + $0xc8] sm:$0xff]  ;;  %v7358_v26 = vpack.c.bf16 %v347_v22, %v347_v22  ;;  %v898_v28 = vld [vmem:[%s9347_s23 + $0xb2] sm:$0xff] }
  0x4a   : > { %858 = vst [vmem:[#allocation2 + $0x118] sm:$0xf] %v7389_v55  ;;  %545 = vst [vmem:[#allocation2 + $0x174] sm:$0xf] %v7354_v57  ;;  %v8628_v17 = vld [vmem:[#allocation2 + $0x12c] ss:$36 sps:$4 sm:$0xff]   ;;  %v7359_v29 = vpack.c.bf16 %v348_v25, %v348_v25  ;;  %v7429_v31 = vpack.c.bf16 %v898_v28, %v898_v28 }
  0x4b   : > { %507 = vst [vmem:[#allocation2 + $0x1b0] sm:$0xf] %v7354_v57  ;;  %583 = vst [vmem:[#allocation2 + $0x138] sm:$0xf] %v7354_v57  ;;  %v897_v27 = vld [vmem:[%s9347_s23 + $0xaa] sm:$0xff]  ;;  %v623_v32 = vld [vmem:[%s9347_s23 + $0xc1] sm:$0xff] }
  0x4c   : > { %546 = vst [vmem:[#allocation2 + $0x198] sm:$0xf] %v7355_v60  ;;  %1057 = vst [vmem:[#allocation2 + $0x170] sm:$0xf] %v7424_v61  ;;  %2695 = vmatmul.mubr.bf16.gmra.mxu0 %v8620_v5  ;;  %v7428_v30 = vpack.c.bf16 %v897_v27, %v897_v27  ;;  %v624_v33 = vld [vmem:[%s9347_s23 + $0xc9] sm:$0xff]  ;;  %v7394_v35 = vpack.c.bf16 %v623_v32, %v623_v32  ;;  %v8655_v38 = vld [vmem:[%s10770_s1 + $0x158] sm:$0xff]  }
  0x4d   : > { %1058 = vst [vmem:[#allocation2 + $0x194] sm:$0xf] %v7425_v62  ;;  %508 = vst [vmem:[#allocation2 + $0x1d4] sm:$0xf] %v7355_v60  ;;  %2702 = vmatprep.mubr.bf16.mxu0 %v8624_v12  ;;  %v8631_v34 = vld [vmem:[#allocation2 + $0x128] ss:$36 sps:$4 sm:$0xff]   ;;  %v7395_v36 = vpack.c.bf16 %v624_v33, %v624_v33  ;;  %7790 = vmatprep.subr.bf16.mxu0 %v8655_v38 }
  0x4e   : > { %584 = vst [vmem:[#allocation2 + $0x15c] sm:$0xf] %v7355_v60  ;;  %1095 = vst [vmem:[#allocation2 + $0x134] sm:$0xf] %v7424_v61  ;;  %2856 = vmatmul.mubr.bf16.gmra.mxu1 %v8623_v16  ;;  %v349_v39 = vld [vmem:[%s9347_s23 + $0xd8] sm:$0xff]  ;;  %v350_v40 = vld [vmem:[%s9347_s23 + $0xe0] sm:$0xff] }
  0x4f   : > { %1096 = vst [vmem:[#allocation2 + $0x158] sm:$0xf] %v7425_v62  ;;  %1133 = vst [vmem:[#allocation2 + $0xf8] sm:$0xf] %v7424_v61  ;;  %v8632_v19 = vld [vmem:[#allocation2 + $0x16c] ss:$36 sps:$4 sm:$0xff]   ;;  %2863 = vmatprep.mubr.bf16.mxu1 %v8628_v17  ;;  %v7360_v42 = vpack.c.bf16 %v349_v39, %v349_v39  ;;  %v7361_v43 = vpack.c.bf16 %v350_v40, %v350_v40 }
  0x50   : > { %1134 = vst [vmem:[#allocation2 + $0x11c] sm:$0xf] %v7425_v62  ;;  %783 = vst [vmem:[#allocation2 + $0x1b4] sm:$0xf] %v7390_v1  ;;  %v899_v41 = vld [vmem:[%s9347_s23 + $0xc2] sm:$0xff]  ;;  %v900_v44 = vld [vmem:[%s9347_s23 + $0xca] sm:$0xff] }
  0x51   : > { %784 = vst [vmem:[#allocation2 + $0x1d8] sm:$0xf] %v7391_v2  ;;  %821 = vst [vmem:[#allocation2 + $0x178] sm:$0xf] %v7390_v1  ;;  %v7430_v45 = vpack.c.bf16 %v899_v41, %v899_v41  ;;  %v8634_v46 = vld [vmem:[#allocation2 + $0x168] ss:$36 sps:$4 sm:$0xff]   ;;  %v7431_v47 = vpack.c.bf16 %v900_v44, %v900_v44 }
  0x52   : > { %822 = vst [vmem:[#allocation2 + $0x19c] sm:$0xf] %v7391_v2  ;;  %859 = vst [vmem:[#allocation2 + $0x13c] sm:$0xf] %v7390_v1  ;;  %v8658_v48 = vld [vmem:[%s10770_s1 + $0x118] sm:$0xff]   ;;  %v626_v52 = vld [vmem:[%s9347_s23 + $0xe1] sm:$0xff] }
  0x53   : > { %860 = vst [vmem:[#allocation2 + $0x160] sm:$0xf] %v7391_v2  ;;  %547 = vst [vmem:[#allocation2 + $0x1bc] sm:$0xf] %v7356_v8  ;;  %v8635_v37 = vld [vmem:[#allocation2 + $0x174] ss:$36 sps:$4 sm:$0xff]   ;;  %7791 = vmatpush3.bf16.msra.mxu0 %v8658_v48  ;;  %v7397_v55 = vpack.c.bf16 %v626_v52, %v626_v52 }
  0x54   : > { %548 = vst [vmem:[#allocation2 + $0x1e0] sm:$0xf] %v7357_v9  ;;  %509 = vst [vmem:[#allocation2 + $0x1f8] sm:$0xf] %v7356_v8  ;;  %2703 = vmatmul.mubr.bf16.gmra.mxu0 %v8626_v18  ;;  %v8660_v49 = vld [vmem:[%s10770_s1 + $0x1f8] sm:$0xff]   ;;  %v351_v58 = vld [vmem:[%s9347_s23 + $0xf0] sm:$0xff] }
  0x55   : > { %510 = vst [vmem:[#allocation2 + $0x21c] sm:$0xf] %v7357_v9  ;;  %585 = vst [vmem:[#allocation2 + $0x180] sm:$0xf] %v7356_v8  ;;  %2710 = vmatprep.mubr.bf16.mxu0 %v8632_v19  ;;  %v8661_v50 = vld [vmem:[%s10770_s1 + $0x1b8] sm:$0xff]   ;;  %7894 = vmatprep.subr.bf16.mxu1 %v8660_v49  ;;  %v7362_v61 = vpack.c.bf16 %v351_v58, %v351_v58  ;;  %v902_v63 = vld [vmem:[%s9347_s23 + $0xe2] sm:$0xff] }
  0x56   : > { %586 = vst [vmem:[#allocation2 + $0x1a4] sm:$0xf] %v7357_v9  ;;  %1059 = vst [vmem:[#allocation2 + $0x1b8] sm:$0xf] %v7426_v13  ;;  %2864 = vmatmul.mubr.bf16.gmra.mxu1 %v8631_v34  ;;  %v625_v51 = vld [vmem:[%s9347_s23 + $0xd9] sm:$0xff]  ;;  %v627_v1 = vld [vmem:[%s9347_s23 + $0xf1] sm:$0xff]  ;;  %v7433_v4 = vpack.c.bf16 %v902_v63, %v902_v63 }
  0x57   : > { %1060 = vst [vmem:[#allocation2 + $0x1dc] sm:$0xf] %v7427_v14  ;;  %1097 = vst [vmem:[#allocation2 + $0x17c] sm:$0xf] %v7426_v13  ;;  %2871 = vmatprep.mubr.bf16.mxu1 %v8635_v37  ;;  %v7396_v54 = vpack.c.bf16 %v625_v51, %v625_v51  ;;  %7895 = vmatpush3.bf16.msra.mxu1 %v8661_v50  ;;  %v8637_v56 = vld [vmem:[#allocation2 + $0x170] ss:$36 sps:$4 sm:$0xff]   ;;  %v7398_v5 = vpack.c.bf16 %v627_v1, %v627_v1 }
  0x58   : > { %1098 = vst [vmem:[#allocation2 + $0x1a0] sm:$0xf] %v7427_v14  ;;  %1135 = vst [vmem:[#allocation2 + $0x140] sm:$0xf] %v7426_v13  ;;  %v8638_v53 = vld [vmem:[#allocation2 + $0x1b4] ss:$36 sps:$4 sm:$0xff]  }
  0x59   : > { %1136 = vst [vmem:[#allocation2 + $0x164] sm:$0xf] %v7427_v14  ;;  %785 = vst [vmem:[#allocation2 + $0x1fc] sm:$0xf] %v7392_v23  ;;  %v352_v59 = vld [vmem:[%s9347_s23 + $0xf8] sm:$0xff]  ;;  %v8671_v8 = vld [vmem:[%s10770_s1 + $0x150] sm:$0xff]  }
  0x5a   : > { %786 = vst [vmem:[#allocation2 + $0x220] sm:$0xf] %v7393_v24  ;;  %823 = vst [vmem:[#allocation2 + $0x1c0] sm:$0xf] %v7392_v23  ;;  %v901_v60 = vld [vmem:[%s9347_s23 + $0xda] sm:$0xff]  ;;  %v7363_v62 = vpack.c.bf16 %v352_v59, %v352_v59  ;;  %v353_v9 = vld [vmem:[%s9347_s23 + $0x108] sm:$0xff]  ;;  %7792 = vmatprep.subr.bf16.mxu0 %v8671_v8 }
  0x5b   : > { %824 = vst [vmem:[#allocation2 + $0x1e4] sm:$0xf] %v7393_v24  ;;  %861 = vst [vmem:[#allocation2 + $0x184] sm:$0xf] %v7392_v23  ;;  %v8642_v57 = vld [vmem:[#allocation2 + $0x1bc] ss:$36 sps:$4 sm:$0xff]   ;;  %v7432_v0 = vpack.c.bf16 %v901_v60, %v901_v60  ;;  %v7364_v12 = vpack.c.bf16 %v353_v9, %v353_v9 }
  0x5c   : > { %862 = vst [vmem:[#allocation2 + $0x1a8] sm:$0xf] %v7393_v24  ;;  %549 = vst [vmem:[#allocation2 + $0x204] sm:$0xf] %v7358_v26  ;;  %2711 = vmatmul.mubr.bf16.gmra.mxu0 %v8634_v46  ;;  %v8640_v2 = vld [vmem:[#allocation2 + $0x1b0] ss:$36 sps:$4 sm:$0xff]  }
  0x5d   : > { %511 = vst [vmem:[#allocation2 + $0x240] sm:$0xf] %v7358_v26  ;;  %587 = vst [vmem:[#allocation2 + $0x1c8] sm:$0xf] %v7358_v26  ;;  %2718 = vmatprep.mubr.bf16.mxu0 %v8638_v53  ;;  %v628_v6 = vld [vmem:[%s9347_s23 + $0xf9] sm:$0xff]  ;;  %v354_v10 = vld [vmem:[%s9347_s23 + $0x110] sm:$0xff] }
  0x5e   : > { %550 = vst [vmem:[#allocation2 + $0x228] sm:$0xf] %v7359_v29  ;;  %1061 = vst [vmem:[#allocation2 + $0x200] sm:$0xf] %v7428_v30  ;;  %2872 = vmatmul.mubr.bf16.gmra.mxu1 %v8637_v56  ;;  %v7399_v7 = vpack.c.bf16 %v628_v6, %v628_v6  ;;  %v8645_v11 = vld [vmem:[#allocation2 + $0x1b8] ss:$36 sps:$4 sm:$0xff]   ;;  %v7365_v13 = vpack.c.bf16 %v354_v10, %v354_v10 }
  0x5f   : > { %1062 = vst [vmem:[#allocation2 + $0x224] sm:$0xf] %v7429_v31  ;;  %512 = vst [vmem:[#allocation2 + $0x264] sm:$0xf] %v7359_v29  ;;  %2879 = vmatprep.mubr.bf16.mxu1 %v8642_v57  ;;  %v903_v15 = vld [vmem:[%s9347_s23 + $0xf2] sm:$0xff]  ;;  %v904_v16 = vld [vmem:[%s9347_s23 + $0xfa] sm:$0xff] }
  0x60   : > { %588 = vst [vmem:[#allocation2 + $0x1ec] sm:$0xf] %v7359_v29  ;;  %1099 = vst [vmem:[#allocation2 + $0x1c4] sm:$0xf] %v7428_v30  ;;  %v7434_v17 = vpack.c.bf16 %v903_v15, %v903_v15  ;;  %v7435_v18 = vpack.c.bf16 %v904_v16, %v904_v16  ;;  %v8674_v19 = vld [vmem:[%s10770_s1 + $0x110] sm:$0xff]   ;;  %v355_v28 = vld [vmem:[%s9347_s23 + $0x120] sm:$0xff] }
  0x61   : > { %1100 = vst [vmem:[#allocation2 + $0x1e8] sm:$0xf] %v7429_v31  ;;  %1137 = vst [vmem:[#allocation2 + $0x188] sm:$0xf] %v7428_v30  ;;  %v8646_v3 = vld [vmem:[#allocation2 + $0x1fc] ss:$36 sps:$4 sm:$0xff]   ;;  %7793 = vmatpush3.bf16.msra.mxu0 %v8674_v19  ;;  %v7366_v32 = vpack.c.bf16 %v355_v28, %v355_v28 }
  0x62   : > { %1138 = vst [vmem:[#allocation2 + $0x1ac] sm:$0xf] %v7429_v31  ;;  %787 = vst [vmem:[#allocation2 + $0x244] sm:$0xf] %v7394_v35  ;;  %v8676_v20 = vld [vmem:[%s10770_s1 + $0x1f0] sm:$0xff]   ;;  %v356_v29 = vld [vmem:[%s9347_s23 + $0x128] sm:$0xff] }
  0x63   : > { %788 = vst [vmem:[#allocation2 + $0x268] sm:$0xf] %v7395_v36  ;;  %825 = vst [vmem:[#allocation2 + $0x208] sm:$0xf] %v7394_v35  ;;  %v8677_v21 = vld [vmem:[%s10770_s1 + $0x1b0] sm:$0xff]   ;;  %7896 = vmatprep.subr.bf16.mxu1 %v8676_v20  ;;  %v7367_v33 = vpack.c.bf16 %v356_v29, %v356_v29  ;;  %v357_v44 = vld [vmem:[%s9347_s23 + $0x138] sm:$0xff] }
  0x64   : > { %826 = vst [vmem:[#allocation2 + $0x22c] sm:$0xf] %v7395_v36  ;;  %863 = vst [vmem:[#allocation2 + $0x1cc] sm:$0xf] %v7394_v35  ;;  %2719 = vmatmul.mubr.bf16.gmra.mxu0 %v8640_v2  ;;  %v629_v22 = vld [vmem:[%s9347_s23 + $0x109] sm:$0xff]  ;;  %v630_v23 = vld [vmem:[%s9347_s23 + $0x111] sm:$0xff]  ;;  %7897 = vmatpush3.bf16.msra.mxu1 %v8677_v21  ;;  %v7368_v46 = vpack.c.bf16 %v357_v44, %v357_v44 }
  0x65   : > { %864 = vst [vmem:[#allocation2 + $0x1f0] sm:$0xf] %v7395_v36  ;;  %551 = vst [vmem:[#allocation2 + $0x24c] sm:$0xf] %v7360_v42  ;;  %v8649_v14 = vld [vmem:[#allocation2 + $0x204] ss:$36 sps:$4 sm:$0xff]   ;;  %2726 = vmatprep.mubr.bf16.mxu0 %v8646_v3  ;;  %v7400_v26 = vpack.c.bf16 %v629_v22, %v629_v22  ;;  %v7401_v27 = vpack.c.bf16 %v630_v23, %v630_v23 }
  0x66   : > { %552 = vst [vmem:[#allocation2 + $0x270] sm:$0xf] %v7361_v43  ;;  %1063 = vst [vmem:[#allocation2 + $0x248] sm:$0xf] %v7430_v45  ;;  %2880 = vmatmul.mubr.bf16.gmra.mxu1 %v8645_v11  ;;  %v8648_v24 = vld [vmem:[#allocation2 + $0x1f8] ss:$36 sps:$4 sm:$0xff]  }
  0x67   : > { %513 = vst [vmem:[#allocation2 + $0x288] sm:$0xf] %v7360_v42  ;;  %514 = vst [vmem:[#allocation2 + $0x2ac] sm:$0xf] %v7361_v43  ;;  %2887 = vmatprep.mubr.bf16.mxu1 %v8649_v14  ;;  %v8651_v30 = vld [vmem:[#allocation2 + $0x200] ss:$36 sps:$4 sm:$0xff]  }
  0x68   : > { %589 = vst [vmem:[#allocation2 + $0x210] sm:$0xf] %v7360_v42  ;;  %590 = vst [vmem:[#allocation2 + $0x234] sm:$0xf] %v7361_v43  ;;  %v905_v34 = vld [vmem:[%s9347_s23 + $0x10a] sm:$0xff]  ;;  %v906_v35 = vld [vmem:[%s9347_s23 + $0x112] sm:$0xff] }
  0x69   : > { %1101 = vst [vmem:[#allocation2 + $0x20c] sm:$0xf] %v7430_v45  ;;  %1139 = vst [vmem:[#allocation2 + $0x1d0] sm:$0xf] %v7430_v45  ;;  %v631_v36 = vld [vmem:[%s9347_s23 + $0x121] sm:$0xff]  ;;  %v7436_v37 = vpack.c.bf16 %v905_v34, %v905_v34  ;;  %v7437_v38 = vpack.c.bf16 %v906_v35, %v906_v35  ;;  %v632_v39 = vld [vmem:[%s9347_s23 + $0x129] sm:$0xff] }
  0x6a   : > { %1064 = vst [vmem:[#allocation2 + $0x26c] sm:$0xf] %v7431_v47  ;;  %1102 = vst [vmem:[#allocation2 + $0x230] sm:$0xf] %v7431_v47  ;;  %v8652_v25 = vld [vmem:[#allocation2 + $0x244] ss:$36 sps:$4 sm:$0xff]   ;;  %v7402_v40 = vpack.c.bf16 %v631_v36, %v631_v36  ;;  %v7403_v41 = vpack.c.bf16 %v632_v39, %v632_v39 }
  0x6b   : > { %1140 = vst [vmem:[#allocation2 + $0x1f4] sm:$0xf] %v7431_v47  ;;  %789 = vst [vmem:[#allocation2 + $0x28c] sm:$0xf] %v7396_v54  ;;  %v8654_v42 = vld [vmem:[#allocation2 + $0x240] ss:$36 sps:$4 sm:$0xff]  }
  0x6c   : > { %790 = vst [vmem:[#allocation2 + $0x2b0] sm:$0xf] %v7397_v55  ;;  %827 = vst [vmem:[#allocation2 + $0x250] sm:$0xf] %v7396_v54  ;;  %2727 = vmatmul.mubr.bf16.gmra.mxu0 %v8648_v24  ;;  %v8687_v43 = vld [vmem:[%s10770_s1 + $0x148] sm:$0xff]   ;;  %v358_v45 = vld [vmem:[%s9347_s23 + $0x140] sm:$0xff] }
  0x6d   : > { %828 = vst [vmem:[#allocation2 + $0x274] sm:$0xf] %v7397_v55  ;;  %865 = vst [vmem:[#allocation2 + $0x214] sm:$0xf] %v7396_v54  ;;  %v8656_v31 = vld [vmem:[#allocation2 + $0x24c] ss:$36 sps:$4 sm:$0xff]   ;;  %2734 = vmatprep.mubr.bf16.mxu0 %v8652_v25  ;;  %7794 = vmatprep.subr.bf16.mxu0 %v8687_v43  ;;  %v7369_v49 = vpack.c.bf16 %v358_v45, %v358_v45 }
  0x6e   : > { %866 = vst [vmem:[#allocation2 + $0x238] sm:$0xf] %v7397_v55  ;;  %553 = vst [vmem:[#allocation2 + $0x294] sm:$0xf] %v7362_v61  ;;  %2888 = vmatmul.mubr.bf16.gmra.mxu1 %v8651_v30  ;;  %v907_v47 = vld [vmem:[%s9347_s23 + $0x122] sm:$0xff]  ;;  %v908_v48 = vld [vmem:[%s9347_s23 + $0x12a] sm:$0xff] }
  0x6f   : > { %554 = vst [vmem:[#allocation2 + $0x2b8] sm:$0xf] %v7363_v62  ;;  %1065 = vst [vmem:[#allocation2 + $0x290] sm:$0xf] %v7432_v0  ;;  %2895 = vmatprep.mubr.bf16.mxu1 %v8656_v31  ;;  %v7438_v50 = vpack.c.bf16 %v907_v47, %v907_v47  ;;  %v7439_v51 = vpack.c.bf16 %v908_v48, %v908_v48  ;;  %v8690_v52 = vld [vmem:[%s10770_s1 + $0x108] sm:$0xff]   ;;  %v633_v58 = vld [vmem:[%s9347_s23 + $0x139] sm:$0xff] }
  0x70   : > { %515 = vst [vmem:[#allocation2 + $0x2d0] sm:$0xf] %v7362_v61  ;;  %516 = vst [vmem:[#allocation2 + $0x2f4] sm:$0xf] %v7363_v62  ;;  %7795 = vmatpush3.bf16.msra.mxu0 %v8690_v52  ;;  %v8692_v56 = vld [vmem:[%s10770_s1 + $0x1e8] sm:$0xff]   ;;  %v7404_v60 = vpack.c.bf16 %v633_v58, %v633_v58  ;;  %v359_v63 = vld [vmem:[%s9347_s23 + $0x150] sm:$0xff] }
  0x71   : > { %591 = vst [vmem:[#allocation2 + $0x258] sm:$0xf] %v7362_v61  ;;  %592 = vst [vmem:[#allocation2 + $0x27c] sm:$0xf] %v7363_v62  ;;  %v8659_v53 = vld [vmem:[#allocation2 + $0x248] ss:$36 sps:$4 sm:$0xff]   ;;  %7898 = vmatprep.subr.bf16.mxu1 %v8692_v56  ;;  %v7370_v1 = vpack.c.bf16 %v359_v63, %v359_v63 }
  0x72   : > { %1103 = vst [vmem:[#allocation2 + $0x254] sm:$0xf] %v7432_v0  ;;  %1141 = vst [vmem:[#allocation2 + $0x218] sm:$0xf] %v7432_v0  ;;  %v8693_v57 = vld [vmem:[%s10770_s1 + $0x1a8] sm:$0xff]   ;;  %v360_v0 = vld [vmem:[%s9347_s23 + $0x158] sm:$0xff] }
  0x73   : > { %1066 = vst [vmem:[#allocation2 + $0x2b4] sm:$0xf] %v7433_v4  ;;  %1104 = vst [vmem:[#allocation2 + $0x278] sm:$0xf] %v7433_v4  ;;  %v8662_v54 = vld [vmem:[#allocation2 + $0x28c] ss:$36 sps:$4 sm:$0xff]   ;;  %7899 = vmatpush3.bf16.msra.mxu1 %v8693_v57  ;;  %v7371_v6 = vpack.c.bf16 %v360_v0, %v360_v0 }
  0x74   : > { %1142 = vst [vmem:[#allocation2 + $0x23c] sm:$0xf] %v7433_v4  ;;  %791 = vst [vmem:[#allocation2 + $0x2d4] sm:$0xf] %v7398_v5  ;;  %2735 = vmatmul.mubr.bf16.gmra.mxu0 %v8654_v42  ;;  %v634_v59 = vld [vmem:[%s9347_s23 + $0x141] sm:$0xff]  ;;  %v635_v11 = vld [vmem:[%s9347_s23 + $0x151] sm:$0xff] }
  0x75   : > { %829 = vst [vmem:[#allocation2 + $0x298] sm:$0xf] %v7398_v5  ;;  %867 = vst [vmem:[#allocation2 + $0x25c] sm:$0xf] %v7398_v5  ;;  %2742 = vmatprep.mubr.bf16.mxu0 %v8662_v54  ;;  %v7405_v61 = vpack.c.bf16 %v634_v59, %v634_v59  ;;  %v8664_v62 = vld [vmem:[#allocation2 + $0x288] ss:$36 sps:$4 sm:$0xff]  }
  0x76   : > { %792 = vst [vmem:[#allocation2 + $0x2f8] sm:$0xf] %v7399_v7  ;;  %830 = vst [vmem:[#allocation2 + $0x2bc] sm:$0xf] %v7399_v7  ;;  %v8665_v55 = vld [vmem:[#allocation2 + $0x294] ss:$36 sps:$4 sm:$0xff]   ;;  %2896 = vmatmul.mubr.bf16.gmra.mxu1 %v8659_v53 }
  0x77   : > { %868 = vst [vmem:[#allocation2 + $0x280] sm:$0xf] %v7399_v7  ;;  %555 = vst [vmem:[#allocation2 + $0x2dc] sm:$0xf] %v7364_v12  ;;  %2903 = vmatprep.mubr.bf16.mxu1 %v8665_v55  ;;  %v909_v2 = vld [vmem:[%s9347_s23 + $0x13a] sm:$0xff]  ;;  %v910_v3 = vld [vmem:[%s9347_s23 + $0x142] sm:$0xff] }
  0x78   : > { %556 = vst [vmem:[#allocation2 + $0x300] sm:$0xf] %v7365_v13  ;;  %517 = vst [vmem:[#allocation2 + $0x318] sm:$0xf] %v7364_v12  ;;  %v7440_v7 = vpack.c.bf16 %v909_v2, %v909_v2  ;;  %v7441_v8 = vpack.c.bf16 %v910_v3, %v910_v3  ;;  %v8700_v10 = vld [vmem:[%s10770_s1 + $0x1e0] sm:$0xff]   ;;  %v361_v19 = vld [vmem:[%s9347_s23 + $0x168] sm:$0xff] }
  0x79   : > { %518 = vst [vmem:[#allocation2 + $0x33c] sm:$0xf] %v7365_v13  ;;  %593 = vst [vmem:[#allocation2 + $0x2a0] sm:$0xf] %v7364_v12  ;;  %v636_v12 = vld [vmem:[%s9347_s23 + $0x159] sm:$0xff]  ;;  %7900 = vmatprep.subr.bf16.mxu1 %v8700_v10  ;;  %v362_v20 = vld [vmem:[%s9347_s23 + $0x170] sm:$0xff]  ;;  %v7372_v21 = vpack.c.bf16 %v361_v19, %v361_v19 }
  0x7a   : > { %594 = vst [vmem:[#allocation2 + $0x2c4] sm:$0xf] %v7365_v13  ;;  %1067 = vst [vmem:[#allocation2 + $0x2d8] sm:$0xf] %v7434_v17  ;;  %v8667_v4 = vld [vmem:[#allocation2 + $0x290] ss:$36 sps:$4 sm:$0xff]   ;;  %v7406_v13 = vpack.c.bf16 %v635_v11, %v635_v11  ;;  %v7407_v14 = vpack.c.bf16 %v636_v12, %v636_v12  ;;  %v7373_v22 = vpack.c.bf16 %v362_v20, %v362_v20 }
  0x7b   : > { %1068 = vst [vmem:[#allocation2 + $0x2fc] sm:$0xf] %v7435_v18  ;;  %1105 = vst [vmem:[#allocation2 + $0x29c] sm:$0xf] %v7434_v17  ;;  %v8703_v15 = vld [vmem:[%s10770_s1 + $0x1a0] sm:$0xff]   ;;  %v911_v23 = vld [vmem:[%s9347_s23 + $0x152] sm:$0xff] }
  0x7c   : > { %1106 = vst [vmem:[#allocation2 + $0x2c0] sm:$0xf] %v7435_v18  ;;  %1143 = vst [vmem:[#allocation2 + $0x260] sm:$0xf] %v7434_v17  ;;  %2743 = vmatmul.mubr.bf16.gmra.mxu0 %v8664_v62  ;;  %v8705_v16 = vld [vmem:[%s10770_s1 + $0x140] sm:$0xff]   ;;  %7901 = vmatpush3.bf16.msra.mxu1 %v8703_v15  ;;  %v7442_v25 = vpack.c.bf16 %v911_v23, %v911_v23  ;;  %v8710_v30 = vld [vmem:[%s10770_s1 + $0x1d8] sm:$0xff]  }
  0x7d   : > { %1144 = vst [vmem:[#allocation2 + $0x284] sm:$0xf] %v7435_v18  ;;  %793 = vst [vmem:[#allocation2 + $0x31c] sm:$0xf] %v7400_v26  ;;  %v8668_v5 = vld [vmem:[#allocation2 + $0x2d4] ss:$36 sps:$4 sm:$0xff]   ;;  %7796 = vmatprep.subr.bf16.mxu0 %v8705_v16  ;;  %7902 = vmatprep.subr.bf16.mxu1 %v8710_v30 }
  0x7e   : > { %794 = vst [vmem:[#allocation2 + $0x340] sm:$0xf] %v7401_v27  ;;  %831 = vst [vmem:[#allocation2 + $0x2e0] sm:$0xf] %v7400_v26  ;;  %2750 = vmatprep.mubr.bf16.mxu0 %v8668_v5  ;;  %v8670_v17 = vld [vmem:[#allocation2 + $0x2d0] ss:$36 sps:$4 sm:$0xff]   ;;  %2904 = vmatmul.mubr.bf16.gmra.mxu1 %v8667_v4 }
  0x7f   : > { %832 = vst [vmem:[#allocation2 + $0x304] sm:$0xf] %v7401_v27  ;;  %869 = vst [vmem:[#allocation2 + $0x2a4] sm:$0xf] %v7400_v26  ;;  %v8672_v9 = vld [vmem:[#allocation2 + $0x2dc] ss:$36 sps:$4 sm:$0xff]  }
  0x80   : > { %870 = vst [vmem:[#allocation2 + $0x2c8] sm:$0xf] %v7401_v27  ;;  %557 = vst [vmem:[#allocation2 + $0x324] sm:$0xf] %v7366_v32  ;;  %2911 = vmatprep.mubr.bf16.mxu1 %v8672_v9  ;;  %v912_v24 = vld [vmem:[%s9347_s23 + $0x15a] sm:$0xff]  ;;  %v8712_v34 = vld [vmem:[%s10770_s1 + $0x1d0] sm:$0xff]  }
  0x81   : > { %558 = vst [vmem:[#allocation2 + $0x348] sm:$0xf] %v7367_v33  ;;  %519 = vst [vmem:[#allocation2 + $0x360] sm:$0xf] %v7366_v32  ;;  %v7443_v26 = vpack.c.bf16 %v912_v24, %v912_v24  ;;  %v8708_v27 = vld [vmem:[%s10770_s1 + $0x100] sm:$0xff]   ;;  %v8711_v31 = vld [vmem:[%s10770_s1 + $0x198] sm:$0xff]  }
  0x82   : > { %520 = vst [vmem:[#allocation2 + $0x384] sm:$0xf] %v7367_v33  ;;  %595 = vst [vmem:[#allocation2 + $0x2e8] sm:$0xf] %v7366_v32  ;;  %v8675_v28 = vld [vmem:[#allocation2 + $0x2d8] ss:$36 sps:$4 sm:$0xff]   ;;  %7797 = vmatpush3.bf16.msra.mxu0 %v8708_v27  ;;  %7903 = vmatpush3.bf16.msra.mxu1 %v8711_v31 }
  0x83   : > { %596 = vst [vmem:[#allocation2 + $0x30c] sm:$0xf] %v7367_v33  ;;  %1069 = vst [vmem:[#allocation2 + $0x320] sm:$0xf] %v7436_v37  ;;  %v8680_v32 = vld [vmem:[#allocation2 + $0x318] ss:$36 sps:$4 sm:$0xff]   ;;  %7904 = vmatprep.subr.bf16.mxu1 %v8712_v34 }
  0x84   : > { %1070 = vst [vmem:[#allocation2 + $0x344] sm:$0xf] %v7437_v38  ;;  %1107 = vst [vmem:[#allocation2 + $0x2e4] sm:$0xf] %v7436_v37  ;;  %2751 = vmatmul.mubr.bf16.gmra.mxu0 %v8670_v17  ;;  %v637_v35 = vld [vmem:[%s9347_s23 + $0x169] sm:$0xff]  ;;  %v638_v36 = vld [vmem:[%s9347_s23 + $0x171] sm:$0xff] }
  0x85   : > { %1108 = vst [vmem:[#allocation2 + $0x308] sm:$0xf] %v7437_v38  ;;  %1145 = vst [vmem:[#allocation2 + $0x2a8] sm:$0xf] %v7436_v37  ;;  %v8678_v18 = vld [vmem:[#allocation2 + $0x31c] ss:$36 sps:$4 sm:$0xff]   ;;  %v7408_v37 = vpack.c.bf16 %v637_v35, %v637_v35 }
  0x86   : > { %1146 = vst [vmem:[#allocation2 + $0x2cc] sm:$0xf] %v7437_v38  ;;  %795 = vst [vmem:[#allocation2 + $0x364] sm:$0xf] %v7402_v40  ;;  %2758 = vmatprep.mubr.bf16.mxu0 %v8678_v18  ;;  %2912 = vmatmul.mubr.bf16.gmra.mxu1 %v8675_v28  ;;  %v7409_v38 = vpack.c.bf16 %v638_v36, %v638_v36  ;;  %v8715_v39 = vld [vmem:[%s10770_s1 + $0x190] sm:$0xff]   ;;  %v8722_v52 = vld [vmem:[%s10770_s1 + $0x1c0] sm:$0xff]  }
  0x87   : > { %833 = vst [vmem:[#allocation2 + $0x328] sm:$0xf] %v7402_v40  ;;  %871 = vst [vmem:[#allocation2 + $0x2ec] sm:$0xf] %v7402_v40  ;;  %v363_v40 = vld [vmem:[%s9347_s23 + $0x180] sm:$0xff]  ;;  %v913_v42 = vld [vmem:[%s9347_s23 + $0x16a] sm:$0xff]  ;;  %7905 = vmatpush3.bf16.msra.mxu1 %v8715_v39 }
  0x88   : > { %796 = vst [vmem:[#allocation2 + $0x388] sm:$0xf] %v7403_v41  ;;  %834 = vst [vmem:[#allocation2 + $0x34c] sm:$0xf] %v7403_v41  ;;  %v8681_v29 = vld [vmem:[#allocation2 + $0x324] ss:$36 sps:$4 sm:$0xff]   ;;  %v7374_v44 = vpack.c.bf16 %v363_v40, %v363_v40 }
  0x89   : > { %872 = vst [vmem:[#allocation2 + $0x310] sm:$0xf] %v7403_v41  ;;  %559 = vst [vmem:[#allocation2 + $0x36c] sm:$0xf] %v7368_v46  ;;  %2919 = vmatprep.mubr.bf16.mxu1 %v8681_v29  ;;  %v364_v41 = vld [vmem:[%s9347_s23 + $0x188] sm:$0xff]  ;;  %v914_v48 = vld [vmem:[%s9347_s23 + $0x172] sm:$0xff] }
  0x8a   : > { %521 = vst [vmem:[#allocation2 + $0x3a8] sm:$0xf] %v7368_v46  ;;  %597 = vst [vmem:[#allocation2 + $0x330] sm:$0xf] %v7368_v46  ;;  %v7375_v45 = vpack.c.bf16 %v364_v41, %v364_v41  ;;  %v7444_v46 = vpack.c.bf16 %v913_v42, %v913_v42  ;;  %v8686_v53 = vld [vmem:[#allocation2 + $0x360] ss:$36 sps:$4 sm:$0xff]  }
  0x8b   : > { %560 = vst [vmem:[#allocation2 + $0x390] sm:$0xf] %v7369_v49  ;;  %1071 = vst [vmem:[#allocation2 + $0x368] sm:$0xf] %v7438_v50  ;;  %v8683_v43 = vld [vmem:[#allocation2 + $0x320] ss:$36 sps:$4 sm:$0xff]  }
  0x8c   : > { %1072 = vst [vmem:[#allocation2 + $0x38c] sm:$0xf] %v7439_v51  ;;  %522 = vst [vmem:[#allocation2 + $0x3cc] sm:$0xf] %v7369_v49  ;;  %2759 = vmatmul.mubr.bf16.gmra.mxu0 %v8680_v32  ;;  %v8725_v54 = vld [vmem:[%s10770_s1 + $0x180] sm:$0xff]   ;;  %v8727_v57 = vld [vmem:[%s10770_s1 + $0x238] sm:$0xff]  }
  0x8d   : > { %598 = vst [vmem:[#allocation2 + $0x354] sm:$0xf] %v7369_v49  ;;  %1109 = vst [vmem:[#allocation2 + $0x32c] sm:$0xf] %v7438_v50  ;;  %v7445_v49 = vpack.c.bf16 %v914_v48, %v914_v48  ;;  %8391 = vmatprep.subr.bf16.mxu0 %v8727_v57  ;;  %v8723_v4 = vld [vmem:[#allocation2 + $0x14] ss:$36 sps:$4 sm:$0xff]  }
  0x8e   : > { %1110 = vst [vmem:[#allocation2 + $0x350] sm:$0xf] %v7439_v51  ;;  %1147 = vst [vmem:[#allocation2 + $0x2f0] sm:$0xf] %v7438_v50  ;;  %v8720_v50 = vld [vmem:[%s10770_s1 + $0x1c8] sm:$0xff]   ;;  %2920 = vmatmul.mubr.bf16.gmra.mxu1 %v8683_v43  ;;  %v8740_v9 = vld [vmem:[%s10770_s1 + $0x230] sm:$0xff]  }
  0x8f   : > { %1148 = vst [vmem:[#allocation2 + $0x314] sm:$0xf] %v7439_v51  ;;  %797 = vst [vmem:[#allocation2 + $0x3ac] sm:$0xf] %v7404_v60  ;;  %v8684_v33 = vld [vmem:[#allocation2 + $0x364] ss:$36 sps:$4 sm:$0xff]   ;;  %7906 = vmatprep.subr.bf16.mxu1 %v8720_v50 }
  0x90   : > { %798 = vst [vmem:[#allocation2 + $0x3d0] sm:$0xf] %v7405_v61  ;;  %835 = vst [vmem:[#allocation2 + $0x370] sm:$0xf] %v7404_v60  ;;  %2766 = vmatprep.mubr.bf16.mxu0 %v8684_v33  ;;  %v8721_v51 = vld [vmem:[%s10770_s1 + $0x188] sm:$0xff]   ;;  %v8766_v15 = vld [vmem:[%s10770_s1 + $0x220] sm:$0xff]  }
  0x91   : > { %836 = vst [vmem:[#allocation2 + $0x394] sm:$0xf] %v7405_v61  ;;  %873 = vst [vmem:[#allocation2 + $0x334] sm:$0xf] %v7404_v60  ;;  %7907 = vmatpush3.bf16.msra.mxu1 %v8721_v51  ;;  %v8730_v10 = vld [vmem:[#allocation2 + $0x18] ss:$36 sps:$4 sm:$0xff]  }
  0x92   : > { %874 = vst [vmem:[#allocation2 + $0x358] sm:$0xf] %v7405_v61  ;;  %561 = vst [vmem:[#allocation2 + $0x3b4] sm:$0xf] %v7370_v1  ;;  %v8688_v47 = vld [vmem:[#allocation2 + $0x36c] ss:$36 sps:$4 sm:$0xff]   ;;  %7908 = vmatprep.subr.bf16.mxu1 %v8722_v52 }
  0x93   : > { %523 = vst [vmem:[#allocation2 + $0x3f0] sm:$0xf] %v7370_v1  ;;  %599 = vst [vmem:[#allocation2 + $0x378] sm:$0xf] %v7370_v1  ;;  %2927 = vmatprep.mubr.bf16.mxu1 %v8688_v47  ;;  %v8691_v56 = vld [vmem:[#allocation2 + $0x368] ss:$36 sps:$4 sm:$0xff]  }
  0x94   : > { %562 = vst [vmem:[#allocation2 + $0x3d8] sm:$0xf] %v7371_v6  ;;  %1073 = vst [vmem:[#allocation2 + $0x3b0] sm:$0xf] %v7440_v7  ;;  %2767 = vmatmul.mubr.bf16.gmra.mxu0 %v8686_v53  ;;  %v8696_v59 = vld [vmem:[#allocation2 + $0x3a8] ss:$36 sps:$4 sm:$0xff]  }
  0x95   : > { %1074 = vst [vmem:[#allocation2 + $0x3d4] sm:$0xf] %v7441_v8  ;;  %524 = vst [vmem:[#allocation2 + $0x414] sm:$0xf] %v7371_v6  ;;  %7909 = vmatpush3.bf16.msra.mxu1 %v8725_v54  ;;  %v8734_v11 = vld [vmem:[#allocation2 + $0x64] ss:$36 sps:$4 sm:$0xff]  }
  0x96   : > { %600 = vst [vmem:[#allocation2 + $0x39c] sm:$0xf] %v7371_v6  ;;  %1111 = vst [vmem:[#allocation2 + $0x374] sm:$0xf] %v7440_v7  ;;  %2928 = vmatmul.mubr.bf16.gmra.mxu1 %v8691_v56  ;;  %v8728_v6 = vld [vmem:[#allocation2 + $0x1c] ss:$36 sps:$4 sm:$0xff]  }
  0x97   : > { %1112 = vst [vmem:[#allocation2 + $0x398] sm:$0xf] %v7441_v8  ;;  %1149 = vst [vmem:[#allocation2 + $0x338] sm:$0xf] %v7440_v7  ;;  %v8694_v55 = vld [vmem:[#allocation2 + $0x3ac] ss:$36 sps:$4 sm:$0xff]  }
  0x98   : > { %1150 = vst [vmem:[#allocation2 + $0x35c] sm:$0xf] %v7441_v8  ;;  %799 = vst [vmem:[#allocation2 + $0x3f4] sm:$0xf] %v7406_v13  ;;  %2774 = vmatprep.mubr.bf16.mxu0 %v8694_v55  ;;  %v8726_v7 = vld [vmem:[#allocation2 + $0x10] ss:$36 sps:$4 sm:$0xff]  }
  0x99   : > { %800 = vst [vmem:[#allocation2 + $0x418] sm:$0xf] %v7407_v14  ;;  %837 = vst [vmem:[#allocation2 + $0x3b8] sm:$0xf] %v7406_v13  ;;  %v8731_v8 = vld [vmem:[#allocation2 + $0x5c] ss:$36 sps:$4 sm:$0xff]  }
  0x9a   : > { %838 = vst [vmem:[#allocation2 + $0x3dc] sm:$0xf] %v7407_v14  ;;  %875 = vst [vmem:[#allocation2 + $0x37c] sm:$0xf] %v7406_v13  ;;  %v8753_v12 = vld [vmem:[%s10770_s1 + $0x228] sm:$0xff]   ;;  %v8779_v18 = vld [vmem:[%s10770_s1 + $0x218] sm:$0xff]  }
  0x9b   : > { %876 = vst [vmem:[#allocation2 + $0x3a0] sm:$0xf] %v7407_v14  ;;  %563 = vst [vmem:[#allocation2 + $0x3fc] sm:$0xf] %v7372_v21  ;;  %v8697_v58 = vld [vmem:[#allocation2 + $0x3b4] ss:$36 sps:$4 sm:$0xff]  }
  0x9c   : > { %564 = vst [vmem:[#allocation2 + $0x420] sm:$0xf] %v7373_v22  ;;  %525 = vst [vmem:[#allocation2 + $0x438] sm:$0xf] %v7372_v21  ;;  %2935 = vmatprep.mubr.bf16.mxu1 %v8697_v58  ;;  %v8699_v61 = vld [vmem:[#allocation2 + $0x3b0] ss:$36 sps:$4 sm:$0xff]   ;;  %2775 = vmatmul.mubr.bf16.gmra.mxu0 %v8696_v59 }
  0x9d   : > { %526 = vst [vmem:[#allocation2 + $0x45c] sm:$0xf] %v7373_v22  ;;  %601 = vst [vmem:[#allocation2 + $0x3c0] sm:$0xf] %v7372_v21  ;;  %v8704_v63 = vld [vmem:[#allocation2 + $0x3f0] ss:$36 sps:$4 sm:$0xff]  }
  0x9e   : > { %602 = vst [vmem:[#allocation2 + $0x3e4] sm:$0xf] %v7373_v22  ;;  %1075 = vst [vmem:[#allocation2 + $0x3f8] sm:$0xf] %v7442_v25  ;;  %2936 = vmatmul.mubr.bf16.gmra.mxu1 %v8699_v61  ;;  %v8733_v13 = vld [vmem:[#allocation2 + $0x58] ss:$36 sps:$4 sm:$0xff]  }
  0x9f   : > { %1076 = vst [vmem:[#allocation2 + $0x41c] sm:$0xf] %v7443_v26  ;;  %1113 = vst [vmem:[#allocation2 + $0x3bc] sm:$0xf] %v7442_v25  ;;  %v8737_v14 = vld [vmem:[#allocation2 + $0xa4] ss:$36 sps:$4 sm:$0xff]  }
  0xa0   : > { %1114 = vst [vmem:[#allocation2 + $0x3e0] sm:$0xf] %v7443_v26  ;;  %1151 = vst [vmem:[#allocation2 + $0x380] sm:$0xf] %v7442_v25  ;;  %v8701_v60 = vld [vmem:[#allocation2 + $0x3f4] ss:$36 sps:$4 sm:$0xff]  }
  0xa1   : > { %1152 = vst [vmem:[#allocation2 + $0x3a4] sm:$0xf] %v7443_v26  ;;  %801 = vst [vmem:[#allocation2 + $0x43c] sm:$0xf] %v7408_v37  ;;  %2782 = vmatprep.mubr.bf16.mxu0 %v8701_v60  ;;  %v8736_v16 = vld [vmem:[#allocation2 + $0x60] ss:$36 sps:$4 sm:$0xff]  }
  0xa2   : > { %802 = vst [vmem:[#allocation2 + $0x460] sm:$0xf] %v7409_v38  ;;  %839 = vst [vmem:[#allocation2 + $0x400] sm:$0xf] %v7408_v37  ;;  %v8741_v17 = vld [vmem:[#allocation2 + $0xac] ss:$36 sps:$4 sm:$0xff]  }
  0xa3   : > { %840 = vst [vmem:[#allocation2 + $0x424] sm:$0xf] %v7409_v38  ;;  %877 = vst [vmem:[#allocation2 + $0x3c4] sm:$0xf] %v7408_v37  ;;  %v8706_v62 = vld [vmem:[#allocation2 + $0x3fc] ss:$36 sps:$4 sm:$0xff]  }
  0xa4   : > { %878 = vst [vmem:[#allocation2 + $0x3e8] sm:$0xf] %v7409_v38  ;;  %565 = vst [vmem:[#allocation2 + $0x444] sm:$0xf] %v7374_v44  ;;  %2943 = vmatprep.mubr.bf16.mxu1 %v8706_v62  ;;  %2783 = vmatmul.mubr.bf16.gmra.mxu0 %v8704_v63  ;;  %v8716_v3 = vld [vmem:[#allocation2 + $0x438] ss:$36 sps:$4 sm:$0xff]  }
  0xa5   : > { %566 = vst [vmem:[#allocation2 + $0x468] sm:$0xf] %v7375_v45  ;;  %1077 = vst [vmem:[#allocation2 + $0x440] sm:$0xf] %v7444_v46  ;;  %v8739_v19 = vld [vmem:[#allocation2 + $0xa0] ss:$36 sps:$4 sm:$0xff]  }
  0xa6   : > { %603 = vst [vmem:[#allocation2 + $0x408] sm:$0xf] %v7374_v44  ;;  %604 = vst [vmem:[#allocation2 + $0x42c] sm:$0xf] %v7375_v45  ;;  %v8709_v1 = vld [vmem:[#allocation2 + $0x3f8] ss:$36 sps:$4 sm:$0xff]  }
  0xa7   : > { %1115 = vst [vmem:[#allocation2 + $0x404] sm:$0xf] %v7444_v46  ;;  %1153 = vst [vmem:[#allocation2 + $0x3c8] sm:$0xf] %v7444_v46  ;;  %2944 = vmatmul.mubr.bf16.gmra.mxu1 %v8709_v1  ;;  %v8744_v20 = vld [vmem:[#allocation2 + $0xec] ss:$36 sps:$4 sm:$0xff]  }
  0xa8   : > { %1078 = vst [vmem:[#allocation2 + $0x464] sm:$0xf] %v7445_v49  ;;  %1116 = vst [vmem:[#allocation2 + $0x428] sm:$0xf] %v7445_v49  ;;  %v8743_v21 = vld [vmem:[#allocation2 + $0xa8] ss:$36 sps:$4 sm:$0xff]  }
  0xa9   : > { %1154 = vst [vmem:[#allocation2 + $0x3ec] sm:$0xf] %v7445_v49  ;;  %v8713_v0 = vld [vmem:[#allocation2 + $0x43c] ss:$36 sps:$4 sm:$0xff]   ;;  %v9570_v22 = vld [vmem:[%s10770_s1 + $0x210] sm:$0xff]   ;;  %v10779_v30 = vmov 0.0  }
  0xaa   : > { %2790 = vmatprep.mubr.bf16.mxu0 %v8713_v0  ;;  %v639_v23 = vld [vmem:[%s9347_s23 + $0x181] sm:$0xff]  ;;  %v640_v24 = vld [vmem:[%s9347_s23 + $0x189] sm:$0xff]  ;;  %v365_v29 = vld [vmem:[%s9347_s23 + $0x198] sm:$0xff]  ;;  %3510 = vst [vmem:[#allocation4 + $0x90] sm:$0xff] %v10779_v30 }
  0xab   : > { %v7410_v25 = vpack.c.bf16 %v639_v23, %v639_v23  ;;  %v7411_v26 = vpack.c.bf16 %v640_v24, %v640_v24  ;;  %v915_v27 = vld [vmem:[%s9347_s23 + $0x182] sm:$0xff]  ;;  %v916_v28 = vld [vmem:[%s9347_s23 + $0x18a] sm:$0xff]  ;;  %3511 = vst [vmem:[#allocation4 + $0x98] sm:$0x3] %v10779_v30  ;;  %3507 = vst [vmem:[#allocation4] sm:$0xff] %v10779_v30  ;;  %v7376_v34 = vpack.c.bf16 %v365_v29, %v365_v29 }
  0xac   : > { %v8717_v2 = vld [vmem:[#allocation2 + $0x444] ss:$36 sps:$4 sm:$0xff]   ;;  %2791 = vmatmul.mubr.bf16.gmra.mxu0 %v8716_v3  ;;  %3508 = vst [vmem:[#allocation4 + $0x8] sm:$0x3] %v10779_v30  ;;  %3513 = vst [vmem:[#allocation4 + $0x10] sm:$0x1] %v10779_v30  ;;  %v7446_v31 = vpack.c.bf16 %v915_v27, %v915_v27  ;;  %v7447_v32 = vpack.c.bf16 %v916_v28, %v916_v28 }
  0xad   : > { %2951 = vmatprep.mubr.bf16.mxu1 %v8717_v2  ;;  %2992 = vmatprep.mubr.bf16.mxu0 %v8723_v4  ;;  %3514 = vst [vmem:[#allocation4 + $0x20] sm:$0x1] %v10779_v30  ;;  %3515 = vst [vmem:[#allocation4 + $0x30] sm:$0x1] %v10779_v30  ;;  %v366_v33 = vld [vmem:[%s9347_s23 + $0x1a0] sm:$0xff]  ;;  %v8805_v41 = vld [vmem:[%s10770_s1 + $0x208] sm:$0xff]  }
  0xae   : > { %3516 = vst [vmem:[#allocation4 + $0x40] sm:$0x1] %v10779_v30  ;;  %3517 = vst [vmem:[#allocation4 + $0x50] sm:$0x1] %v10779_v30  ;;  %v641_v35 = vld [vmem:[%s9347_s23 + $0x199] sm:$0xff]  ;;  %v642_v36 = vld [vmem:[%s9347_s23 + $0x1a1] sm:$0xff]  ;;  %v7377_v38 = vpack.c.bf16 %v366_v33, %v366_v33 }
  0xaf   : > { %v8719_v5 = vld [vmem:[#allocation2 + $0x440] ss:$36 sps:$4 sm:$0xff]   ;;  %3518 = vst [vmem:[#allocation4 + $0x60] sm:$0x1] %v10779_v30  ;;  %3519 = vst [vmem:[#allocation4 + $0x70] sm:$0x1] %v10779_v30  ;;  %v7412_v39 = vpack.c.bf16 %v641_v35, %v641_v35  ;;  %v7413_v40 = vpack.c.bf16 %v642_v36, %v642_v36 }
  0xb0   : > { %2952 = vmatmul.mubr.bf16.gmra.mxu1 %v8719_v5  ;;  %3520 = vst [vmem:[#allocation4 + $0x80] sm:$0x1] %v10779_v30  ;;  %3523 = vst [vmem:[#allocation4 + $0x19] sm:$0x1] %v10779_v30  ;;  %v8747_v37 = vld [vmem:[#allocation2 + $0xf4] ss:$36 sps:$4 sm:$0xff]  }
  0xb1   : > { %3153 = vmatprep.mubr.bf16.mxu1 %v8728_v6  ;;  %3524 = vst [vmem:[#allocation4 + $0x29] sm:$0x1] %v10779_v30  ;;  %3525 = vst [vmem:[#allocation4 + $0x39] sm:$0x1] %v10779_v30  ;;  %v8746_v42 = vld [vmem:[#allocation2 + $0xe8] ss:$36 sps:$4 sm:$0xff]  }
  0xb2   : > { %3526 = vst [vmem:[#allocation4 + $0x49] sm:$0x1] %v10779_v30  ;;  %3527 = vst [vmem:[#allocation4 + $0x59] sm:$0x1] %v10779_v30  ;;  %v8750_v43 = vld [vmem:[#allocation2 + $0x134] ss:$36 sps:$4 sm:$0xff]  }
  0xb3   : > { %3528 = vst [vmem:[#allocation4 + $0x69] sm:$0x1] %v10779_v30  ;;  %3529 = vst [vmem:[#allocation4 + $0x79] sm:$0x1] %v10779_v30  ;;  %v8749_v44 = vld [vmem:[#allocation2 + $0xf0] ss:$36 sps:$4 sm:$0xff]  }
  0xb4   : > { %2993 = vmatmul.mubr.bf16.vlgmr.msra.gmra.mxu0 %v8726_v7  ;;  %3530 = vst [vmem:[#allocation4 + $0x89] sm:$0x1] %v10779_v30  ;;  %3531 = vst [vmem:[#allocation4 + $0x99] sm:$0x1] %v10779_v30  ;;  %v8818_v45 = vld [vmem:[%s10770_s1 + $0x200] sm:$0xff]  }
  0xb5   : > { %8392 = vmatpush3.bf16.msra.mxu0 %v8727_v57  ;;  %3000 = vmatprep.mubr.bf16.mxu0 %v8731_v8  ;;  %3521 = vst [vmem:[#allocation4 + $0x90] sm:$0x1] %v10779_v30  ;;  %3512 = vst [vmem:[#allocation4] sm:$0x1] %v10779_v30  ;;  %v8754_v47 = vld [vmem:[#allocation2 + $0x13c] ss:$36 sps:$4 sm:$0xff]  }
  0xb6   : > { %8393 = vmatprep.subr.bf16.mxu0 %v8740_v9  ;;  %3522 = vst [vmem:[#allocation4 + $0x9] sm:$0x1] %v10779_v30  ;;  %879 = vst [vmem:[#allocation2 + $0x40c] sm:$0xf] %v7410_v25  ;;  %v9612_v49 = vld [vmem:[#allocation2 + $0xf8] ss:$36 sps:$4 sm:$0xff]  }
  0xb7   : > { %880 = vst [vmem:[#allocation2 + $0x430] sm:$0xf] %v7411_v26  ;;  %841 = vst [vmem:[#allocation2 + $0x448] sm:$0xf] %v7410_v25  ;;  %v8752_v50 = vld [vmem:[#allocation2 + $0x130] ss:$36 sps:$4 sm:$0xff]  }
  0xb8   : > { %3154 = vmatmul.mubr.bf16.vlgmr.msra.gmra.mxu1 %v8730_v10  ;;  %842 = vst [vmem:[#allocation2 + $0x46c] sm:$0xf] %v7411_v26  ;;  %1117 = vst [vmem:[#allocation2 + $0x44c] sm:$0xf] %v7446_v31  ;;  %v8757_v51 = vld [vmem:[#allocation2 + $0x17c] ss:$36 sps:$4 sm:$0xff]  }
  0xb9   : > { %3161 = vmatprep.mubr.bf16.mxu1 %v8734_v11  ;;  %8394 = vmatpush3.bf16.msra.mxu0 %v8740_v9  ;;  %1118 = vst [vmem:[#allocation2 + $0x470] sm:$0xf] %v7447_v32  ;;  %1155 = vst [vmem:[#allocation2 + $0x410] sm:$0xf] %v7446_v31  ;;  %v8756_v52 = vld [vmem:[#allocation2 + $0x138] ss:$36 sps:$4 sm:$0xff]  }
  0xba   : > { %8395 = vmatprep.subr.bf16.mxu0 %v8753_v12  ;;  %1156 = vst [vmem:[#allocation2 + $0x434] sm:$0xf] %v7447_v32  ;;  %605 = vst [vmem:[#allocation2 + $0x450] sm:$0xf] %v7376_v34  ;;  %v8760_v53 = vld [vmem:[#allocation2 + $0x184] ss:$36 sps:$4 sm:$0xff]  }
  0xbb   : > { %606 = vst [vmem:[#allocation2 + $0x474] sm:$0xf] %v7377_v38  ;;  %881 = vst [vmem:[#allocation2 + $0x454] sm:$0xf] %v7412_v39  ;;  %v3801_v46 = vld [vmem:[#allocation4 + $0x92] sm:$0xff]  ;;  %v917_v60 = vld [vmem:[%s9347_s23 + $0x19a] sm:$0xff] }
  0xbc   : > { %3001 = vmatmul.mubr.bf16.gmra.mxu0 %v8733_v13  ;;  %882 = vst [vmem:[#allocation2 + $0x478] sm:$0xf] %v7413_v40  ;;  %v7503_v48 = vpack.c.bf16 %v3801_v46, %v3801_v46  ;;  %v8759_v54 = vld [vmem:[#allocation2 + $0x178] ss:$36 sps:$4 sm:$0xff]   ;;  %v8763_v55 = vld [vmem:[#allocation2 + $0x1c4] ss:$36 sps:$4 sm:$0xff]   ;;  %v7448_v63 = vpack.c.bf16 %v917_v60, %v917_v60 }
  0xbd   : > { %3008 = vmatprep.mubr.bf16.mxu0 %v8737_v14  ;;  %8396 = vmatpush3.bf16.msra.mxu0 %v8753_v12  ;;  %v8762_v56 = vld [vmem:[#allocation2 + $0x180] ss:$36 sps:$4 sm:$0xff]   ;;  %v8767_v57 = vld [vmem:[#allocation2 + $0x1cc] ss:$36 sps:$4 sm:$0xff]   ;;  %v8773_v1 = vld [vmem:[#allocation2 + $0x214] ss:$36 sps:$4 sm:$0xff]  }
  0xbe   : > { %8397 = vmatprep.subr.bf16.mxu0 %v8766_v15  ;;  %3897 = vst [vmem:[#allocation2 + $0x11c] sm:$0xf] %v7503_v48  ;;  %v8765_v58 = vld [vmem:[#allocation2 + $0x1c0] ss:$36 sps:$4 sm:$0xff]   ;;  %v8770_v59 = vld [vmem:[#allocation2 + $0x20c] ss:$36 sps:$4 sm:$0xff]  }
  0xbf   : > { %v918_v61 = vld [vmem:[%s9347_s23 + $0x1a2] sm:$0xff]  ;;  %1157 = vst [vmem:[#allocation2 + $0x458] sm:$0xf] %v7448_v63  ;;  %v8776_v3 = vld [vmem:[#allocation2 + $0x254] ss:$36 sps:$4 sm:$0xff]   ;;  %s10734_s23 = scalar_lea.hbm %s10778_s9, %s7339_s24 }
  0xc0   : > { %3162 = vmatmul.mubr.bf16.gmra.mxu1 %v8736_v16  ;;  %v8769_v62 = vld [vmem:[#allocation2 + $0x1c8] ss:$36 sps:$4 sm:$0xff]   ;;  %v7449_v0 = vpack.c.bf16 %v918_v61, %v918_v61  ;;  %v8775_v4 = vld [vmem:[#allocation2 + $0x210] ss:$36 sps:$4 sm:$0xff]   ;;  %v8780_v5 = vld [vmem:[#allocation2 + $0x25c] ss:$36 sps:$4 sm:$0xff]  }
  0xc1   : > { %3169 = vmatprep.mubr.bf16.mxu1 %v8741_v17  ;;  %8398 = vmatpush3.bf16.msra.mxu0 %v8766_v15  ;;  %v8772_v2 = vld [vmem:[#allocation2 + $0x208] ss:$36 sps:$4 sm:$0xff]   ;;  %v8778_v6 = vld [vmem:[#allocation2 + $0x250] ss:$36 sps:$4 sm:$0xff]   ;;  %v8783_v7 = vld [vmem:[#allocation2 + $0x29c] ss:$36 sps:$4 sm:$0xff]  }
  0xc2   : > { %8399 = vmatprep.subr.bf16.mxu0 %v8779_v18  ;;  %1158 = vst [vmem:[#allocation2 + $0x47c] sm:$0xf] %v7449_v0  ;;  %v8782_v8 = vld [vmem:[#allocation2 + $0x258] ss:$36 sps:$4 sm:$0xff]   ;;  %v8786_v9 = vld [vmem:[#allocation2 + $0x2a4] ss:$36 sps:$4 sm:$0xff]  }
  0xc3   : > { %v9619_v11 = vld [vmem:[%s10771_s2] ss:$0 sm:$0xff]  ;;  %v8785_v13 = vld [vmem:[#allocation2 + $0x298] ss:$36 sps:$4 sm:$0xff]   ;;  %v8789_v16 = vld [vmem:[#allocation2 + $0x2e4] ss:$36 sps:$4 sm:$0xff]  }
  0xc4   : > { %3009 = vmatmul.mubr.bf16.gmra.mxu0 %v8739_v19  ;;  %v8793_v23 = vld [vmem:[#allocation2 + $0x2ec] ss:$36 sps:$4 sm:$0xff]   ;;  %v8791_v33 = vld [vmem:[#allocation2 + $0x2e0] ss:$36 sps:$4 sm:$0xff]  }
  0xc5   : > { %3016 = vmatprep.mubr.bf16.mxu0 %v8744_v20  ;;  %8400 = vmatpush3.bf16.msra.mxu0 %v8779_v18  ;;  %v8788_v20 = vld [vmem:[#allocation2 + $0x2a0] ss:$36 sps:$4 sm:$0xff]   ;;  %v8796_v36 = vld [vmem:[#allocation2 + $0x32c] ss:$36 sps:$4 sm:$0xff]  }
  0xc6   : > { %8401 = vmatprep.subr.bf16.mxu0 %v9570_v22 }
  0xc8   : > { %3170 = vmatmul.mubr.bf16.gmra.mxu1 %v8743_v21 }
  0xc9   : > { %3177 = vmatprep.mubr.bf16.mxu1 %v8747_v37  ;;  %8402 = vmatpush3.bf16.msra.mxu0 %v9570_v22 }
  0xca   : > { %8403 = vmatprep.subr.bf16.mxu0 %v8805_v41 }
  0xcc   : > { %3017 = vmatmul.mubr.bf16.gmra.mxu0 %v8746_v42 }
  0xcd   : > { %3024 = vmatprep.mubr.bf16.mxu0 %v8750_v43  ;;  %8404 = vmatpush3.bf16.msra.mxu0 %v8805_v41  ;;  %v8795_v41 = vld [vmem:[#allocation2 + $0x2e8] ss:$36 sps:$4 sm:$0xff]  }
  0xce   : > { %8405 = vmatprep.subr.bf16.mxu0 %v8818_v45 }
  0xd0   : > { %3178 = vmatmul.mubr.bf16.gmra.mxu1 %v8749_v44  ;;  %v8799_v44 = vld [vmem:[#allocation2 + $0x334] ss:$36 sps:$4 sm:$0xff]  }
  0xd1   : > { %3185 = vmatprep.mubr.bf16.mxu1 %v8754_v47  ;;  %8406 = vmatpush3.bf16.msra.mxu0 %v8818_v45 }
  0xd4   : > { %3025 = vmatmul.mubr.bf16.gmra.mxu0 %v8752_v50 }
  0xd5   : > { %3032 = vmatprep.mubr.bf16.mxu0 %v8757_v51 }
  0xd8   : > { %3186 = vmatmul.mubr.bf16.gmra.mxu1 %v8756_v52 }
  0xd9   : > { %3193 = vmatprep.mubr.bf16.mxu1 %v8760_v53 }
  0xdc   : > { %3033 = vmatmul.mubr.bf16.gmra.mxu0 %v8759_v54  ;;  %v8798_v54 = vld [vmem:[#allocation2 + $0x328] ss:$36 sps:$4 sm:$0xff]  }
  0xdd   : > { %3040 = vmatprep.mubr.bf16.mxu0 %v8763_v55 }
  0xe0   : > { %3194 = vmatmul.mubr.bf16.gmra.mxu1 %v8762_v56 }
  0xe1   : > { %3201 = vmatprep.mubr.bf16.mxu1 %v8767_v57  ;;  %v8804_v57 = vld [vmem:[#allocation2 + $0x374] ss:$36 sps:$4 sm:$0xff]  }
  0xe4   : > { %3041 = vmatmul.mubr.bf16.gmra.mxu0 %v8765_v58 }
  0xe5   : > { %3048 = vmatprep.mubr.bf16.mxu0 %v8770_v59 }
  0xe8   : > { %3202 = vmatmul.mubr.bf16.gmra.mxu1 %v8769_v62  ;;  %v8801_v62 = vld [vmem:[#allocation2 + $0x330] ss:$36 sps:$4 sm:$0xff]  }
  0xe9   : > { %3209 = vmatprep.mubr.bf16.mxu1 %v8773_v1  ;;  %v8808_v1 = vld [vmem:[#allocation2 + $0x37c] ss:$36 sps:$4 sm:$0xff]  }
  0xec   : > { %3049 = vmatmul.mubr.bf16.gmra.mxu0 %v8772_v2 }
  0xed   : > { %3056 = vmatprep.mubr.bf16.mxu0 %v8776_v3 }
  0xf0   : > { %3210 = vmatmul.mubr.bf16.gmra.mxu1 %v8775_v4 }
  0xf1   : > { %3217 = vmatprep.mubr.bf16.mxu1 %v8780_v5 }
  0xf4   : > { %v7574_v10 = vpop.f32.mrf.mxu0  ;;  %3057 = vmatmul.mubr.bf16.gmra.mxu0 %v8778_v6 }
  0xf5   : > { %3064 = vmatprep.mubr.bf16.mxu0 %v8783_v7 }
  0xf6   : > { %v7575_v12 = vpop.f32.mrf.mxu0  ;;  %v7686_v15 = vpop.f32.mrf.mxu1 }
  0xf7   : > { %v7576_v14 = vadd.f32 %v7575_v12, %v7574_v10  ;;  %v8802_v10 = vld [vmem:[#allocation2 + $0x370] ss:$36 sps:$4 sm:$0xff]  }
  0xf8   : > { %3218 = vmatmul.mubr.bf16.gmra.mxu1 %v8782_v8  ;;  %v7577_v17 = vpop.f32.mrf.mxu0  ;;  %v7687_v19 = vpop.f32.mrf.mxu1 }
  0xf9   : > { %3225 = vmatprep.mubr.bf16.mxu1 %v8786_v9  ;;  %v2673_v18 = vadd.f32 %v7576_v14, %v9619_v11  ;;  %v7688_v21 = vadd.f32 %v7687_v19, %v7686_v15  ;;  %v8811_v14 = vld [vmem:[#allocation2 + $0x3bc] ss:$36 sps:$4 sm:$0xff]  }
  0xfa   : > { %v7578_v22 = vpop.f32.mrf.mxu0  ;;  %v7689_v25 = vpop.f32.mrf.mxu1  ;;  %v8806_v19 = vld [vmem:[#allocation2 + $0x378] ss:$36 sps:$4 sm:$0xff]  }
  0xfb   : > { %v7579_v24 = vadd.f32 %v7578_v22, %v7577_v17  ;;  %v9622_v26 = vadd.f32 %v7688_v21, %v2673_v18  ;;  %v8814_v22 = vld [vmem:[#allocation2 + $0x3c4] ss:$36 sps:$4 sm:$0xff]  }
  0xfc   : > { %v7580_v27 = vpop.f32.mrf.mxu0  ;;  %3065 = vmatmul.mubr.bf16.gmra.mxu0 %v8785_v13  ;;  %v7690_v29 = vpop.f32.mrf.mxu1 }
  0xfd   : > { %v2676_v28 = vadd.f32 %v7579_v24, %v9619_v11  ;;  %3072 = vmatprep.mubr.bf16.mxu0 %v8789_v16  ;;  %v7691_v31 = vadd.f32 %v7690_v29, %v7689_v25 }
  0xfe   : > { %v7581_v32 = vpop.f32.mrf.mxu0  ;;  %v7692_v35 = vpop.f32.mrf.mxu1 }
  0xff   : > { %v7582_v34 = vadd.f32 %v7581_v32, %v7580_v27  ;;  %v9625_v37 = vadd.f32 %v7691_v31, %v2676_v28 }
 0x100   : > { %3226 = vmatmul.mubr.bf16.gmra.mxu1 %v8788_v20  ;;  %v7583_v38 = vpop.f32.mrf.mxu0  ;;  %v7693_v40 = vpop.f32.mrf.mxu1 }
 0x101   : > { %3233 = vmatprep.mubr.bf16.mxu1 %v8793_v23  ;;  %v2681_v39 = vadd.f32 %v7582_v34, %v9619_v11  ;;  %v7694_v42 = vadd.f32 %v7693_v40, %v7692_v35 }
 0x102   : > { %v7584_v43 = vpop.f32.mrf.mxu0  ;;  %v7695_v46 = vpop.f32.mrf.mxu1 }
 0x103   : > { %v7585_v45 = vadd.f32 %v7584_v43, %v7583_v38  ;;  %v9628_v47 = vadd.f32 %v7694_v42, %v2681_v39  ;;  %v8812_v42 = vld [vmem:[#allocation2 + $0x3c0] ss:$36 sps:$4 sm:$0xff]  }
 0x104   : > { %v7586_v48 = vpop.f32.mrf.mxu0  ;;  %3073 = vmatmul.mubr.bf16.gmra.mxu0 %v8791_v33  ;;  %v7696_v51 = vpop.f32.mrf.mxu1  ;;  %v8809_v33 = vld [vmem:[#allocation2 + $0x3b8] ss:$36 sps:$4 sm:$0xff]  }
 0x105   : > { %v2684_v50 = vadd.f32 %v7585_v45, %v9619_v11  ;;  %3080 = vmatprep.mubr.bf16.mxu0 %v8796_v36  ;;  %v7697_v52 = vadd.f32 %v7696_v51, %v7695_v46  ;;  %v8817_v36 = vld [vmem:[#allocation2 + $0x404] ss:$36 sps:$4 sm:$0xff]   ;;  %v8821_v45 = vld [vmem:[#allocation2 + $0x40c] ss:$36 sps:$4 sm:$0xff]  }
 0x106   : > { %v7587_v53 = vpop.f32.mrf.mxu0  ;;  %v7698_v56 = vpop.f32.mrf.mxu1 }
 0x107   : > { %v7588_v55 = vadd.f32 %v7587_v53, %v7586_v48  ;;  %v9631_v58 = vadd.f32 %v7697_v52, %v2684_v50 }
 0x108   : > { %3234 = vmatmul.mubr.bf16.gmra.mxu1 %v8795_v41  ;;  %v7589_v59 = vpop.f32.mrf.mxu0  ;;  %v7699_v61 = vpop.f32.mrf.mxu1 }
 0x109   : > { %3241 = vmatprep.mubr.bf16.mxu1 %v8799_v44  ;;  %v2689_v60 = vadd.f32 %v7588_v55, %v9619_v11  ;;  %v7700_v63 = vadd.f32 %v7699_v61, %v7698_v56  ;;  %v8815_v56 = vld [vmem:[#allocation2 + $0x400] ss:$36 sps:$4 sm:$0xff]  }
 0x10a   : > { %v7590_v0 = vpop.f32.mrf.mxu0  ;;  %v7701_v3 = vpop.f32.mrf.mxu1 }
 0x10b   : > { %v7591_v2 = vadd.f32 %v7590_v0, %v7589_v59  ;;  %v9634_v4 = vadd.f32 %v7700_v63, %v2689_v60  ;;  %v8824_v60 = vld [vmem:[#allocation2 + $0x44c] ss:$36 sps:$4 sm:$0xff]  }
 0x10c   : > { %v7592_v5 = vpop.f32.mrf.mxu0  ;;  %3081 = vmatmul.mubr.bf16.gmra.mxu0 %v8798_v54  ;;  %v7702_v7 = vpop.f32.mrf.mxu1 }
 0x10d   : > { %v2692_v6 = vadd.f32 %v7591_v2, %v9619_v11  ;;  %3088 = vmatprep.mubr.bf16.mxu0 %v8804_v57  ;;  %v7703_v8 = vadd.f32 %v7702_v7, %v7701_v3 }
 0x10e   : > { %v7593_v9 = vpop.f32.mrf.mxu0  ;;  %v7704_v13 = vpop.f32.mrf.mxu1 }
 0x10f   : > { %v7594_v12 = vadd.f32 %v7593_v9, %v7592_v5  ;;  %v9637_v15 = vadd.f32 %v7703_v8, %v2692_v6  ;;  %v8827_v5 = vld [vmem:[#allocation2 + $0x454] ss:$36 sps:$4 sm:$0xff]  }
 0x110   : > { %3242 = vmatmul.mubr.bf16.gmra.mxu1 %v8801_v62  ;;  %v7595_v16 = vpop.f32.mrf.mxu0  ;;  %v7705_v18 = vpop.f32.mrf.mxu1 }
 0x111   : > { %3249 = vmatprep.mubr.bf16.mxu1 %v8808_v1  ;;  %v2697_v17 = vadd.f32 %v7594_v12, %v9619_v11  ;;  %v7706_v20 = vadd.f32 %v7705_v18, %v7704_v13  ;;  %v8819_v1 = vld [vmem:[#allocation2 + $0x408] ss:$36 sps:$4 sm:$0xff]  }
 0x112   : > { %v7596_v21 = vpop.f32.mrf.mxu0  ;;  %v7707_v24 = vpop.f32.mrf.mxu1 }
 0x113   : > { %v7597_v23 = vadd.f32 %v7596_v21, %v7595_v16  ;;  %v9640_v25 = vadd.f32 %v7706_v20, %v2697_v17  ;;  %v8822_v16 = vld [vmem:[#allocation2 + $0x448] ss:$36 sps:$4 sm:$0xff]  }
 0x114   : > { %v7598_v27 = vpop.f32.mrf.mxu0  ;;  %3089 = vmatmul.mubr.bf16.gmra.mxu0 %v8802_v10  ;;  %v7708_v29 = vpop.f32.mrf.mxu1 }
 0x115   : > { %v2700_v28 = vadd.f32 %v7597_v23, %v9619_v11  ;;  %3096 = vmatprep.mubr.bf16.mxu0 %v8811_v14  ;;  %v7709_v31 = vadd.f32 %v7708_v29, %v7707_v24  ;;  %v8825_v24 = vld [vmem:[#allocation2 + $0x450] ss:$36 sps:$4 sm:$0xff]  }
 0x116   : > { %v7599_v32 = vpop.f32.mrf.mxu0  ;;  %v7710_v35 = vpop.f32.mrf.mxu1 }
 0x117   : > { %v7600_v34 = vadd.f32 %v7599_v32, %v7598_v27  ;;  %v9643_v38 = vadd.f32 %v7709_v31, %v2700_v28 }
 0x118   : > { %3250 = vmatmul.mubr.bf16.gmra.mxu1 %v8806_v19  ;;  %v7601_v39 = vpop.f32.mrf.mxu0  ;;  %v7711_v41 = vpop.f32.mrf.mxu1  ;;  %v8828_v19 = vld [vmem:[#allocation2 + $0x20] ss:$36 sps:$4 sm:$0xff]  }
 0x119   : > { %3257 = vmatprep.mubr.bf16.mxu1 %v8814_v22  ;;  %v2705_v40 = vadd.f32 %v7600_v34, %v9619_v11  ;;  %v7712_v43 = vadd.f32 %v7711_v41, %v7710_v35 }
 0x11a   : > { %v7602_v44 = vpop.f32.mrf.mxu0  ;;  %v7713_v48 = vpop.f32.mrf.mxu1 }
 0x11b   : > { %v7603_v46 = vadd.f32 %v7602_v44, %v7601_v39  ;;  %v9646_v50 = vadd.f32 %v7712_v43, %v2705_v40  ;;  %v8829_v40 = vld [vmem:[#allocation2 + $0x68] ss:$36 sps:$4 sm:$0xff]   ;;  %v8830_v43 = vld [vmem:[#allocation2 + $0xb0] ss:$36 sps:$4 sm:$0xff]  }
 0x11c   : > { %v7604_v51 = vpop.f32.mrf.mxu0  ;;  %3097 = vmatmul.mubr.bf16.gmra.mxu0 %v8809_v33  ;;  %v7714_v53 = vpop.f32.mrf.mxu1 }
 0x11d   : > { %v2708_v52 = vadd.f32 %v7603_v46, %v9619_v11  ;;  %3104 = vmatprep.mubr.bf16.mxu0 %v8817_v36  ;;  %v7715_v54 = vadd.f32 %v7714_v53, %v7713_v48 }
 0x11e   : > { %v7605_v55 = vpop.f32.mrf.mxu0  ;;  %v7716_v59 = vpop.f32.mrf.mxu1 }
 0x11f   : > { %v7606_v57 = vadd.f32 %v7605_v55, %v7604_v51  ;;  %v9649_v61 = vadd.f32 %v7715_v54, %v2708_v52 }
 0x120   : > { %3258 = vmatmul.mubr.bf16.gmra.mxu1 %v8812_v42  ;;  %v7607_v62 = vpop.f32.mrf.mxu0  ;;  %v7717_v0 = vpop.f32.mrf.mxu1 }
 0x121   : > { %3265 = vmatprep.mubr.bf16.mxu1 %v8821_v45  ;;  %v2713_v63 = vadd.f32 %v7606_v57, %v9619_v11  ;;  %v7718_v2 = vadd.f32 %v7717_v0, %v7716_v59 }
 0x122   : > { %v7608_v3 = vpop.f32.mrf.mxu0  ;;  %v7719_v7 = vpop.f32.mrf.mxu1 }
 0x123   : > { %v7609_v6 = vadd.f32 %v7608_v3, %v7607_v62  ;;  %v9652_v8 = vadd.f32 %v7718_v2, %v2713_v63 }
 0x124   : > { %v7610_v9 = vpop.f32.mrf.mxu0  ;;  %3105 = vmatmul.mubr.bf16.gmra.mxu0 %v8815_v56  ;;  %v7720_v12 = vpop.f32.mrf.mxu1 }
 0x125   : > { %v2716_v10 = vadd.f32 %v7609_v6, %v9619_v11  ;;  %3112 = vmatprep.mubr.bf16.mxu0 %v8824_v60  ;;  %v7721_v13 = vadd.f32 %v7720_v12, %v7719_v7  ;;  %v8832_v6 = vld [vmem:[#allocation2 + $0x140] ss:$36 sps:$4 sm:$0xff]   ;;  %v8845_v12 = vld [vmem:[%s10772_s3 + $0x38] sm:$0xff]  }
 0x126   : > { %v7611_v14 = vpop.f32.mrf.mxu0  ;;  %v7722_v18 = vpop.f32.mrf.mxu1 }
 0x127   : > { %v7612_v17 = vadd.f32 %v7611_v14, %v7610_v9  ;;  %v9655_v20 = vadd.f32 %v7721_v13, %v2716_v10  ;;  %v8844_v10 = vld [vmem:[%s10772_s3 + $0x78] sm:$0xff]  }
 0x128   : > { %3266 = vmatmul.mubr.bf16.gmra.mxu1 %v8819_v1  ;;  %v7613_v21 = vpop.f32.mrf.mxu0  ;;  %v7723_v23 = vpop.f32.mrf.mxu1  ;;  %8030 = vmatprep.subr.bf16.mxu1 %v8844_v10 }
 0x129   : > { %3273 = vmatprep.mubr.bf16.mxu1 %v8827_v5  ;;  %v2721_v22 = vadd.f32 %v7612_v17, %v9619_v11  ;;  %v7724_v27 = vadd.f32 %v7723_v23, %v7722_v18  ;;  %8031 = vmatpush3.bf16.msra.mxu1 %v8845_v12 }
 0x12a   : > { %v7614_v28 = vpop.f32.mrf.mxu0  ;;  %v7725_v31 = vpop.f32.mrf.mxu1 }
 0x12b   : > { %v7615_v29 = vadd.f32 %v7614_v28, %v7613_v21  ;;  %v9658_v32 = vadd.f32 %v7724_v27, %v2721_v22 }
 0x12c   : > { %v7616_v33 = vpop.f32.mrf.mxu0  ;;  %3113 = vmatmul.mubr.bf16.gmra.mxu0 %v8822_v16  ;;  %v7726_v35 = vpop.f32.mrf.mxu1 }
 0x12d   : > { %v2724_v34 = vadd.f32 %v7615_v29, %v9619_v11  ;;  %8407 = vmatprep.mubr.bf16.mxu0 %v8828_v19  ;;  %v7727_v36 = vadd.f32 %v7726_v35, %v7725_v31  ;;  %v8833_v29 = vld [vmem:[#allocation2 + $0x188] ss:$36 sps:$4 sm:$0xff]  }
 0x12e   : > { %v7617_v39 = vpop.f32.mrf.mxu0  ;;  %v7728_v42 = vpop.f32.mrf.mxu1 }
 0x12f   : > { %v7618_v41 = vadd.f32 %v7617_v39, %v7616_v33  ;;  %v9661_v44 = vadd.f32 %v7727_v36, %v2724_v34  ;;  %v8834_v34 = vld [vmem:[#allocation2 + $0x1d0] ss:$36 sps:$4 sm:$0xff]  }
 0x130   : > { %3274 = vmatmul.mubr.bf16.gmra.mxu1 %v8825_v24  ;;  %v7619_v45 = vpop.f32.mrf.mxu0  ;;  %v7729_v48 = vpop.f32.mrf.mxu1 }
 0x131   : > { %v2729_v46 = vadd.f32 %v7618_v41, %v9619_v11  ;;  %v7730_v51 = vadd.f32 %v7729_v48, %v7728_v42 }
 0x132   : > { %v7620_v52 = vpop.f32.mrf.mxu0  ;;  %v7731_v54 = vpop.f32.mrf.mxu1 }
 0x133   : > { %v7621_v53 = vadd.f32 %v7620_v52, %v7619_v45  ;;  %v9664_v55 = vadd.f32 %v7730_v51, %v2729_v46 }
 0x134   : > { %v7622_v56 = vpop.f32.mrf.mxu0  ;;  %8408 = vmatmul.mubr.bf16.vlgmr.msra.gmra.mxu0 %v8829_v40  ;;  %v7732_v59 = vpop.f32.mrf.mxu1 }
 0x135   : > { %v2732_v57 = vadd.f32 %v7621_v53, %v9619_v11  ;;  %8411 = vmatprep.mubr.bf16.mxu0 %v8830_v43  ;;  %v7733_v60 = vadd.f32 %v7732_v59, %v7731_v54  ;;  %v8835_v54 = vld [vmem:[#allocation2 + $0x218] ss:$36 sps:$4 sm:$0xff]   ;;  %v8836_v59 = vld [vmem:[#allocation2 + $0x260] ss:$36 sps:$4 sm:$0xff]  }
 0x136   : > { %v7623_v62 = vpop.f32.mrf.mxu0  ;;  %v7734_v0 = vpop.f32.mrf.mxu1 }
 0x137   : > { %v7624_v63 = vadd.f32 %v7623_v62, %v7622_v56  ;;  %v9667_v1 = vadd.f32 %v7733_v60, %v2732_v57 }
 0x138   : > { %v7625_v2 = vpop.f32.mrf.mxu0  ;;  %v7735_v5 = vpop.f32.mrf.mxu1 }
 0x139   : > { %v2737_v3 = vadd.f32 %v7624_v63, %v9619_v11  ;;  %v7736_v7 = vadd.f32 %v7735_v5, %v7734_v0  ;;  %v8846_v63 = vld [vmem:[%s10772_s3 + $0x70] sm:$0xff]  }
 0x13a   : > { %v7626_v9 = vpop.f32.mrf.mxu0  ;;  %v7737_v14 = vpop.f32.mrf.mxu1  ;;  %v8847_v0 = vld [vmem:[%s10772_s3 + $0x30] sm:$0xff]   ;;  %8032 = vmatprep.subr.bf16.mxu1 %v8846_v63 }
 0x13b   : > { %v7627_v13 = vadd.f32 %v7626_v9, %v7625_v2  ;;  %v9676_v16 = vadd.f32 %v7736_v7, %v2737_v3  ;;  %8033 = vmatpush3.bf16.msra.mxu1 %v8847_v0 }
 0x13c   : > { %v7628_v17 = vpop.f32.mrf.mxu0  ;;  %8412 = vmatmul.mubr.bf16.gmra.mxu0 %v9612_v49  ;;  %v7738_v19 = vpop.f32.mrf.mxu1 }
 0x13d   : > { %v2740_v18 = vadd.f32 %v7627_v13, %v9619_v11  ;;  %8415 = vmatprep.mubr.bf16.mxu0 %v8832_v6  ;;  %v7739_v21 = vadd.f32 %v7738_v19, %v7737_v14  ;;  %v8837_v19 = vld [vmem:[#allocation2 + $0x2a8] ss:$36 sps:$4 sm:$0xff]  }
 0x13e   : > { %v7629_v22 = vpop.f32.mrf.mxu0  ;;  %v7740_v24 = vpop.f32.mrf.mxu1 }
 0x13f   : > { %v7630_v23 = vadd.f32 %v7629_v22, %v7628_v17  ;;  %v9680_v27 = vadd.f32 %v7739_v21, %v2740_v18 }
 0x140   : > { %v7631_v28 = vpop.f32.mrf.mxu0  ;;  %v7741_v33 = vpop.f32.mrf.mxu1 }
 0x141   : > { %v2745_v31 = vadd.f32 %v7630_v23, %v9619_v11  ;;  %v7742_v35 = vadd.f32 %v7741_v33, %v7740_v24  ;;  %v8838_v23 = vld [vmem:[#allocation2 + $0x2f0] ss:$36 sps:$4 sm:$0xff]  }
 0x142   : > { %v7632_v49 = vpop.f32.mrf.mxu0  ;;  %v7743_v39 = vpop.f32.mrf.mxu1 }
 0x143   : > { %v7633_v36 = vadd.f32 %v7632_v49, %v7631_v28  ;;  %v9683_v40 = vadd.f32 %v7742_v35, %v2745_v31 }
 0x144   : > { %v7634_v41 = vpop.f32.mrf.mxu0  ;;  %8416 = vmatmul.mubr.bf16.gmra.mxu0 %v8833_v29  ;;  %v7744_v43 = vpop.f32.mrf.mxu1 }
 0x145   : > { %v2748_v42 = vadd.f32 %v7633_v36, %v9619_v11  ;;  %8419 = vmatprep.mubr.bf16.mxu0 %v8834_v34  ;;  %v7745_v45 = vadd.f32 %v7744_v43, %v7743_v39 }
 0x146   : > { %v7635_v46 = vpop.f32.mrf.mxu0  ;;  %v7746_v51 = vpop.f32.mrf.mxu1 }
 0x147   : > { %v7636_v48 = vadd.f32 %v7635_v46, %v7634_v41  ;;  %v9686_v52 = vadd.f32 %v7745_v45, %v2748_v42  ;;  %v8839_v46 = vld [vmem:[#allocation2 + $0x338] ss:$36 sps:$4 sm:$0xff]  }
 0x148   : > { %v7637_v53 = vpop.f32.mrf.mxu0  ;;  %v7747_v57 = vpop.f32.mrf.mxu1 }
 0x149   : > { %v2753_v56 = vadd.f32 %v7636_v48, %v9619_v11  ;;  %v7748_v60 = vadd.f32 %v7747_v57, %v7746_v51  ;;  %v8848_v57 = vld [vmem:[%s10772_s3 + $0x68] sm:$0xff]  }
 0x14a   : > { %v7638_v62 = vpop.f32.mrf.mxu0  ;;  %v7749_v3 = vpop.f32.mrf.mxu1  ;;  %8034 = vmatprep.subr.bf16.mxu1 %v8848_v57  ;;  %v8851_v57 = vld [vmem:[%s10772_s3 + $0x20] sm:$0xff]  }
 0x14b   : > { %v7639_v2 = vadd.f32 %v7638_v62, %v7637_v53  ;;  %v9695_v5 = vadd.f32 %v7748_v60, %v2753_v56  ;;  %v8840_v53 = vld [vmem:[#allocation2 + $0x380] ss:$36 sps:$4 sm:$0xff]  }
 0x14c   : > { %v7640_v6 = vpop.f32.mrf.mxu0  ;;  %8420 = vmatmul.mubr.bf16.gmra.mxu0 %v8835_v54  ;;  %v7750_v9 = vpop.f32.mrf.mxu1 }
 0x14d   : > { %v2756_v7 = vadd.f32 %v7639_v2, %v9619_v11  ;;  %8423 = vmatprep.mubr.bf16.mxu0 %v8836_v59  ;;  %v7751_v10 = vadd.f32 %v7750_v9, %v7749_v3  ;;  %v8849_v59 = vld [vmem:[%s10772_s3 + $0x28] sm:$0xff]  }
 0x14e   : > { %v7641_v12 = vpop.f32.mrf.mxu0  ;;  %v7752_v14 = vpop.f32.mrf.mxu1  ;;  %8035 = vmatpush3.bf16.msra.mxu1 %v8849_v59 }
 0x14f   : > { %v7642_v13 = vadd.f32 %v7641_v12, %v7640_v6  ;;  %v9698_v17 = vadd.f32 %v7751_v10, %v2756_v7 }
 0x150   : > { %v7643_v18 = vpop.f32.mrf.mxu0  ;;  %v7753_v22 = vpop.f32.mrf.mxu1 }
 0x151   : > { %v2761_v21 = vadd.f32 %v7642_v13, %v9619_v11  ;;  %v7754_v24 = vadd.f32 %v7753_v22, %v7752_v14  ;;  %v8841_v14 = vld [vmem:[#allocation2 + $0x3c8] ss:$36 sps:$4 sm:$0xff]   ;;  %v8842_v22 = vld [vmem:[#allocation2 + $0x410] ss:$36 sps:$4 sm:$0xff]  }
 0x152   : > { %v7644_v28 = vpop.f32.mrf.mxu0  ;;  %v7755_v31 = vpop.f32.mrf.mxu1 }
 0x153   : > { %v7645_v29 = vadd.f32 %v7644_v28, %v7643_v18  ;;  %v9701_v33 = vadd.f32 %v7754_v24, %v2761_v21  ;;  %v9091_v18 = vld [vmem:[%s10771_s2] ss:$0 sm:$0xff] }
 0x154   : > { %v7646_v34 = vpop.f32.mrf.mxu0  ;;  %8424 = vmatmul.mubr.bf16.gmra.mxu0 %v8837_v19  ;;  %v7756_v49 = vpop.f32.mrf.mxu1 }
 0x155   : > { %v2764_v35 = vadd.f32 %v7645_v29, %v9619_v11  ;;  %8427 = vmatprep.mubr.bf16.mxu0 %v8838_v23  ;;  %v7757_v36 = vadd.f32 %v7756_v49, %v7755_v31 }
 0x156   : > { %v7647_v39 = vpop.f32.mrf.mxu0  ;;  %v7758_v42 = vpop.f32.mrf.mxu1 }
 0x157   : > { %v7648_v41 = vadd.f32 %v7647_v39, %v7646_v34  ;;  %v9704_v43 = vadd.f32 %v7757_v36, %v2764_v35 }
 0x158   : > { %v7649_v45 = vpop.f32.mrf.mxu0  ;;  %v7759_v51 = vpop.f32.mrf.mxu1 }
 0x159   : > { %v2769_v48 = vadd.f32 %v7648_v41, %v9619_v11  ;;  %v7760_v54 = vadd.f32 %v7759_v51, %v7758_v42 }
 0x15a   : > { %v7650_v56 = vpop.f32.mrf.mxu0  ;;  %v7761_v62 = vpop.f32.mrf.mxu1 }
 0x15b   : > { %v7651_v60 = vadd.f32 %v7650_v56, %v7649_v45  ;;  %v9713_v63 = vadd.f32 %v7760_v54, %v2769_v48  ;;  %v8850_v56 = vld [vmem:[%s10772_s3 + $0x60] sm:$0xff]  }
 0x15c   : > { %v7652_v0 = vpop.f32.mrf.mxu0  ;;  %8428 = vmatmul.mubr.bf16.gmra.mxu0 %v8839_v46  ;;  %v7762_v3 = vpop.f32.mrf.mxu1  ;;  %v8843_v46 = vld [vmem:[#allocation2 + $0x458] ss:$36 sps:$4 sm:$0xff]   ;;  %8036 = vmatprep.subr.bf16.mxu1 %v8850_v56 }
 0x15d   : > { %v2772_v2 = vadd.f32 %v7651_v60, %v9619_v11  ;;  %8431 = vmatprep.mubr.bf16.mxu0 %v8840_v53  ;;  %v7763_v6 = vadd.f32 %v7762_v3, %v7761_v62  ;;  %8037 = vmatpush3.bf16.msra.mxu1 %v8851_v57 }
 0x15e   : > { %v7653_v7 = vpop.f32.mrf.mxu0  ;;  %v7764_v10 = vpop.f32.mrf.mxu1 }
 0x15f   : > { %v7654_v9 = vadd.f32 %v7653_v7, %v7652_v0  ;;  %v9716_v12 = vadd.f32 %v7763_v6, %v2772_v2 }
 0x160   : > { %v7655_v13 = vpop.f32.mrf.mxu0  ;;  %v7765_v21 = vpop.f32.mrf.mxu1 }
 0x161   : > { %v2777_v19 = vadd.f32 %v9091_v18, %v7654_v9  ;;  %v7766_v23 = vadd.f32 %v7765_v21, %v7764_v10 }
 0x162   : > { %v7656_v11 = vpop.f32.mrf.mxu0  ;;  %v7767_v28 = vpop.f32.mrf.mxu1 }
 0x163   : > { %v7657_v24 = vadd.f32 %v7656_v11, %v7655_v13  ;;  %v9721_v29 = vadd.f32 %v7766_v23, %v2777_v19 }
 0x164   : > { %v7658_v31 = vpop.f32.mrf.mxu0  ;;  %8432 = vmatmul.mubr.bf16.gmra.mxu0 %v8841_v14  ;;  %v7768_v35 = vpop.f32.mrf.mxu1 }
 0x165   : > { %v2780_v34 = vadd.f32 %v9091_v18, %v7657_v24  ;;  %8435 = vmatprep.mubr.bf16.mxu0 %v8842_v22  ;;  %v7769_v49 = vadd.f32 %v7768_v35, %v7767_v28 }
 0x166   : > { %v7659_v36 = vpop.f32.mrf.mxu0 }
 0x167   : > { %v7660_v39 = vadd.f32 %v7659_v36, %v7658_v31  ;;  %v7770_v41 = vpop.f32.mrf.mxu1  ;;  %v9723_v42 = vadd.f32 %v7769_v49, %v2780_v34 }
 0x168   : > { %v7661_v45 = vpop.f32.mrf.mxu0 }
 0x169   : > { %v2785_v48 = vadd.f32 %v9091_v18, %v7660_v39  ;;  %v7771_v51 = vpop.f32.mrf.mxu1 }
 0x16a   : > { %v7772_v53 = vadd.f32 %v7771_v51, %v7770_v41  ;;  %v7662_v54 = vpop.f32.mrf.mxu0 }
 0x16b   : > { %v7663_v59 = vadd.f32 %v7662_v54, %v7661_v45  ;;  %v7773_v60 = vpop.f32.mrf.mxu1 }
 0x16c   : > { %v9731_v62 = vadd.f32 %v7772_v53, %v2785_v48  ;;  %v7664_v0 = vpop.f32.mrf.mxu0  ;;  %8436 = vmatmul.mubr.bf16.gmra.mxu0 %v8843_v46 }
 0x16d   : > { %v2788_v2 = vadd.f32 %v9091_v18, %v7663_v59  ;;  %v7774_v3 = vpop.f32.mrf.mxu1 }
 0x16e   : > { %v7775_v6 = vadd.f32 %v7774_v3, %v7773_v60  ;;  %v7665_v7 = vpop.f32.mrf.mxu0  ;;  %v8853_v3 = vld [vmem:[%s10772_s3 + $0x18] sm:$0xff]  }
 0x16f   : > { %v7666_v9 = vadd.f32 %v7665_v7, %v7664_v0 }
 0x170   : > { %v7776_v10 = vpop.f32.mrf.mxu1  ;;  %v9733_v13 = vadd.f32 %v7775_v6, %v2788_v2  ;;  %v7667_v14 = vpop.f32.mrf.mxu0  ;;  %v8852_v2 = vld [vmem:[%s10772_s3 + $0x58] sm:$0xff]  }
 0x171   : > { %v2793_v19 = vadd.f32 %v9091_v18, %v7666_v9  ;;  %8038 = vmatprep.subr.bf16.mxu1 %v8852_v2 }
 0x172   : > { %v7777_v21 = vpop.f32.mrf.mxu1  ;;  %v7668_v23 = vpop.f32.mrf.mxu0  ;;  %8039 = vmatpush3.bf16.msra.mxu1 %v8853_v3  ;;  %v8861_v3 = vld [vmem:[%s10772_s3 + $0x128] sm:$0xff]  }
 0x173   : > { %v7778_v22 = vadd.f32 %v7777_v21, %v7776_v10  ;;  %v7669_v11 = vadd.f32 %v7668_v23, %v7667_v14 }
 0x174   : > { %v7779_v24 = vpop.f32.mrf.mxu1  ;;  %v7798_v31 = vpop.f32.mrf.mxu0 }
 0x175   : > { %v9735_v28 = vadd.f32 %v7778_v22, %v2793_v19  ;;  %v2796_v34 = vadd.f32 %v9091_v18, %v7669_v11 }
 0x176   : > { %v7780_v35 = vpop.f32.mrf.mxu1  ;;  %v7799_v36 = vpop.f32.mrf.mxu0 }
 0x177   : > { %10797 = vst [vmem:[#allocation8_spill] sm:$0xff] %v9735_v28  ;;  %v7781_v49 = vadd.f32 %v7780_v35, %v7779_v24  ;;  %v7800_v39 = vadd.f32 %v7799_v36, %v7798_v31  ;;  %v8855_v35 = vld [vmem:[%s10772_s3 + $0x178] sm:$0xff]  }
 0x178   : > { %v7910_v41 = vpop.f32.mrf.mxu1  ;;  %v7801_v46 = vpop.f32.mrf.mxu0  ;;  %v8857_v36 = vld [vmem:[%s10772_s3 + $0x138] sm:$0xff]   ;;  %8110 = vmatprep.subr.bf16.mxu0 %v8855_v35  ;;  %v3580_v35 = vld [vmem:[#allocation4] sm:$0xff] }
 0x179   : > { %v9737_v45 = vadd.f32 %v7781_v49, %v2796_v34  ;;  %v2995_v48 = vadd.f32 %v7800_v39, %v9622_v26  ;;  %8111 = vmatpush3.bf16.msra.mxu0 %v8857_v36  ;;  %v9818_v36 = vpack.c.bf16 %v3580_v35, %v3580_v35  ;;  %v8869_v35 = vld [vmem:[%s10772_s3 + $0x150] sm:$0xff]  }
 0x17a   : > { %v7911_v51 = vpop.f32.mrf.mxu1  ;;  %v7802_v54 = vpop.f32.mrf.mxu0 }
 0x17b   : > { %10798 = vst [vmem:[#allocation9_spill] sm:$0xff] %v9737_v45  ;;  %v7912_v53 = vadd.f32 %v7911_v51, %v7910_v41  ;;  %v7803_v56 = vadd.f32 %v7802_v54, %v7801_v46  ;;  %v8859_v54 = vld [vmem:[%s10772_s3 + $0x130] sm:$0xff]   ;;  %10799 = vst [vmem:[#allocation10_spill] sm:$0xff] %v9818_v36 }
 0x17c   : > { %v7913_v57 = vpop.f32.mrf.mxu1  ;;  %v7804_v59 = vpop.f32.mrf.mxu0  ;;  %3622 = vst [vmem:[#allocation2] sm:$0xf] %v9818_v36 }
 0x17d   : > { %v9740_v60 = vadd.f32 %v7912_v53, %v2995_v48  ;;  %v2998_v18 = vadd.f32 %v7803_v56, %v9625_v37  ;;  %v8858_v48 = vld [vmem:[%s10772_s3 + $0x170] sm:$0xff]  }
 0x17e   : > { %v7914_v0 = vpop.f32.mrf.mxu1  ;;  %v7805_v6 = vpop.f32.mrf.mxu0  ;;  %8112 = vmatprep.subr.bf16.mxu0 %v8858_v48 }
 0x17f   : > { %v7915_v26 = vadd.f32 %v7914_v0, %v7913_v57  ;;  %v7806_v7 = vadd.f32 %v7805_v6, %v7804_v59  ;;  %8113 = vmatpush3.bf16.msra.mxu0 %v8859_v54 }
 0x180   : > { %v9749_v9 = vpop.f32.mrf.mxu1  ;;  %v7807_v10 = vpop.f32.mrf.mxu0 }
 0x181   : > { %v9751_v14 = vadd.f32 %v7915_v26, %v2998_v18  ;;  %v9754_v37 = vadd.f32 %v7806_v7, %v9628_v47  ;;  %v8860_v18 = vld [vmem:[%s10772_s3 + $0x168] sm:$0xff]  }
 0x182   : > { %v9756_v19 = vpop.f32.mrf.mxu1  ;;  %v7808_v21 = vpop.f32.mrf.mxu0  ;;  %8114 = vmatprep.subr.bf16.mxu0 %v8860_v18  ;;  %v8864_v18 = vld [vmem:[%s10772_s3 + $0x48] sm:$0xff]  }
 0x183   : > { %v7809_v22 = vadd.f32 %v7808_v21, %v7807_v10  ;;  %8115 = vmatpush3.bf16.msra.mxu0 %v8861_v3  ;;  %v8854_v10 = vld [vmem:[%s10772_s3 + $0x50] sm:$0xff]   ;;  %v8862_v21 = vld [vmem:[%s10772_s3 + $0x160] sm:$0xff]  }
 0x184   : > { %v9758_v23 = vpop.f32.mrf.mxu1  ;;  %v7810_v11 = vpop.f32.mrf.mxu0  ;;  %8040 = vmatprep.subr.bf16.mxu1 %v8854_v10  ;;  %8116 = vmatprep.subr.bf16.mxu0 %v8862_v21 }
 0x185   : > { %v9761_v24 = vadd.f32 %v7809_v22, %v9631_v58 }
 0x186   : > { %v9763_v31 = vpop.f32.mrf.mxu1  ;;  %v7811_v34 = vpop.f32.mrf.mxu0 }
 0x187   : > { %v7812_v49 = vadd.f32 %v7811_v34, %v7810_v11  ;;  %v8863_v34 = vld [vmem:[%s10772_s3 + $0x120] sm:$0xff]  }
 0x188   : > { %v9768_v47 = vpop.f32.mrf.mxu1  ;;  %v7813_v39 = vpop.f32.mrf.mxu0  ;;  %8117 = vmatpush3.bf16.msra.mxu0 %v8863_v34  ;;  %v8868_v34 = vld [vmem:[%s10772_s3 + $0x40] sm:$0xff]  }
 0x189   : > { %v9774_v41 = vadd.f32 %v7812_v49, %v9634_v4 }
 0x18a   : > { %v9776_v58 = vpop.f32.mrf.mxu1  ;;  %v7814_v46 = vpop.f32.mrf.mxu0 }
 0x18b   : > { %v7815_v51 = vadd.f32 %v7814_v46, %v7813_v39  ;;  %v3686_v39 = vld [vmem:[#allocation4 + $0x1] sm:$0xff] }
 0x18c   : > { %v9781_v53 = vpop.f32.mrf.mxu1  ;;  %v7816_v56 = vpop.f32.mrf.mxu0  ;;  %v3792_v46 = vld [vmem:[#allocation4 + $0x2] sm:$0xff]  ;;  %v9825_v54 = vpack.c.bf16 %v3686_v39, %v3686_v39 }
 0x18d   : > { %v9787_v4 = vadd.f32 %v7815_v51, %v9637_v15 }
 0x18e   : > { %v9789_v57 = vpop.f32.mrf.mxu1  ;;  %v7817_v59 = vpop.f32.mrf.mxu0  ;;  %10800 = vst [vmem:[#allocation11_spill] sm:$0xff] %v9825_v54  ;;  %3728 = vst [vmem:[#allocation2 + $0x4] sm:$0xf] %v9825_v54 }
 0x18f   : > { %v7818_v0 = vadd.f32 %v7817_v59, %v7816_v56  ;;  %v9827_v56 = vpack.c.bf16 %v3792_v46, %v3792_v46  ;;  %v8871_v46 = vld [vmem:[%s10772_s3 + $0x110] sm:$0xff]  }
 0x190   : > { %v9794_v2 = vpop.f32.mrf.mxu1  ;;  %v7819_v26 = vpop.f32.mrf.mxu0 }
 0x191   : > { %v9800_v15 = vadd.f32 %v7818_v0, %v9640_v25  ;;  %v8856_v25 = vld [vmem:[%s10772_s3 + $0x10] sm:$0xff]   ;;  %10801 = vst [vmem:[#allocation12_spill] sm:$0xff] %v9827_v56  ;;  %v8865_v0 = vld [vmem:[%s10772_s3 + $0x158] sm:$0xff]   ;;  %3834 = vst [vmem:[#allocation2 + $0x8] sm:$0xf] %v9827_v56 }
 0x192   : > { %v9802_v6 = vpop.f32.mrf.mxu1  ;;  %v7820_v7 = vpop.f32.mrf.mxu0  ;;  %8041 = vmatpush3.bf16.msra.mxu1 %v8856_v25  ;;  %8118 = vmatprep.subr.bf16.mxu0 %v8865_v0 }
 0x193   : > { %v7821_v22 = vadd.f32 %v7820_v7, %v7819_v26  ;;  %v8866_v26 = vld [vmem:[%s10772_s3 + $0x8] sm:$0xff]   ;;  %v8867_v7 = vld [vmem:[%s10772_s3 + $0x118] sm:$0xff]   ;;  %8042 = vmatprep.subr.bf16.mxu1 %v8864_v18 }
 0x194   : > { %v9810_v11 = vpop.f32.mrf.mxu1  ;;  %v7822_v49 = vpop.f32.mrf.mxu0  ;;  %8119 = vmatpush3.bf16.msra.mxu0 %v8867_v7 }
 0x195   : > { %v9821_v48 = vadd.f32 %v7821_v22, %v9643_v38  ;;  %8120 = vmatprep.subr.bf16.mxu0 %v8869_v35 }
 0x196   : > { %v9823_v51 = vpop.f32.mrf.mxu1  ;;  %v7823_v59 = vpop.f32.mrf.mxu0  ;;  %8043 = vmatpush3.bf16.msra.mxu1 %v8866_v26  ;;  %v8875_v26 = vld [vmem:[%s10772_s3 + $0x148] sm:$0xff]  }
 0x197   : > { %v7824_v38 = vadd.f32 %v7823_v59, %v7822_v49  ;;  %8044 = vmatprep.subr.bf16.mxu1 %v8868_v34 }
 0x198   : > { %v9836_v3 = vpop.f32.mrf.mxu1  ;;  %v7825_v10 = vpop.f32.mrf.mxu0  ;;  %8121 = vmatpush3.bf16.msra.mxu0 %v8871_v46 }
 0x199   : > { %v9847_v21 = vadd.f32 %v7824_v38, %v9646_v50  ;;  %v8870_v50 = vld [vmem:[%s10772_s3] sm:$0xff]   ;;  %8122 = vmatprep.subr.bf16.mxu0 %v8875_v26 }
 0x19a   : > { %v9849_v22 = vpop.f32.mrf.mxu1  ;;  %v7826_v25 = vpop.f32.mrf.mxu0  ;;  %8045 = vmatpush3.bf16.msra.mxu1 %v8870_v50  ;;  %v8877_v50 = vld [vmem:[%s10772_s3 + $0x140] sm:$0xff]  }
 0x19b   : > { %v7827_v49 = vadd.f32 %v7826_v25, %v7825_v10  ;;  %v8876_v25 = vld [vmem:[%s10772_s3 + $0x108] sm:$0xff]  }
 0x19c   : > { %v9857_v39 = vpop.f32.mrf.mxu1  ;;  %v7828_v59 = vpop.f32.mrf.mxu0  ;;  %8123 = vmatpush3.bf16.msra.mxu0 %v8876_v25 }
 0x19d   : > { %v9866_v18 = vadd.f32 %v7827_v49, %v9649_v61  ;;  %8124 = vmatprep.subr.bf16.mxu0 %v8877_v50 }
 0x19e   : > { %v9868_v0 = vpop.f32.mrf.mxu1  ;;  %v7829_v38 = vpop.f32.mrf.mxu0 }
 0x19f   : > { %10802 = vst [vmem:[#allocation13_spill] sm:$0xff] %v9866_v18  ;;  %v7830_v7 = vadd.f32 %v7829_v38, %v7828_v59  ;;  %v8878_v38 = vld [vmem:[%s10772_s3 + $0x100] sm:$0xff]  }
 0x1a0   : > { %v9873_v10 = vpop.f32.mrf.mxu1  ;;  %v7831_v34 = vpop.f32.mrf.mxu0  ;;  %8125 = vmatpush3.bf16.msra.mxu0 %v8878_v38 }
 0x1a1   : > { %v9879_v61 = vadd.f32 %v7830_v7, %v9652_v8 }
 0x1a2   : > { %v9881_v35 = vpop.f32.mrf.mxu1  ;;  %v7832_v49 = vpop.f32.mrf.mxu0 }
 0x1a3   : > { %v7833_v46 = vadd.f32 %v7832_v49, %v7831_v34 }
 0x1a4   : > { %v9886_v59 = vpop.f32.mrf.mxu1  ;;  %v7834_v30 = vpop.f32.mrf.mxu0 }
 0x1a5   : > { %v9892_v8 = vadd.f32 %v7833_v46, %v9655_v20 }
 0x1a6   : > { %v9894_v26 = vpop.f32.mrf.mxu1  ;;  %v7835_v7 = vpop.f32.mrf.mxu0 }
 0x1a7   : > { %v7836_v25 = vadd.f32 %v7835_v7, %v7834_v30 }
 0x1a8   : > { %v9896_v45 = vpop.f32.mrf.mxu1  ;;  %v7837_v56 = vpop.f32.mrf.mxu0 }
 0x1a9   : > { %v9899_v34 = vadd.f32 %v7836_v25, %v9658_v32 }
 0x1aa   : > { %v9901_v49 = vpop.f32.mrf.mxu1  ;;  %v7838_v28 = vpop.f32.mrf.mxu0 }
 0x1ab   : > { %10803 = vst [vmem:[#allocation14_spill] sm:$0xff] %v9899_v34  ;;  %v7839_v54 = vadd.f32 %v7838_v28, %v7837_v56 }
 0x1ac   : > { %v9903_v36 = vpop.f32.mrf.mxu1  ;;  %v7840_v50 = vpop.f32.mrf.mxu0 }
 0x1ad   : > { %10804 = vst [vmem:[#allocation15_spill] sm:$0xff] %v9903_v36  ;;  %v9906_v20 = vadd.f32 %v7839_v54, %v9661_v44 }
 0x1ae   : > { %v9908_v46 = vpop.f32.mrf.mxu1  ;;  %v7841_v38 = vpop.f32.mrf.mxu0 }
 0x1af   : > { %10805 = vst [vmem:[#allocation16_spill] sm:$0xff] %v9906_v20  ;;  %10806 = vst [vmem:[#allocation17_spill] sm:$0xff] %v9908_v46  ;;  %v7842_v30 = vadd.f32 %v7841_v38, %v7840_v50  ;;  %v8887_v50 = vld [vmem:[%s10772_s3 + $0xf8] sm:$0xff]  }
 0x1b0   : > { %v9910_v7 = vpop.f32.mrf.mxu1  ;;  %v7843_v18 = vpop.f32.mrf.mxu0  ;;  %8070 = vmatprep.subr.bf16.mxu1 %v8887_v50 }
 0x1b1   : > { %v9913_v32 = vadd.f32 %v7842_v30, %v9664_v55 }
 0x1b2   : > { %v9915_v25 = vpop.f32.mrf.mxu1  ;;  %v7844_v34 = vpop.f32.mrf.mxu0 }
 0x1b3   : > { %v7845_v28 = vadd.f32 %v7844_v34, %v7843_v18 }
 0x1b4   : > { %v9917_v56 = vpop.f32.mrf.mxu1  ;;  %v7846_v36 = vpop.f32.mrf.mxu0 }
 0x1b5   : > { %10807 = vst [vmem:[#allocation18_spill] sm:$0xff] %v9917_v56  ;;  %v9920_v44 = vadd.f32 %v7845_v28, %v9667_v1 }
 0x1b6   : > { %v9922_v54 = vpop.f32.mrf.mxu1  ;;  %v7847_v20 = vpop.f32.mrf.mxu0 }
 0x1b7   : > { %10808 = vst [vmem:[#allocation19_spill] sm:$0xff] %v9920_v44  ;;  %10809 = vst [vmem:[#allocation20_spill] sm:$0xff] %v9922_v54  ;;  %v7848_v38 = vadd.f32 %v7847_v20, %v7846_v36  ;;  %v9944_v20 = vld [vmem:[%s10772_s3 + $0x238] sm:$0xff]  }
 0x1b8   : > { %v9927_v55 = vpop.f32.mrf.mxu1  ;;  %v7849_v30 = vpop.f32.mrf.mxu0  ;;  %10816 = vst [vmem:[#allocation27_spill] sm:$0xff] %v9944_v20  ;;  %8439 = vmatprep.subr.bf16.mxu0 %v9944_v20 }
 0x1b9   : > { %10810 = vst [vmem:[#allocation21_spill] sm:$0xff] %v9927_v55  ;;  %v9930_v18 = vadd.f32 %v7848_v38, %v9676_v16 }
 0x1ba   : > { %v9932_v34 = vpop.f32.mrf.mxu1  ;;  %v7850_v46 = vpop.f32.mrf.mxu0 }
 0x1bb   : > { %10811 = vst [vmem:[#allocation22_spill] sm:$0xff] %v9930_v18  ;;  %10812 = vst [vmem:[#allocation23_spill] sm:$0xff] %v9932_v34  ;;  %v7851_v1 = vadd.f32 %v7850_v46, %v7849_v30 }
 0x1bc   : > { %v9934_v28 = vpop.f32.mrf.mxu1  ;;  %v7852_v44 = vpop.f32.mrf.mxu0 }
 0x1bd   : > { %10813 = vst [vmem:[#allocation24_spill] sm:$0xff] %v9934_v28  ;;  %v9937_v54 = vadd.f32 %v7851_v1, %v9680_v27 }
 0x1be   : > { %v9939_v56 = vpop.f32.mrf.mxu1  ;;  %v7853_v36 = vpop.f32.mrf.mxu0 }
 0x1bf   : > { %10814 = vst [vmem:[#allocation25_spill] sm:$0xff] %v9937_v54  ;;  %10815 = vst [vmem:[#allocation26_spill] sm:$0xff] %v9939_v56  ;;  %v7854_v16 = vadd.f32 %v7853_v36, %v7852_v44 }
 0x1c0   : > { %v9946_v50 = vpop.f32.mrf.mxu1  ;;  %v7855_v38 = vpop.f32.mrf.mxu0 }
 0x1c1   : > { %v9950_v46 = vadd.f32 %v7854_v16, %v9683_v40 }
 0x1c2   : > { %v9952_v30 = vpop.f32.mrf.mxu1  ;;  %v7856_v27 = vpop.f32.mrf.mxu0 }
 0x1c3   : > { %10817 = vst [vmem:[#allocation28_spill] sm:$0xff] %v9950_v46  ;;  %v7857_v1 = vadd.f32 %v7856_v27, %v7855_v38  ;;  %v3589_v27 = vld [vmem:[#allocation4 + $0x90] sm:$0xff] }
 0x1c4   : > { %v9954_v54 = vpop.f32.mrf.mxu1  ;;  %v7858_v18 = vpop.f32.mrf.mxu0 }
 0x1c5   : > { %10818 = vst [vmem:[#allocation29_spill] sm:$0xff] %v9954_v54  ;;  %v9957_v56 = vadd.f32 %v7857_v1, %v9686_v52  ;;  %v3695_v54 = vld [vmem:[#allocation4 + $0x91] sm:$0xff]  ;;  %v9969_v1 = vpack.c.bf16 %v3589_v27, %v3589_v27 }
 0x1c6   : > { %v7859_v28 = vpop.f32.mrf.mxu0  ;;  %v9959_v36 = vpop.f32.mrf.mxu1 }
 0x1c7   : > { %10819 = vst [vmem:[#allocation30_spill] sm:$0xff] %v9957_v56  ;;  %v7860_v44 = vadd.f32 %v7859_v28, %v7858_v18  ;;  %10822 = vst [vmem:[#allocation33_spill] sm:$0xff] %v9969_v1  ;;  %v9971_v18 = vpack.c.bf16 %v3695_v54, %v3695_v54 }
 0x1c8   : > { %v7861_v34 = vpop.f32.mrf.mxu0  ;;  %v9964_v46 = vpop.f32.mrf.mxu1  ;;  %3685 = vst [vmem:[#allocation2 + $0x114] sm:$0xf] %v9969_v1 }
 0x1c9   : > { %v9962_v20 = vadd.f32 %v7860_v44, %v9695_v5  ;;  %10823 = vst [vmem:[#allocation34_spill] sm:$0xff] %v9971_v18  ;;  %3791 = vst [vmem:[#allocation2 + $0x118] sm:$0xf] %v9971_v18 }
 0x1ca   : > { %v7862_v40 = vpop.f32.mrf.mxu0  ;;  %v9973_v56 = vpop.f32.mrf.mxu1 }
 0x1cb   : > { %10820 = vst [vmem:[#allocation31_spill] sm:$0xff] %v9962_v20  ;;  %v7863_v16 = vadd.f32 %v7862_v40, %v7861_v34 }
 0x1cc   : > { %v7864_v55 = vpop.f32.mrf.mxu0  ;;  %v9980_v40 = vpop.f32.mrf.mxu1 }
 0x1cd   : > { %v9967_v38 = vadd.f32 %v7863_v16, %v9698_v17  ;;  %10824 = vst [vmem:[#allocation35_spill] sm:$0xff] %v9980_v40 }
 0x1ce   : > { %v7865_v52 = vpop.f32.mrf.mxu0 }
 0x1cf   : > { %10821 = vst [vmem:[#allocation32_spill] sm:$0xff] %v9967_v38  ;;  %v7866_v28 = vadd.f32 %v7865_v52, %v7864_v55  ;;  %v9985_v52 = vpop.f32.mrf.mxu1 }
 0x1d0   : > { %v7867_v5 = vpop.f32.mrf.mxu0 }
 0x1d1   : > { %v9978_v34 = vadd.f32 %v7866_v28, %v9701_v33  ;;  %v9990_v33 = vpop.f32.mrf.mxu1 }
 0x1d2   : > { %v7868_v17 = vpop.f32.mrf.mxu0 }
 0x1d3   : > { %v7869_v44 = vadd.f32 %v7868_v17, %v7867_v5 }
 0x1d4   : > { %v7870_v16 = vpop.f32.mrf.mxu0 }
 0x1d5   : > { %v9983_v27 = vadd.f32 %v7869_v44, %v9704_v43  ;;  %v9995_v43 = vpop.f32.mrf.mxu1 }
 0x1d6   : > { %v7871_v54 = vpop.f32.mrf.mxu0 }
 0x1d7   : > { %10825 = vst [vmem:[#allocation36_spill] sm:$0xff] %v9983_v27  ;;  %v7872_v55 = vadd.f32 %v7871_v54, %v7870_v16 }
 0x1d8   : > { %v7873_v38 = vpop.f32.mrf.mxu0 }
 0x1d9   : > { %v9988_v1 = vadd.f32 %v7872_v55, %v9713_v63  ;;  %v10000_v63 = vpop.f32.mrf.mxu1 }
 0x1da   : > { %v7874_v18 = vpop.f32.mrf.mxu0 }
 0x1db   : > { %10826 = vst [vmem:[#allocation37_spill] sm:$0xff] %v9988_v1  ;;  %v7875_v20 = vadd.f32 %v7874_v18, %v7873_v38 }
 0x1dc   : > { %v7876_v28 = vpop.f32.mrf.mxu0 }
 0x1dd   : > { %v9993_v5 = vadd.f32 %v7875_v20, %v9716_v12  ;;  %v10005_v12 = vpop.f32.mrf.mxu1 }
 0x1de   : > { %v7877_v17 = vpop.f32.mrf.mxu0 }
 0x1df   : > { %10827 = vst [vmem:[#allocation38_spill] sm:$0xff] %v9993_v5  ;;  %v7878_v40 = vadd.f32 %v7877_v17, %v7876_v28 }
 0x1e0   : > { %v7879_v44 = vpop.f32.mrf.mxu0 }
 0x1e1   : > { %v9998_v16 = vadd.f32 %v7878_v40, %v9721_v29  ;;  %v10010_v29 = vpop.f32.mrf.mxu1 }
 0x1e2   : > { %v7880_v54 = vpop.f32.mrf.mxu0 }
 0x1e3   : > { %v7881_v27 = vadd.f32 %v7880_v54, %v7879_v44 }
 0x1e4   : > { %v7882_v55 = vpop.f32.mrf.mxu0 }
 0x1e5   : > { %v10003_v38 = vadd.f32 %v7881_v27, %v9723_v42  ;;  %v7918_v42 = vadd.f32 %v9756_v19, %v9749_v9  ;;  %v10021_v27 = vpop.f32.mrf.mxu1 }
 0x1e6   : > { %v7883_v18 = vpop.f32.mrf.mxu0 }
 0x1e7   : > { %10828 = vst [vmem:[#allocation39_spill] sm:$0xff] %v10003_v38  ;;  %v7884_v1 = vadd.f32 %v7883_v18, %v7882_v55  ;;  %v3164_v18 = vadd.f32 %v7918_v42, %v9754_v37 }
 0x1e8   : > { %v7885_v20 = vpop.f32.mrf.mxu0 }
 0x1e9   : > { %v10008_v28 = vadd.f32 %v7884_v1, %v9731_v62  ;;  %v7921_v1 = vadd.f32 %v9763_v31, %v9758_v23  ;;  %v7924_v23 = vadd.f32 %v9776_v58, %v9768_v47 }
 0x1ea   : > { %v7886_v17 = vpop.f32.mrf.mxu0 }
 0x1eb   : > { %10829 = vst [vmem:[#allocation40_spill] sm:$0xff] %v10008_v28  ;;  %v7887_v5 = vadd.f32 %v7886_v17, %v7885_v20  ;;  %v10030_v20 = vpop.f32.mrf.mxu1  ;;  %v3167_v19 = vadd.f32 %v7921_v1, %v9761_v24  ;;  %v7927_v24 = vadd.f32 %v9789_v57, %v9781_v53 }
 0x1ec   : > { %v10012_v40 = vpop.f32.mrf.mxu0 }
 0x1ed   : > { %v10015_v44 = vadd.f32 %v7887_v5, %v9733_v13  ;;  %v10036_v28 = vpop.f32.mrf.mxu1  ;;  %v3175_v57 = vadd.f32 %v7927_v24, %v9787_v4 }
 0x1ee   : > { %v10017_v54 = vpop.f32.mrf.mxu0 }
 0x1ef   : > { %10830 = vst [vmem:[#allocation41_spill] sm:$0xff] %v10015_v44  ;;  %v7930_v44 = vadd.f32 %v9802_v6, %v9794_v2  ;;  %v10046_v6 = vpop.f32.mrf.mxu1 }
 0x1f0   : > { %v10023_v55 = vpop.f32.mrf.mxu0 }
 0x1f2   : > { %v10025_v62 = vpop.f32.mrf.mxu0 }
 0x1f3   : > { %10831 = vst [vmem:[#allocation42_spill] sm:$0xff] %v10025_v62 }
 0x1f4   : > { %v8409_v13 = vpop.f32.mrf.mxu0 }
 0x1f5   : > { %v3325_v5 = vadd.f32 %v8409_v13, %v3164_v18  ;;  %v7933_v18 = vadd.f32 %v9823_v51, %v9810_v11  ;;  %v7942_v11 = vadd.f32 %v9881_v35, %v9873_v10  ;;  %v7945_v10 = vadd.f32 %v9894_v26, %v9886_v59 }
 0x1f6   : > { %v3316_v17 = vpop.f32.mrf.mxu0 }
 0x1f7   : > { %v3317_v9 = vadd.f32 %v3316_v17, %v9740_v60  ;;  %v3445_v31 = vmax.f32 %v3325_v5, 0.0  ;;  %v3180_v60 = vadd.f32 %v7930_v44, %v9800_v15  ;;  %v3183_v15 = vadd.f32 %v7933_v18, %v9821_v48  ;;  %v10052_v44 = vpop.f32.mrf.mxu1 }
 0x1f8   : > { %v8410_v38 = vpop.f32.mrf.mxu0  ;;  %v3196_v48 = vadd.f32 %v7942_v11, %v9879_v61  ;;  %v3199_v61 = vadd.f32 %v7945_v10, %v9892_v8  ;;  %v10834_v8 = vld [vmem:[#allocation18_spill] sm:$0xff] }
 0x1f9   : > { %v3443_v37 = vmax.f32 %v3317_v9, 0.0  ;;  %v3328_v42 = vadd.f32 %v8410_v38, %v3167_v19  ;;  %v3172_v38 = vadd.f32 %v7924_v23, %v9774_v41  ;;  %v10838_v10 = vld [vmem:[#allocation14_spill] sm:$0xff] }
 0x1fa   : > { %v3319_v62 = vpop.f32.mrf.mxu0 }
 0x1fb   : > { %v3475_v13 = vmax.f32 %v3443_v37, %v3445_v31  ;;  %v3320_v2 = vadd.f32 %v3319_v62, %v9751_v14  ;;  %v3446_v47 = vmax.f32 %v3328_v42, 0.0  ;;  %v7936_v62 = vadd.f32 %v9849_v22, %v9836_v3  ;;  %v10062_v42 = vpop.f32.mrf.mxu1 }
 0x1fc   : > { %v8413_v1 = vpop.f32.mrf.mxu0  ;;  %v7939_v37 = vadd.f32 %v9868_v0, %v9857_v39  ;;  %v7948_v39 = vadd.f32 %v9901_v49, %v9896_v45 }
 0x1fd   : > { %3491 = vst [vmem:[#allocation3] sm:$0xff] %v3475_v13  ;;  %v3444_v58 = vmax.f32 %v3320_v2, 0.0  ;;  %v3341_v5 = vadd.f32 %v8413_v1, %v3180_v60  ;;  %v3188_v13 = vadd.f32 %v7936_v62, %v9847_v21  ;;  %v7954_v2 = vadd.f32 %v9915_v25, %v9910_v7  ;;  %v10070_v0 = vpop.f32.mrf.mxu1 }
 0x1fe   : > { %v3332_v17 = vpop.f32.mrf.mxu0 }
 0x1ff   : > { %v3476_v51 = vmax.f32 %v3444_v58, %v3446_v47  ;;  %v3333_v14 = vadd.f32 %v3332_v17, %v3172_v38  ;;  %v3449_v9 = vmax.f32 %v3341_v5, 0.0  ;;  %v10832_v58 = vld [vmem:[#allocation13_spill] sm:$0xff]  ;;  %v3212_v11 = vadd.f32 %v7954_v2, %v9913_v32 }
 0x200   : > { %v8414_v53 = vpop.f32.mrf.mxu0  ;;  %v3191_v5 = vadd.f32 %v7939_v37, %v10832_v58 }
 0x201   : > { %3492 = vst [vmem:[#allocation3 + $0x8] sm:$0xff] %v3476_v51  ;;  %v3447_v19 = vmax.f32 %v3333_v14, 0.0  ;;  %v3344_v41 = vadd.f32 %v8414_v53, %v3183_v15  ;;  %v10835_v51 = vld [vmem:[#allocation20_spill] sm:$0xff]  ;;  %v10836_v53 = vld [vmem:[#allocation15_spill] sm:$0xff] }
 0x202   : > { %v3335_v23 = vpop.f32.mrf.mxu0  ;;  %v7957_v14 = vadd.f32 %v10835_v51, %v10834_v8 }
 0x203   : > { %v3477_v35 = vmax.f32 %v3447_v19, %v3449_v9  ;;  %v3336_v31 = vadd.f32 %v3335_v23, %v3175_v57  ;;  %v3450_v3 = vmax.f32 %v3344_v41, 0.0  ;;  %v10837_v57 = vld [vmem:[#allocation17_spill] sm:$0xff]  ;;  %v10083_v9 = vpop.f32.mrf.mxu1 }
 0x204   : > { %v8417_v4 = vpop.f32.mrf.mxu0  ;;  %v7951_v62 = vadd.f32 %v10837_v57, %v10836_v53 }
 0x205   : > { %3493 = vst [vmem:[#allocation3 + $0x10] sm:$0xff] %v3477_v35  ;;  %v3448_v22 = vmax.f32 %v3336_v31, 0.0  ;;  %v3357_v18 = vadd.f32 %v8417_v4, %v3196_v48  ;;  %v3204_v35 = vadd.f32 %v7948_v39, %v10838_v10  ;;  %v7966_v31 = vadd.f32 %v9952_v30, %v9946_v50 }
 0x206   : > { %v3348_v59 = vpop.f32.mrf.mxu0 }
 0x207   : > { %v3478_v26 = vmax.f32 %v3448_v22, %v3450_v3  ;;  %v3349_v60 = vadd.f32 %v3348_v59, %v3188_v13  ;;  %v3453_v21 = vmax.f32 %v3357_v18, 0.0  ;;  %v10839_v3 = vld [vmem:[#allocation19_spill] sm:$0xff]  ;;  %v10840_v18 = vld [vmem:[#allocation21_spill] sm:$0xff]  ;;  %v10091_v59 = vpop.f32.mrf.mxu1 }
 0x208   : > { %v3532_v24 = vld [vmem:[#allocation3] ss:$2 sm:$0xff]  ;;  %v3548_v1 = vld [vmem:[#allocation3 + $0x1] ss:$2 sm:$0xff]  ;;  %v8418_v47 = vpop.f32.mrf.mxu0  ;;  %v3215_v22 = vadd.f32 %v7957_v14, %v10839_v3 }
 0x209   : > { %v10073_v38 = vmax.f32 %v3532_v24, %v3548_v1  ;;  %3494 = vst [vmem:[#allocation3 + $0x18] sm:$0xff] %v3478_v26  ;;  %v3451_v7 = vmax.f32 %v3349_v60, 0.0  ;;  %v3360_v25 = vadd.f32 %v8418_v47, %v3199_v61  ;;  %v10841_v13 = vld [vmem:[#allocation23_spill] sm:$0xff]  ;;  %v10842_v24 = vld [vmem:[#allocation16_spill] sm:$0xff]  ;;  %v10102_v53 = vpop.f32.mrf.mxu1 }
 0x20a   : > { %v3351_v17 = vpop.f32.mrf.mxu0  ;;  %v7960_v2 = vadd.f32 %v10841_v13, %v10840_v18  ;;  %v3207_v39 = vadd.f32 %v7951_v62, %v10842_v24 }
 0x20b   : > { %10833 = vst [vmem:[#allocation13_spill] sm:$0xff] %v10073_v38  ;;  %3572 = vst [vmem:[#allocation4 + $0x11] sm:$0xff] %v10073_v38  ;;  %v3479_v45 = vmax.f32 %v3451_v7, %v3453_v21  ;;  %v3352_v49 = vadd.f32 %v3351_v17, %v3191_v5  ;;  %v7469_v15 = vpack.c.bf16 %v10073_v38, %v10073_v38  ;;  %v3454_v41 = vmax.f32 %v3360_v25, 0.0  ;;  %v10844_v5 = vld [vmem:[#allocation28_spill] sm:$0xff]  ;;  %v10845_v17 = vld [vmem:[#allocation29_spill] sm:$0xff]  ;;  %v10112_v18 = vpop.f32.mrf.mxu1 }
 0x20c   : > { %v8421_v19 = vpop.f32.mrf.mxu0  ;;  %v3228_v21 = vadd.f32 %v7966_v31, %v10844_v5 }
 0x20d   : > { %3495 = vst [vmem:[#allocation3 + $0x20] sm:$0xff] %v3479_v45  ;;  %v3452_v23 = vmax.f32 %v3352_v49, 0.0  ;;  %v3373_v32 = vadd.f32 %v8421_v19, %v3212_v11  ;;  %3729 = vst [vmem:[#allocation2 + $0x28] sm:$0xf] %v7469_v15  ;;  %v7969_v11 = vadd.f32 %v9959_v36, %v10845_v17  ;;  %v10846_v45 = vld [vmem:[#allocation24_spill] sm:$0xff]  ;;  %v10847_v49 = vld [vmem:[#allocation26_spill] sm:$0xff] }
 0x20e   : > { %3768 = vst [vmem:[#allocation2 + $0x10] sm:$0xf] %v7469_v15  ;;  %v3364_v48 = vpop.f32.mrf.mxu0  ;;  %v7963_v15 = vadd.f32 %v10847_v49, %v10846_v45  ;;  %v10848_v36 = vld [vmem:[#allocation22_spill] sm:$0xff] }
 0x20f   : > { %v3480_v37 = vmax.f32 %v3452_v23, %v3454_v41  ;;  %v3365_v4 = vadd.f32 %v3364_v48, %v3204_v35  ;;  %v3457_v47 = vmax.f32 %v3373_v32, 0.0  ;;  %v3220_v10 = vadd.f32 %v7960_v2, %v10848_v36 }
 0x210   : > { %v3534_v26 = vld [vmem:[#allocation3 + $0x10] ss:$2 sm:$0xff]  ;;  %v3550_v60 = vld [vmem:[#allocation3 + $0x11] ss:$2 sm:$0xff]  ;;  %v8422_v61 = vpop.f32.mrf.mxu0  ;;  %v7978_v35 = vadd.f32 %v9995_v43, %v9990_v33 }
 0x211   : > { %v10094_v1 = vmax.f32 %v3534_v26, %v3550_v60  ;;  %3496 = vst [vmem:[#allocation3 + $0x28] sm:$0xff] %v3480_v37  ;;  %v3455_v50 = vmax.f32 %v3365_v4, 0.0  ;;  %v3376_v30 = vadd.f32 %v8422_v61, %v3215_v22  ;;  %v10849_v4 = vld [vmem:[#allocation30_spill] sm:$0xff]  ;;  %v7972_v22 = vadd.f32 %v9973_v56, %v9964_v46  ;;  %v10850_v60 = vld [vmem:[#allocation25_spill] sm:$0xff] }
 0x212   : > { %v3367_v58 = vpop.f32.mrf.mxu0  ;;  %v3581_v7 = vld [vmem:[#allocation4 + $0x10] sm:$0xff]  ;;  %v3231_v3 = vadd.f32 %v7969_v11, %v10849_v4  ;;  %v3223_v33 = vadd.f32 %v7963_v15, %v10850_v60  ;;  %v7981_v56 = vadd.f32 %v10005_v12, %v10000_v63  ;;  %v10126_v11 = vpop.f32.mrf.mxu1  ;;  %v10853_v15 = vld [vmem:[#allocation31_spill] sm:$0xff] }
 0x213   : > { %10843 = vst [vmem:[#allocation18_spill] sm:$0xff] %v10094_v1  ;;  %v3793_v25 = vld [vmem:[#allocation4 + $0x12] sm:$0xff]  ;;  %3573 = vst [vmem:[#allocation4 + $0x21] sm:$0xff] %v10094_v1  ;;  %v3481_v8 = vmax.f32 %v3455_v50, %v3457_v47  ;;  %v3368_v51 = vadd.f32 %v3367_v58, %v3207_v39  ;;  %v7451_v14 = vpack.c.bf16 %v3581_v7, %v3581_v7  ;;  %v3458_v41 = vmax.f32 %v3376_v30, 0.0 }
 0x214   : > { %v8425_v57 = vpop.f32.mrf.mxu0  ;;  %v7470_v62 = vpack.c.bf16 %v10094_v1, %v10094_v1  ;;  %v7487_v19 = vpack.c.bf16 %v3793_v25, %v3793_v25  ;;  %v3244_v50 = vadd.f32 %v7978_v35, %v9978_v34  ;;  %v8889_v7 = vld [vmem:[%s10772_s3 + $0xb8] sm:$0xff]  }
 0x215   : > { %3497 = vst [vmem:[#allocation3 + $0x30] sm:$0xff] %v3481_v8  ;;  %v3456_v23 = vmax.f32 %v3368_v51, 0.0  ;;  %v3389_v32 = vadd.f32 %v8425_v57, %v3228_v21  ;;  %3623 = vst [vmem:[#allocation2 + $0x24] sm:$0xf] %v7451_v14  ;;  %v10852_v25 = vld [vmem:[#allocation35_spill] sm:$0xff]  ;;  %v3236_v57 = vadd.f32 %v7972_v22, %v10853_v15  ;;  %v8891_v22 = vld [vmem:[%s10772_s3 + $0xb0] sm:$0xff]  }
 0x216   : > { %3662 = vst [vmem:[#allocation2 + $0xc] sm:$0xf] %v7451_v14  ;;  %v3380_v31 = vpop.f32.mrf.mxu0  ;;  %3769 = vst [vmem:[#allocation2 + $0x34] sm:$0xf] %v7470_v62  ;;  %v7975_v17 = vadd.f32 %v9985_v52, %v10852_v25  ;;  %v8874_v51 = vld [vmem:[#allocation2 + $0x4] ss:$36 sps:$4 sm:$0xff]  }
 0x217   : > { %3874 = vst [vmem:[#allocation2 + $0x14] sm:$0xf] %v7487_v19  ;;  %3730 = vst [vmem:[#allocation2 + $0x4c] sm:$0xf] %v7470_v62  ;;  %v3482_v48 = vmax.f32 %v3456_v23, %v3458_v41  ;;  %v3381_v37 = vadd.f32 %v3380_v31, %v3220_v10  ;;  %v3461_v61 = vmax.f32 %v3389_v32, 0.0  ;;  %v8890_v52 = vld [vmem:[%s10772_s3 + $0xf0] sm:$0xff]   ;;  %v7990_v41 = vadd.f32 %v10052_v44, %v10046_v6 }
 0x218   : > { %3784 = vst [vmem:[#allocation2 + $0x1c] sm:$0xf] %v7470_v62  ;;  %3835 = vst [vmem:[#allocation2 + $0x2c] sm:$0xf] %v7487_v19  ;;  %v3536_v13 = vld [vmem:[#allocation3 + $0x20] ss:$2 sm:$0xff]  ;;  %v8426_v26 = vpop.f32.mrf.mxu0  ;;  %4737 = vmatprep.mubr.bf16.mxu1 %v8874_v51  ;;  %v7984_v31 = vadd.f32 %v10021_v27, %v10010_v29  ;;  %v7890_v27 = vadd.f32 %v10017_v54, %v10012_v40  ;;  %v7987_v54 = vadd.f32 %v10036_v28, %v10030_v20 }
 0x219   : > { %v3552_v2 = vld [vmem:[#allocation3 + $0x21] ss:$2 sm:$0xff]  ;;  %3498 = vst [vmem:[#allocation3 + $0x38] sm:$0xff] %v3482_v48  ;;  %v3459_v24 = vmax.f32 %v3381_v37, 0.0  ;;  %v3392_v39 = vadd.f32 %v8426_v26, %v3231_v3  ;;  %v10854_v62 = vld [vmem:[#allocation10_spill] sm:$0xff]  ;;  %v8001_v48 = vpop.f32.mrf.mxu1 }
 0x21a   : > { %v10115_v43 = vmax.f32 %v3536_v13, %v3552_v2  ;;  %v3383_v47 = vpop.f32.mrf.mxu0  ;;  %v3794_v30 = vld [vmem:[#allocation4 + $0x22] sm:$0xff]  ;;  %v10855_v19 = vld [vmem:[#allocation11_spill] sm:$0xff] }
 0x21b   : > { %v3582_v58 = vld [vmem:[#allocation4 + $0x20] sm:$0xff]  ;;  %v3483_v46 = vmax.f32 %v3459_v24, %v3461_v61  ;;  %v3384_v5 = vadd.f32 %v3383_v47, %v3223_v33  ;;  %v7488_v21 = vpack.c.bf16 %v3794_v30, %v3794_v30  ;;  %v3462_v12 = vmax.f32 %v3392_v39, 0.0  ;;  %5194 = vst [vmem:[#allocation2 + $0x4] sm:$0xf] %v10855_v19  ;;  %v8895_v29 = vld [vmem:[%s10772_s3 + $0xe8] sm:$0xff]  }
 0x21c   : > { %10851 = vst [vmem:[#allocation20_spill] sm:$0xff] %v10115_v43  ;;  %3574 = vst [vmem:[#allocation4 + $0x31] sm:$0xff] %v10115_v43  ;;  %v8429_v34 = vpop.f32.mrf.mxu0  ;;  %v8872_v8 = vld [vmem:[#allocation2] ss:$36 sps:$4 sm:$0xff]   ;;  %v7452_v14 = vpack.c.bf16 %v3582_v58, %v3582_v58  ;;  %v7471_v63 = vpack.c.bf16 %v10115_v43, %v10115_v43  ;;  %v3260_v61 = vadd.f32 %v7990_v41, %v9998_v16  ;;  %v10165_v16 = vld [vmem:[%s10772_s3 + $0x230] sm:$0xff]  }
 0x21d   : > { %3499 = vst [vmem:[#allocation3 + $0x40] sm:$0xff] %v3483_v46  ;;  %v3460_v45 = vmax.f32 %v3384_v5, 0.0  ;;  %v3405_v49 = vadd.f32 %v8429_v34, %v3244_v50  ;;  %5088 = vst [vmem:[#allocation2] sm:$0xf] %v10854_v62  ;;  %v10856_v10 = vld [vmem:[#allocation36_spill] sm:$0xff]  ;;  %4738 = vmatmul.mubr.bf16.vlgmr.msra.gmra.mxu1 %v8872_v8  ;;  %v7993_v47 = vadd.f32 %v10070_v0, %v10062_v42  ;;  %v8003_v42 = vpop.f32.mrf.mxu1  ;;  %v10859_v8 = vld [vmem:[#allocation37_spill] sm:$0xff] }
 0x21e   : > { %3875 = vst [vmem:[#allocation2 + $0x38] sm:$0xf] %v7488_v21  ;;  %3836 = vst [vmem:[#allocation2 + $0x50] sm:$0xf] %v7488_v21  ;;  %v3396_v23 = vpop.f32.mrf.mxu0  ;;  %v3247_v35 = vadd.f32 %v7981_v56, %v10856_v10  ;;  %v10857_v44 = vld [vmem:[#allocation32_spill] sm:$0xff]  ;;  %8071 = vmatpush3.bf16.msra.mxu1 %v8889_v7  ;;  %v3252_v51 = vadd.f32 %v7984_v31, %v10859_v8  ;;  %v10863_v19 = vld [vmem:[#allocation39_spill] sm:$0xff] }
 0x21f   : > { %3890 = vst [vmem:[#allocation2 + $0x20] sm:$0xf] %v7488_v21  ;;  %3624 = vst [vmem:[#allocation2 + $0x48] sm:$0xf] %v7452_v14  ;;  %v3484_v32 = vmax.f32 %v3460_v45, %v3462_v12  ;;  %v3397_v36 = vadd.f32 %v3396_v23, %v3236_v57  ;;  %v3239_v3 = vadd.f32 %v7975_v17, %v10857_v44  ;;  %v3465_v2 = vmax.f32 %v3405_v49, 0.0  ;;  %v8897_v56 = vld [vmem:[%s10772_s3 + $0xa8] sm:$0xff]   ;;  %v8004_v41 = vpop.f32.mrf.mxu1 }
 0x220   : > { %3731 = vst [vmem:[#allocation2 + $0x70] sm:$0xf] %v7471_v63  ;;  %3663 = vst [vmem:[#allocation2 + $0x30] sm:$0xf] %v7452_v14  ;;  %v3538_v37 = vld [vmem:[#allocation3 + $0x30] ss:$2 sm:$0xff]  ;;  %v8430_v6 = vpop.f32.mrf.mxu0  ;;  %8072 = vmatprep.subr.bf16.mxu1 %v8890_v52  ;;  %v3263_v52 = vadd.f32 %v7993_v47, %v10863_v19 }
 0x221   : > { %3678 = vst [vmem:[#allocation2 + $0x18] sm:$0xf] %v7452_v14  ;;  %3770 = vst [vmem:[#allocation2 + $0x58] sm:$0xf] %v7471_v63  ;;  %v3554_v4 = vld [vmem:[#allocation3 + $0x31] ss:$2 sm:$0xff]  ;;  %v3408_v60 = vadd.f32 %v8430_v6, %v3247_v35 }
 0x222   : > { %3785 = vst [vmem:[#allocation2 + $0x40] sm:$0xf] %v7471_v63  ;;  %v10145_v13 = vmax.f32 %v3538_v37, %v3554_v4  ;;  %3500 = vst [vmem:[#allocation3 + $0x48] sm:$0xff] %v3484_v32  ;;  %v3463_v26 = vmax.f32 %v3397_v36, 0.0  ;;  %v3399_v33 = vpop.f32.mrf.mxu0  ;;  %v8898_v40 = vld [vmem:[%s10772_s3 + $0xe0] sm:$0xff]   ;;  %8073 = vmatpush3.bf16.msra.mxu1 %v8891_v22  ;;  %v8002_v63 = vadd.f32 %v8001_v48, %v10126_v11  ;;  %v10861_v12 = vld [vmem:[#allocation42_spill] sm:$0xff] }
 0x223   : > { %v3583_v24 = vld [vmem:[#allocation4 + $0x30] sm:$0xff]  ;;  %v3400_v30 = vadd.f32 %v3399_v33, %v3239_v3  ;;  %v3466_v25 = vmax.f32 %v3408_v60, 0.0  ;;  %8074 = vmatprep.subr.bf16.mxu1 %v8895_v29  ;;  %v10172_v28 = vld [vmem:[#allocation2 + $0x8] ss:$36 sps:$4 sm:$0xff]   ;;  %v7893_v45 = vadd.f32 %v10861_v12, %v10023_v55  ;;  %v7996_v11 = vadd.f32 %v10091_v59, %v10083_v9  ;;  %v10865_v35 = vld [vmem:[#allocation27_spill] sm:$0xff] }
 0x224   : > { %10858 = vst [vmem:[#allocation15_spill] sm:$0xff] %v10145_v13  ;;  %v3795_v39 = vld [vmem:[#allocation4 + $0x32] sm:$0xff]  ;;  %3575 = vst [vmem:[#allocation4 + $0x41] sm:$0xff] %v10145_v13  ;;  %v3485_v50 = vmax.f32 %v3463_v26, %v3465_v2  ;;  %v7453_v58 = vpack.c.bf16 %v3583_v24, %v3583_v24  ;;  %v8433_v0 = vpop.f32.mrf.mxu0  ;;  %v7472_v21 = vpack.c.bf16 %v10145_v13, %v10145_v13  ;;  %v10860_v20 = vld [vmem:[#allocation8_spill] sm:$0xff] }
 0x225   : > { %v8879_v46 = vld [vmem:[#allocation2 + $0x10] ss:$36 sps:$4 sm:$0xff]   ;;  %v7489_v7 = vpack.c.bf16 %v3795_v39, %v3795_v39  ;;  %v3464_v17 = vmax.f32 %v3400_v30, 0.0  ;;  %v3421_v34 = vadd.f32 %v8433_v0, %v3260_v61  ;;  %v3115_v14 = vadd.f32 %v7890_v27, %v10860_v20  ;;  %v10862_v15 = vld [vmem:[#allocation12_spill] sm:$0xff]  ;;  %v8903_v9 = vld [vmem:[%s10772_s3 + $0xd8] sm:$0xff]  }
 0x226   : > { %v8881_v5 = vld [vmem:[#allocation2 + $0x14] ss:$36 sps:$4 sm:$0xff]   ;;  %3501 = vst [vmem:[#allocation3 + $0x50] sm:$0xff] %v3485_v50  ;;  %3625 = vst [vmem:[#allocation2 + $0x6c] sm:$0xf] %v7453_v58  ;;  %v3412_v49 = vpop.f32.mrf.mxu0  ;;  %8075 = vmatpush3.bf16.msra.mxu1 %v8897_v56  ;;  %v8900_v31 = vld [vmem:[%s10772_s3 + $0xa0] sm:$0xff]   ;;  %v8005_v29 = vadd.f32 %v8004_v41, %v8003_v42  ;;  %v7999_v50 = vadd.f32 %v10112_v18, %v10102_v53 }
 0x227   : > { %3664 = vst [vmem:[#allocation2 + $0x54] sm:$0xf] %v7453_v58  ;;  %3679 = vst [vmem:[#allocation2 + $0x3c] sm:$0xf] %v7453_v58  ;;  %4867 = vmatprep.mubr.bf16.mxu0 %v8881_v5  ;;  %v3486_v57 = vmax.f32 %v3464_v17, %v3466_v25  ;;  %v3413_v62 = vadd.f32 %v3412_v49, %v3252_v51  ;;  %v10864_v36 = vld [vmem:[#allocation38_spill] sm:$0xff]  ;;  %v3469_v37 = vmax.f32 %v3421_v34, 0.0  ;;  %8076 = vmatprep.subr.bf16.mxu1 %v8898_v40 }
 0x228   : > { %3771 = vst [vmem:[#allocation2 + $0x7c] sm:$0xf] %v7472_v21  ;;  %3876 = vst [vmem:[#allocation2 + $0x5c] sm:$0xf] %v7489_v7  ;;  %4868 = vmatmul.mubr.bf16.vlgmr.msra.gmra.mxu0 %v8879_v46  ;;  %v8434_v32 = vpop.f32.mrf.mxu0  ;;  %v3255_v10 = vadd.f32 %v7987_v54, %v10864_v36  ;;  %v8905_v59 = vld [vmem:[%s10772_s3 + $0x228] sm:$0xff]   ;;  %v3276_v2 = vadd.f32 %v8002_v63, %v3115_v14  ;;  %v8906_v24 = vld [vmem:[%s10772_s3 + $0x98] sm:$0xff]  }
 0x229   : > { %3732 = vst [vmem:[#allocation2 + $0x94] sm:$0xf] %v7472_v21  ;;  %3786 = vst [vmem:[#allocation2 + $0x64] sm:$0xf] %v7472_v21  ;;  %v3540_v55 = vld [vmem:[#allocation3 + $0x40] ss:$2 sm:$0xff]  ;;  %8440 = vmatpush3.bf16.msra.mxu0 %v10865_v35  ;;  %v3424_v6 = vadd.f32 %v8434_v32, %v3263_v52 }
 0x22a   : > { %3837 = vst [vmem:[#allocation2 + $0x74] sm:$0xf] %v7489_v7  ;;  %3891 = vst [vmem:[#allocation2 + $0x44] sm:$0xf] %v7489_v7  ;;  %v3556_v23 = vld [vmem:[#allocation3 + $0x41] ss:$2 sm:$0xff]  ;;  %8441 = vmatprep.subr.bf16.mxu0 %v10165_v16  ;;  %v3415_v22 = vpop.f32.mrf.mxu0  ;;  %8077 = vmatpush3.bf16.msra.mxu1 %v8900_v31 }
 0x22b   : > { %5300 = vst [vmem:[#allocation2 + $0x8] sm:$0xf] %v10862_v15  ;;  %v10187_v48 = vmax.f32 %v3540_v55, %v3556_v23  ;;  %3502 = vst [vmem:[#allocation3 + $0x58] sm:$0xff] %v3486_v57  ;;  %v3467_v4 = vmax.f32 %v3413_v62, 0.0  ;;  %v10867_v44 = vld [vmem:[#allocation9_spill] sm:$0xff]  ;;  %v3796_v26 = vld [vmem:[#allocation4 + $0x42] sm:$0xff]  ;;  %v3416_v33 = vadd.f32 %v3415_v22, %v3255_v10  ;;  %8078 = vmatprep.subr.bf16.mxu1 %v8903_v9 }
 0x22c   : > { %v3118_v3 = vadd.f32 %v7893_v45, %v10867_v44  ;;  %v3584_v60 = vld [vmem:[#allocation4 + $0x40] sm:$0xff]  ;;  %v7490_v61 = vpack.c.bf16 %v3796_v26, %v3796_v26  ;;  %v8907_v39 = vld [vmem:[%s10772_s3 + $0xd0] sm:$0xff]   ;;  %v8437_v30 = vpop.f32.mrf.mxu0  ;;  %v3470_v42 = vmax.f32 %v3424_v6, 0.0  ;;  %v8913_v49 = vld [vmem:[%s10772_s3 + $0xc8] sm:$0xff]  }
 0x22d   : > { %10866 = vst [vmem:[#allocation17_spill] sm:$0xff] %v10187_v48  ;;  %3576 = vst [vmem:[#allocation4 + $0x51] sm:$0xff] %v10187_v48  ;;  %v3487_v27 = vmax.f32 %v3467_v4, %v3469_v37  ;;  %v8908_v47 = vld [vmem:[%s10772_s3 + $0x220] sm:$0xff]   ;;  %v8882_v58 = vld [vmem:[#allocation2 + $0x4c] ss:$36 sps:$4 sm:$0xff]   ;;  %v7454_v40 = vpack.c.bf16 %v3584_v60, %v3584_v60  ;;  %v7473_v54 = vpack.c.bf16 %v10187_v48, %v10187_v48  ;;  %8442 = vmatpush3.bf16.msra.mxu0 %v10165_v16 }
 0x22e   : > { %v8884_v56 = vld [vmem:[#allocation2 + $0x48] ss:$36 sps:$4 sm:$0xff]   ;;  %v3468_v0 = vmax.f32 %v3416_v33, 0.0  ;;  %v3437_v46 = vadd.f32 %v8437_v30, %v3276_v2  ;;  %3877 = vst [vmem:[#allocation2 + $0x80] sm:$0xf] %v7490_v61  ;;  %8443 = vmatprep.subr.bf16.mxu0 %v8905_v59  ;;  %v3428_v53 = vpop.f32.mrf.mxu0  ;;  %4745 = vmatprep.mubr.bf16.mxu1 %v8882_v58  ;;  %v3279_v7 = vadd.f32 %v8005_v29, %v3118_v3  ;;  %v8909_v20 = vld [vmem:[%s10772_s3 + $0x90] sm:$0xff]  }
 0x22f   : > { %3503 = vst [vmem:[#allocation3 + $0x60] sm:$0xff] %v3487_v27  ;;  %v10868_v5 = vld [vmem:[#allocation40_spill] sm:$0xff]  ;;  %3892 = vst [vmem:[#allocation2 + $0x68] sm:$0xf] %v7490_v61  ;;  %4746 = vmatmul.mubr.bf16.gmra.mxu1 %v8884_v56  ;;  %v10869_v8 = vld [vmem:[#allocation41_spill] sm:$0xff] }
 0x230   : > { %v3268_v21 = vadd.f32 %v7996_v11, %v10868_v5  ;;  %3838 = vst [vmem:[#allocation2 + $0x98] sm:$0xf] %v7490_v61  ;;  %3626 = vst [vmem:[#allocation2 + $0x90] sm:$0xf] %v7454_v40  ;;  %v3488_v18 = vmax.f32 %v3468_v0, %v3470_v42  ;;  %v8438_v34 = vpop.f32.mrf.mxu0  ;;  %v3271_v51 = vadd.f32 %v7999_v50, %v10869_v8  ;;  %8079 = vmatpush3.bf16.msra.mxu1 %v8906_v24  ;;  %v8914_v15 = vld [vmem:[%s10772_s3 + $0x218] sm:$0xff]   ;;  %v8915_v55 = vld [vmem:[%s10772_s3 + $0x88] sm:$0xff]  }
 0x231   : > { %3733 = vst [vmem:[#allocation2 + $0xb8] sm:$0xf] %v7473_v54  ;;  %3665 = vst [vmem:[#allocation2 + $0x78] sm:$0xf] %v7454_v40  ;;  %8444 = vmatpush3.bf16.msra.mxu0 %v8905_v59  ;;  %v3473_v63 = vmax.f32 %v3437_v46, 0.0  ;;  %v3440_v45 = vadd.f32 %v8438_v34, %v3279_v7  ;;  %8080 = vmatprep.subr.bf16.mxu1 %v8907_v39  ;;  %v8919_v23 = vld [vmem:[%s10772_s3 + $0xc0] sm:$0xff]  }
 0x232   : > { %3680 = vst [vmem:[#allocation2 + $0x60] sm:$0xf] %v7454_v40  ;;  %3772 = vst [vmem:[#allocation2 + $0xa0] sm:$0xf] %v7473_v54  ;;  %v3429_v16 = vadd.f32 %v3428_v53, %v3268_v21  ;;  %v3542_v25 = vld [vmem:[#allocation3 + $0x50] ss:$2 sm:$0xff]  ;;  %8445 = vmatprep.subr.bf16.mxu0 %v8908_v47  ;;  %v3431_v57 = vpop.f32.mrf.mxu0 }
 0x233   : > { %3787 = vst [vmem:[#allocation2 + $0x88] sm:$0xf] %v7473_v54  ;;  %v3558_v17 = vld [vmem:[#allocation3 + $0x51] ss:$2 sm:$0xff]  ;;  %3504 = vst [vmem:[#allocation3 + $0x68] sm:$0xff] %v3488_v18  ;;  %v3432_v11 = vadd.f32 %v3431_v57, %v3271_v51  ;;  %v3474_v31 = vmax.f32 %v3440_v45, 0.0 }
 0x234   : > { %v10217_v14 = vmax.f32 %v3542_v25, %v3558_v17  ;;  %v3471_v12 = vmax.f32 %v3429_v16, 0.0  ;;  %v3585_v62 = vld [vmem:[#allocation4 + $0x50] sm:$0xff]  ;;  %v8888_v36 = vld [vmem:[#allocation2 + $0x58] ss:$36 sps:$4 sm:$0xff]   ;;  %8081 = vmatpush3.bf16.msra.mxu1 %v8909_v20  ;;  %v8921_v44 = vld [vmem:[%s10772_s3 + $0x80] sm:$0xff]  }
 0x235   : > { %v3797_v19 = vld [vmem:[#allocation4 + $0x52] sm:$0xff]  ;;  %v7455_v41 = vpack.c.bf16 %v3585_v62, %v3585_v62  ;;  %v8885_v32 = vld [vmem:[#allocation2 + $0x5c] ss:$36 sps:$4 sm:$0xff]   ;;  %8446 = vmatpush3.bf16.msra.mxu0 %v8908_v47  ;;  %v3472_v37 = vmax.f32 %v3432_v11, 0.0  ;;  %8082 = vmatprep.subr.bf16.mxu1 %v8913_v49  ;;  %v8926_v2 = vld [vmem:[%s10772_s3 + $0x208] sm:$0xff]  }
 0x236   : > { %10870 = vst [vmem:[#allocation14_spill] sm:$0xff] %v10217_v14  ;;  %3577 = vst [vmem:[#allocation4 + $0x61] sm:$0xff] %v10217_v14  ;;  %v3489_v52 = vmax.f32 %v3471_v12, %v3473_v63  ;;  %v7474_v10 = vpack.c.bf16 %v10217_v14, %v10217_v14  ;;  %v7491_v35 = vpack.c.bf16 %v3797_v19, %v3797_v19  ;;  %8447 = vmatprep.subr.bf16.mxu0 %v8914_v15  ;;  %v8920_v4 = vld [vmem:[%s10772_s3 + $0x210] sm:$0xff]   ;;  %v8925_v22 = vld [vmem:[%s10772_s3 + $0x1f8] sm:$0xff]  }
 0x237   : > { %3627 = vst [vmem:[#allocation2 + $0xb4] sm:$0xf] %v7455_v41  ;;  %3666 = vst [vmem:[#allocation2 + $0x9c] sm:$0xf] %v7455_v41  ;;  %4875 = vmatprep.mubr.bf16.mxu0 %v8885_v32  ;;  %v3490_v6 = vmax.f32 %v3472_v37, %v3474_v31  ;;  %v8932_v39 = vld [vmem:[%s10772_s3 + $0x200] sm:$0xff]   ;;  %v5267_v17 = vld [vmem:[#allocation4 + $0x92] sm:$0xff] }
 0x238   : > { %3505 = vst [vmem:[#allocation3 + $0x70] sm:$0xff] %v3489_v52  ;;  %3681 = vst [vmem:[#allocation2 + $0x84] sm:$0xf] %v7455_v41  ;;  %4876 = vmatmul.mubr.bf16.gmra.mxu0 %v8888_v36  ;;  %8083 = vmatpush3.bf16.msra.mxu1 %v8915_v55  ;;  %v8892_v61 = vld [vmem:[#allocation2 + $0x94] ss:$36 sps:$4 sm:$0xff]   ;;  %v7557_v34 = vpack.c.bf16 %v5267_v17, %v5267_v17  ;;  %v10873_v62 = vld [vmem:[#allocation33_spill] sm:$0xff] }
 0x239   : > { %3773 = vst [vmem:[#allocation2 + $0xc4] sm:$0xf] %v7474_v10  ;;  %3878 = vst [vmem:[#allocation2 + $0xa4] sm:$0xf] %v7491_v35  ;;  %8448 = vmatpush3.bf16.msra.mxu0 %v8914_v15  ;;  %8084 = vmatprep.subr.bf16.mxu1 %v8919_v23  ;;  %v8918_v25 = vld [vmem:[#allocation2 + $0xc] ss:$36 sps:$4 sm:$0xff]  }
 0x23a   : > { %3893 = vst [vmem:[#allocation2 + $0x8c] sm:$0xf] %v7491_v35  ;;  %3734 = vst [vmem:[#allocation2 + $0xdc] sm:$0xf] %v7474_v10  ;;  %v3544_v9 = vld [vmem:[#allocation3 + $0x60] ss:$2 sm:$0xff]  ;;  %8449 = vmatprep.subr.bf16.mxu0 %v8920_v4  ;;  %4753 = vmatprep.mubr.bf16.mxu1 %v8892_v61 }
 0x23b   : > { %3788 = vst [vmem:[#allocation2 + $0xac] sm:$0xf] %v7474_v10  ;;  %3839 = vst [vmem:[#allocation2 + $0xbc] sm:$0xf] %v7491_v35  ;;  %v3560_v59 = vld [vmem:[#allocation3 + $0x61] ss:$2 sm:$0xff] }
 0x23c   : > { %v10240_v3 = vmax.f32 %v3544_v9, %v3560_v59  ;;  %3506 = vst [vmem:[#allocation3 + $0x78] sm:$0xff] %v3490_v6  ;;  %8085 = vmatpush3.bf16.msra.mxu1 %v8921_v44  ;;  %v8929_v8 = vld [vmem:[%s10772_s3 + $0x1b8] sm:$0xff]   ;;  %v8931_v51 = vld [vmem:[%s10772_s3 + $0x1f0] sm:$0xff]   ;;  %v8930_v49 = vld [vmem:[#allocation2 + $0x20] ss:$36 sps:$4 sm:$0xff]  }
 0x23d   : > { %v3798_v26 = vld [vmem:[#allocation4 + $0x62] sm:$0xff]  ;;  %8450 = vmatpush3.bf16.msra.mxu0 %v8920_v4  ;;  %8150 = vmatprep.subr.bf16.mxu1 %v8925_v22  ;;  %v8927_v45 = vld [vmem:[#allocation2 + $0x54] ss:$36 sps:$4 sm:$0xff]   ;;  %5151 = vst [vmem:[#allocation2 + $0x114] sm:$0xf] %v10873_v62 }
 0x23e   : > { %10871 = vst [vmem:[#allocation19_spill] sm:$0xff] %v10240_v3  ;;  %v3586_v60 = vld [vmem:[#allocation4 + $0x60] sm:$0xff]  ;;  %3578 = vst [vmem:[#allocation4 + $0x71] sm:$0xff] %v10240_v3  ;;  %v7492_v29 = vpack.c.bf16 %v3798_v26, %v3798_v26  ;;  %v7475_v33 = vpack.c.bf16 %v10240_v3, %v10240_v3  ;;  %v8894_v24 = vld [vmem:[#allocation2 + $0x90] ss:$36 sps:$4 sm:$0xff]   ;;  %8451 = vmatprep.subr.bf16.mxu0 %v8926_v2 }
 0x23f   : > { %v7456_v27 = vpack.c.bf16 %v3586_v60, %v3586_v60  ;;  %4754 = vmatmul.mubr.bf16.gmra.mxu1 %v8894_v24  ;;  %v8933_v57 = vld [vmem:[%s10772_s3 + $0x1b0] sm:$0xff]   ;;  %v8935_v52 = vld [vmem:[%s10772_s3 + $0x1e8] sm:$0xff]   ;;  %v8941_v11 = vld [vmem:[%s10772_s3 + $0x1e0] sm:$0xff]  }
 0x240   : > { %3879 = vst [vmem:[#allocation2 + $0xc8] sm:$0xf] %v7492_v29  ;;  %3840 = vst [vmem:[#allocation2 + $0xe0] sm:$0xf] %v7492_v29  ;;  %v8904_v46 = vld [vmem:[#allocation2 + $0xa0] ss:$36 sps:$4 sm:$0xff]  }
 0x241   : > { %3894 = vst [vmem:[#allocation2 + $0xb0] sm:$0xf] %v7492_v29  ;;  %3628 = vst [vmem:[#allocation2 + $0xd8] sm:$0xf] %v7456_v27  ;;  %8452 = vmatpush3.bf16.msra.mxu0 %v8926_v2  ;;  %v10874_v19 = vld [vmem:[#allocation34_spill] sm:$0xff]  ;;  %v8942_v36 = vld [vmem:[%s10772_s3 + $0x1a0] sm:$0xff]  }
 0x242   : > { %3735 = vst [vmem:[#allocation2 + $0x100] sm:$0xf] %v7475_v33  ;;  %3667 = vst [vmem:[#allocation2 + $0xc0] sm:$0xf] %v7456_v27  ;;  %8453 = vmatprep.subr.bf16.mxu0 %v8932_v39  ;;  %v8934_v41 = vld [vmem:[#allocation2 + $0x50] ss:$36 sps:$4 sm:$0xff]  }
 0x243   : > { %3682 = vst [vmem:[#allocation2 + $0xa8] sm:$0xf] %v7456_v27  ;;  %3774 = vst [vmem:[#allocation2 + $0xe8] sm:$0xf] %v7475_v33  ;;  %v3546_v47 = vld [vmem:[#allocation3 + $0x70] ss:$2 sm:$0xff] }
 0x244   : > { %3789 = vst [vmem:[#allocation2 + $0xd0] sm:$0xf] %v7475_v33  ;;  %v3562_v50 = vld [vmem:[#allocation3 + $0x71] ss:$2 sm:$0xff]  ;;  %v8936_v55 = vld [vmem:[#allocation2 + $0x68] ss:$36 sps:$4 sm:$0xff]  }
 0x245   : > { %v10254_v30 = vmax.f32 %v3546_v47, %v3562_v50  ;;  %v3587_v58 = vld [vmem:[#allocation4 + $0x70] sm:$0xff]  ;;  %8454 = vmatpush3.bf16.msra.mxu0 %v8932_v39  ;;  %v8944_v10 = vld [vmem:[%s10772_s3 + $0x1d8] sm:$0xff]   ;;  %v8952_v9 = vld [vmem:[%s10772_s3 + $0x1c8] sm:$0xff]  }
 0x246   : > { %v3799_v56 = vld [vmem:[#allocation4 + $0x72] sm:$0xff]  ;;  %v7457_v40 = vpack.c.bf16 %v3587_v58, %v3587_v58  ;;  %v8953_v59 = vld [vmem:[%s10772_s3 + $0x188] sm:$0xff]   ;;  %v8957_v22 = vld [vmem:[%s10772_s3 + $0x1c0] sm:$0xff]  }
 0x247   : > { %10872 = vst [vmem:[#allocation21_spill] sm:$0xff] %v10254_v30  ;;  %3579 = vst [vmem:[#allocation4 + $0x81] sm:$0xff] %v10254_v30  ;;  %v7483_v54 = vpack.c.bf16 %v10254_v30, %v10254_v30  ;;  %v7493_v42 = vpack.c.bf16 %v3799_v56, %v3799_v56  ;;  %v8901_v0 = vld [vmem:[#allocation2 + $0xa4] ss:$36 sps:$4 sm:$0xff]   ;;  %v8948_v35 = vld [vmem:[%s10772_s3 + $0x198] sm:$0xff]  }
 0x248   : > { %3629 = vst [vmem:[#allocation2 + $0xfc] sm:$0xf] %v7457_v40  ;;  %3668 = vst [vmem:[#allocation2 + $0xe4] sm:$0xf] %v7457_v40  ;;  %4883 = vmatprep.mubr.bf16.mxu0 %v8901_v0  ;;  %v8943_v31 = vld [vmem:[#allocation2 + $0x98] ss:$36 sps:$4 sm:$0xff]  }
 0x249   : > { %3683 = vst [vmem:[#allocation2 + $0xcc] sm:$0xf] %v7457_v40  ;;  %3775 = vst [vmem:[#allocation2 + $0x10c] sm:$0xf] %v7483_v54  ;;  %4884 = vmatmul.mubr.bf16.gmra.mxu0 %v8904_v46  ;;  %v8910_v16 = vld [vmem:[#allocation2 + $0xdc] ss:$36 sps:$4 sm:$0xff]  }
 0x24a   : > { %3880 = vst [vmem:[#allocation2 + $0xec] sm:$0xf] %v7493_v42  ;;  %3790 = vst [vmem:[#allocation2 + $0xf4] sm:$0xf] %v7483_v54  ;;  %4761 = vmatprep.mubr.bf16.mxu1 %v8910_v16  ;;  %v8937_v23 = vld [vmem:[#allocation2 + $0x9c] ss:$36 sps:$4 sm:$0xff]  }
 0x24b   : > { %3841 = vst [vmem:[#allocation2 + $0x104] sm:$0xf] %v7493_v42  ;;  %3895 = vst [vmem:[#allocation2 + $0xd4] sm:$0xf] %v7493_v42  ;;  %v8949_v37 = vld [vmem:[%s10772_s3 + $0x1d0] sm:$0xff]   ;;  %v8958_v26 = vld [vmem:[%s10772_s3 + $0x180] sm:$0xff]  }
 0x24c   : > { %v8950_v6 = vld [vmem:[%s10772_s3 + $0x190] sm:$0xff]   ;;  %v8956_v2 = vld [vmem:[#allocation2 + $0x1c] ss:$36 sps:$4 sm:$0xff]   ;;  %v8959_v29 = vld [vmem:[#allocation2 + $0x64] ss:$36 sps:$4 sm:$0xff]  }
 0x24d   : > { %v8954_v60 = vld [vmem:[#allocation2 + $0x18] ss:$36 sps:$4 sm:$0xff]   ;;  %v8961_v27 = vld [vmem:[#allocation2 + $0x60] ss:$36 sps:$4 sm:$0xff]   ;;  %v8962_v33 = vld [vmem:[#allocation2 + $0xac] ss:$36 sps:$4 sm:$0xff]  }
 0x24e   : > { %v3800_v5 = vld [vmem:[#allocation4 + $0x82] sm:$0xff]  ;;  %v8967_v50 = vld [vmem:[%s10774_s5 + $0x78] sm:$0xff]   ;;  %v8969_v56 = vld [vmem:[%s10774_s5 + $0x70] sm:$0xff]  }
 0x24f   : > { %v3588_v21 = vld [vmem:[#allocation4 + $0x80] sm:$0xff]  ;;  %v7501_v53 = vpack.c.bf16 %v3800_v5, %v3800_v5  ;;  %v8912_v7 = vld [vmem:[#allocation2 + $0xd8] ss:$36 sps:$4 sm:$0xff]   ;;  %v8971_v54 = vld [vmem:[%s10774_s5 + $0x30] sm:$0xff]  }
 0x250   : > { %v7465_v18 = vpack.c.bf16 %v3588_v21, %v3588_v21  ;;  %4762 = vmatmul.mubr.bf16.gmra.mxu1 %v8912_v7  ;;  %v8924_v63 = vld [vmem:[#allocation2 + $0xe8] ss:$36 sps:$4 sm:$0xff]   ;;  %v8968_v58 = vld [vmem:[%s10774_s5 + $0x38] sm:$0xff]   ;;  %v8974_v46 = vld [vmem:[%s10774_s5 + $0xf0] sm:$0xff]  }
 0x251   : > { %3881 = vst [vmem:[#allocation2 + $0x110] sm:$0xf] %v7501_v53  ;;  %3896 = vst [vmem:[#allocation2 + $0xf8] sm:$0xf] %v7501_v53  ;;  %4802 = vmatprep.mubr.bf16.mxu1 %v8918_v25  ;;  %v8965_v15 = vld [vmem:[#allocation2 + $0xf4] ss:$36 sps:$4 sm:$0xff]  }
 0x252   : > { %3669 = vst [vmem:[#allocation2 + $0x108] sm:$0xf] %v7465_v18  ;;  %3684 = vst [vmem:[#allocation2 + $0xf0] sm:$0xf] %v7465_v18  ;;  %v8940_v32 = vld [vmem:[#allocation2 + $0xb0] ss:$36 sps:$4 sm:$0xff]  }
 0x253   : > { %5257 = vst [vmem:[#allocation2 + $0x118] sm:$0xf] %v10874_v19  ;;  %v8951_v44 = vld [vmem:[#allocation2 + $0xe0] ss:$36 sps:$4 sm:$0xff]   ;;  %v8964_v61 = vld [vmem:[#allocation2 + $0xa8] ss:$36 sps:$4 sm:$0xff]  }
 0x254   : > { %v8970_v40 = vld [vmem:[%s10774_s5 + $0xf8] sm:$0xff]   ;;  %v8973_v0 = vld [vmem:[%s10774_s5 + $0x68] sm:$0xff]   ;;  %v8976_v21 = vld [vmem:[%s10774_s5 + $0xb0] sm:$0xff]  }
 0x255   : > { %v8972_v42 = vld [vmem:[%s10774_s5 + $0xb8] sm:$0xff]   ;;  %8242 = vmatprep.subr.bf16.mxu0 %v8970_v40  ;;  %v8975_v5 = vld [vmem:[%s10774_s5 + $0x28] sm:$0xff]   ;;  %v8977_v53 = vld [vmem:[%s10774_s5 + $0x60] sm:$0xff]  }
 0x256   : > { %v8978_v18 = vld [vmem:[%s10774_s5 + $0xe8] sm:$0xff]   ;;  %v8979_v16 = vld [vmem:[%s10774_s5 + $0x20] sm:$0xff]   ;;  %v8981_v25 = vld [vmem:[%s10774_s5 + $0x58] sm:$0xff]  }
 0x257   : > { %v8980_v7 = vld [vmem:[%s10774_s5 + $0xa8] sm:$0xff]   ;;  %v8982_v17 = vld [vmem:[%s10774_s5 + $0xe0] sm:$0xff]  }
 0x258   : > { %v8922_v20 = vld [vmem:[#allocation2 + $0xec] ss:$36 sps:$4 sm:$0xff]   ;;  %v8945_v12 = vld [vmem:[#allocation2 + $0xf8] ss:$36 sps:$4 sm:$0xff]   ;;  %4803 = vmatmul.mubr.bf16.vlgmr.msra.gmra.mxu1 %v10172_v28  ;;  %v8993_v62 = vld [vmem:[%s10774_s5 + $0x40] sm:$0xff]  }
 0x259   : > { %4891 = vmatprep.mubr.bf16.mxu0 %v8922_v20  ;;  %5363 = vst [vmem:[#allocation2 + $0x11c] sm:$0xf] %v7557_v34  ;;  %4810 = vmatprep.mubr.bf16.mxu1 %v8927_v45  ;;  %v8939_v28 = vld [vmem:[%s10772_s3 + $0x1a8] sm:$0xff]   ;;  %v3931_v24 = vld [vmem:[#allocation2 + $0xf0] sm:$0xff]  ;;  %v8983_v34 = vld [vmem:[%s10774_s5 + $0x18] sm:$0xff]  }
 0x25a   : > { %4892 = vmatmul.mubr.bf16.gmra.mxu0 %v8924_v63  ;;  %8151 = vmatpush3.bf16.msra.mxu1 %v8929_v8  ;;  %v8946_v4 = vld [vmem:[#allocation2 + $0xe4] ss:$36 sps:$4 sm:$0xff]   ;;  %v3936_v39 = vld [vmem:[#allocation2 + $0x114] sm:$0xff] }
 0x25b   : > { %8455 = vmatprep.mubr.bf16.mxu0 %v8930_v49  ;;  %8152 = vmatprep.subr.bf16.mxu1 %v8931_v51  ;;  %v7101_v47 = vcombine.low %v3931_v24, %v3936_v39  ;;  %v8984_v8 = vld [vmem:[%s10774_s5 + $0xa0] sm:$0xff]   ;;  %v8985_v51 = vld [vmem:[%s10774_s5 + $0x50] sm:$0xff]   ;;  %v8986_v20 = vld [vmem:[%s10774_s5 + $0xd8] sm:$0xff]  }
 0x25c   : > { %v8987_v63 = vld [vmem:[%s10774_s5 + $0x10] sm:$0xff]   ;;  %v8989_v45 = vld [vmem:[%s10774_s5 + $0x48] sm:$0xff]  }
 0x25d   : > { %v8990_v49 = vld [vmem:[%s10774_s5 + $0xd0] sm:$0xff]   ;;  %v8994_v19 = vld [vmem:[%s10774_s5 + $0xc8] sm:$0xff]  }
 0x25e   : > { %8153 = vmatpush3.bf16.msra.mxu1 %v8933_v57  ;;  %v8992_v57 = vld [vmem:[%s10774_s5 + $0x90] sm:$0xff]  }
 0x25f   : > { %8154 = vmatprep.subr.bf16.mxu1 %v8935_v52  ;;  %v8995_v52 = vld [vmem:[%s10774_s5] sm:$0xff]  }
 0x260   : > { %4811 = vmatmul.mubr.bf16.gmra.mxu1 %v8934_v41  ;;  %v9001_v41 = vld [vmem:[%s10774_s5 + $0x178] sm:$0xff]  }
 0x261   : > { %4818 = vmatprep.mubr.bf16.mxu1 %v8937_v23  ;;  %v9008_v23 = vld [vmem:[%s10774_s5 + $0x1f8] sm:$0xff]  }
 0x262   : > { %8456 = vmatmul.mubr.bf16.vlgmr.msra.gmra.mxu0 %v8936_v55  ;;  %8155 = vmatpush3.bf16.msra.mxu1 %v8939_v28  ;;  %v8996_v28 = vld [vmem:[%s10774_s5 + $0x88] sm:$0xff]   ;;  %v9002_v55 = vld [vmem:[%s10774_s5 + $0x80] sm:$0xff]  }
 0x263   : > { %8459 = vmatprep.mubr.bf16.mxu0 %v8940_v32  ;;  %8156 = vmatprep.subr.bf16.mxu1 %v8941_v11  ;;  %v9000_v11 = vld [vmem:[%s10774_s5 + $0xc0] sm:$0xff]  }
 0x264   : > { %8243 = vmatpush3.bf16.msra.mxu0 %v8972_v42 }
 0x265   : > { %8244 = vmatprep.subr.bf16.mxu0 %v8974_v46 }
 0x266   : > { %8157 = vmatpush3.bf16.msra.mxu1 %v8942_v36 }
 0x267   : > { %8158 = vmatprep.subr.bf16.mxu1 %v8944_v10 }
 0x268   : > { %4819 = vmatmul.mubr.bf16.gmra.mxu1 %v8943_v31  ;;  %8245 = vmatpush3.bf16.msra.mxu0 %v8976_v21 }
 0x269   : > { %4826 = vmatprep.mubr.bf16.mxu1 %v8946_v4  ;;  %8246 = vmatprep.subr.bf16.mxu0 %v8978_v18 }
 0x26a   : > { %8460 = vmatmul.mubr.bf16.gmra.mxu0 %v8945_v12  ;;  %8159 = vmatpush3.bf16.msra.mxu1 %v8948_v35  ;;  %v8988_v12 = vld [vmem:[%s10774_s5 + $0x98] sm:$0xff]  }
 0x26b   : > { %8160 = vmatprep.subr.bf16.mxu1 %v8949_v37 }
 0x26c   : > { %8247 = vmatpush3.bf16.msra.mxu0 %v8980_v7 }
 0x26d   : > { %8248 = vmatprep.subr.bf16.mxu0 %v8982_v17 }
 0x26e   : > { %8161 = vmatpush3.bf16.msra.mxu1 %v8950_v6 }
 0x26f   : > { %8162 = vmatprep.subr.bf16.mxu1 %v8952_v9 }
 0x270   : > { %4827 = vmatmul.mubr.bf16.gmra.mxu1 %v8951_v44  ;;  %8249 = vmatpush3.bf16.msra.mxu0 %v8984_v8 }
 0x271   : > { %4932 = vmatprep.mubr.bf16.mxu1 %v8956_v2  ;;  %8250 = vmatprep.subr.bf16.mxu0 %v8986_v20 }
 0x272   : > { %8163 = vmatpush3.bf16.msra.mxu1 %v8953_v59 }
 0x273   : > { %8164 = vmatprep.subr.bf16.mxu1 %v8957_v22 }
 0x274   : > { %8251 = vmatpush3.bf16.msra.mxu0 %v8988_v12 }
 0x275   : > { %8252 = vmatprep.subr.bf16.mxu0 %v8990_v49  ;;  %v10452_v49 = vld [vmem:[%s10773_s4] ss:$0 sm:$0xff] }
 0x276   : > { %8165 = vmatpush3.bf16.msra.mxu1 %v8958_v26 }
 0x277   : > { %8202 = vmatprep.subr.bf16.mxu1 %v8967_v50 }
 0x278   : > { %8253 = vmatpush3.bf16.msra.mxu0 %v8992_v57 }
 0x279   : > { %4933 = vmatmul.mubr.bf16.vlgmr.msra.gmra.mxu1 %v8954_v60  ;;  %8254 = vmatprep.subr.bf16.mxu0 %v8994_v19 }
 0x27a   : > { %4940 = vmatprep.mubr.bf16.mxu1 %v8959_v29  ;;  %8203 = vmatpush3.bf16.msra.mxu1 %v8968_v58 }
 0x27b   : > { %8204 = vmatprep.subr.bf16.mxu1 %v8969_v56 }
 0x27c   : > { %8255 = vmatpush3.bf16.msra.mxu0 %v8996_v28 }
 0x27d   : > { %8256 = vmatprep.subr.bf16.mxu0 %v9000_v11 }
 0x27e   : > { %8205 = vmatpush3.bf16.msra.mxu1 %v8971_v54 }
 0x27f   : > { %8206 = vmatprep.subr.bf16.mxu1 %v8973_v0 }
 0x280   : > { %8257 = vmatpush3.bf16.msra.mxu0 %v9002_v55 }
 0x281   : > { %4941 = vmatmul.mubr.bf16.gmra.mxu1 %v8961_v27  ;;  %8322 = vmatprep.subr.bf16.mxu0 %v9008_v23 }
 0x282   : > { %4948 = vmatprep.mubr.bf16.mxu1 %v8962_v33  ;;  %8207 = vmatpush3.bf16.msra.mxu1 %v8975_v5 }
 0x283   : > { %8208 = vmatprep.subr.bf16.mxu1 %v8977_v53 }
 0x286   : > { %8209 = vmatpush3.bf16.msra.mxu1 %v8979_v16 }
 0x287   : > { %8210 = vmatprep.subr.bf16.mxu1 %v8981_v25 }
 0x289   : > { %4949 = vmatmul.mubr.bf16.gmra.mxu1 %v8964_v61 }
 0x28a   : > { %4956 = vmatprep.mubr.bf16.mxu1 %v8965_v15  ;;  %8211 = vmatpush3.bf16.msra.mxu1 %v8983_v34  ;;  %v8991_v15 = vld [vmem:[%s10774_s5 + $0x8] sm:$0xff]  }
 0x28b   : > { %8212 = vmatprep.subr.bf16.mxu1 %v8985_v51 }
 0x28e   : > { %8213 = vmatpush3.bf16.msra.mxu1 %v8987_v63 }
 0x28f   : > { %8214 = vmatprep.subr.bf16.mxu1 %v8989_v45 }
 0x291   : > { %4957 = vmatmul.mubr.bf16.gmra.mxu1 %v7101_v47 }
 0x292   : > { %8215 = vmatpush3.bf16.msra.mxu1 %v8991_v15 }
 0x293   : > { %8216 = vmatprep.subr.bf16.mxu1 %v8993_v62 }
 0x296   : > { %8217 = vmatpush3.bf16.msra.mxu1 %v8995_v52 }
 0x297   : > { %8282 = vmatprep.subr.bf16.mxu1 %v9001_v41 }
 0x2dd   : > { %v8046_v32 = vpop.f32.mrf.mxu1 }
 0x2df   : > { %v8047_v36 = vpop.f32.mrf.mxu1 }
 0x2e0   : > { %v8048_v45 = vadd.f32 %v8047_v36, %v8046_v32 }
 0x2e1   : > { %v8049_v10 = vpop.f32.mrf.mxu1 }
 0x2e2   : > { %v4740_v52 = vadd.f32 %v8048_v45, %v10452_v49 }
 0x2e3   : > { %v8050_v35 = vpop.f32.mrf.mxu1 }
 0x2e4   : > { %v8051_v28 = vadd.f32 %v8050_v35, %v8049_v10 }
 0x2e6   : > { %v4743_v30 = vadd.f32 %v8051_v28, %v10452_v49 }
 0x2e8   : > { %v8126_v4 = vpop.f32.mrf.mxu0 }
 0x2ea   : > { %v8127_v9 = vpop.f32.mrf.mxu0 }
 0x2eb   : > { %v8128_v14 = vadd.f32 %v8127_v9, %v8126_v4 }
 0x2ec   : > { %v8129_v22 = vpop.f32.mrf.mxu0 }
 0x2ee   : > { %v8130_v26 = vpop.f32.mrf.mxu0 }
 0x2ef   : > { %v8052_v31 = vpop.f32.mrf.mxu1  ;;  %v8131_v10 = vadd.f32 %v8130_v26, %v8129_v22 }
 0x2f1   : > { %v8053_v37 = vpop.f32.mrf.mxu1 }
 0x2f2   : > { %v8054_v32 = vadd.f32 %v8053_v37, %v8052_v31 }
 0x2f3   : > { %v8055_v6 = vpop.f32.mrf.mxu1 }
 0x2f4   : > { %v4748_v43 = vadd.f32 %v8054_v32, %v10452_v49 }
 0x2f5   : > { %v8056_v59 = vpop.f32.mrf.mxu1 }
 0x2f6   : > { %v8057_v35 = vadd.f32 %v8056_v59, %v8055_v6 }
 0x2f8   : > { %v10413_v60 = vpop.f32.mrf.mxu0 }
 0x2fa   : > { %v8133_v27 = vpop.f32.mrf.mxu0 }
 0x2fb   : > { %v8134_v4 = vadd.f32 %v8133_v27, %v10413_v60 }
 0x2fc   : > { %v10421_v24 = vpop.f32.mrf.mxu0 }
 0x2fe   : > { %v10427_v50 = vpop.f32.mrf.mxu0 }
 0x2ff   : > { %v10409_v44 = vpop.f32.mrf.mxu1 }
 0x301   : > { %v10411_v2 = vpop.f32.mrf.mxu1 }
 0x303   : > { %v10415_v29 = vpop.f32.mrf.mxu1 }
 0x305   : > { %v10417_v33 = vpop.f32.mrf.mxu1 }
 0x306   : > { %v8063_v60 = vadd.f32 %v10417_v33, %v10415_v29 }
 0x308   : > { %v4759_v29 = vadd.f32 %v8063_v60, %v10452_v49 }
 0x309   : > { %v10431_v56 = vpop.f32.mrf.mxu0 }
 0x30b   : > { %v10433_v42 = vpop.f32.mrf.mxu0 }
 0x30c   : > { %v8140_v33 = vadd.f32 %v10433_v42, %v10431_v56 }
 0x30d   : > { %v10435_v5 = vpop.f32.mrf.mxu0 }
 0x30f   : > { %v10437_v18 = vpop.f32.mrf.mxu0 }
 0x310   : > { %v10419_v61 = vpop.f32.mrf.mxu1 }
 0x312   : > { %v10423_v39 = vpop.f32.mrf.mxu1 }
 0x314   : > { %v10425_v47 = vpop.f32.mrf.mxu1 }
 0x316   : > { %v10429_v58 = vpop.f32.mrf.mxu1 }
 0x318   : > { %v8086_v40 = vpop.f32.mrf.mxu1 }
 0x31a   : > { %v8087_v54 = vpop.f32.mrf.mxu1  ;;  %v10439_v7 = vpop.f32.mrf.mxu0 }
 0x31b   : > { %v8088_v62 = vadd.f32 %v8087_v54, %v8086_v40 }
 0x31c   : > { %v8089_v0 = vpop.f32.mrf.mxu1  ;;  %v10441_v34 = vpop.f32.mrf.mxu0 }
 0x31d   : > { %v4805_v55 = vadd.f32 %v8088_v62, %v4740_v52 }
 0x31e   : > { %v8090_v46 = vpop.f32.mrf.mxu1  ;;  %v10445_v20 = vpop.f32.mrf.mxu0 }
 0x31f   : > { %v8091_v23 = vadd.f32 %v8090_v46, %v8089_v0  ;;  %v4870_v40 = vadd.f32 %v8128_v14, %v4805_v55 }
 0x320   : > { %v8092_v21 = vpop.f32.mrf.mxu1  ;;  %v10454_v15 = vpop.f32.mrf.mxu0 }
 0x321   : > { %10875 = vst [vmem:[#allocation23_spill] sm:$0xff] %v10454_v15  ;;  %v4808_v1 = vadd.f32 %v8091_v23, %v4743_v30  ;;  %v8060_v30 = vadd.f32 %v10411_v2, %v10409_v44  ;;  %v8137_v2 = vadd.f32 %v10427_v50, %v10421_v24  ;;  %v8066_v24 = vadd.f32 %v10423_v39, %v10419_v61 }
 0x322   : > { %v8093_v53 = vpop.f32.mrf.mxu1  ;;  %v8457_v11 = vpop.f32.mrf.mxu0  ;;  %v8143_v39 = vadd.f32 %v10437_v18, %v10435_v5 }
 0x323   : > { %v8094_v3 = vadd.f32 %v8093_v53, %v8092_v21  ;;  %v4873_v46 = vadd.f32 %v8131_v10, %v4808_v1 }
 0x324   : > { %v8095_v16 = vpop.f32.mrf.mxu1  ;;  %v4999_v48 = vpop.f32.mrf.mxu0 }
 0x325   : > { %v4813_v15 = vadd.f32 %v8094_v3, %v4748_v43 }
 0x326   : > { %v8096_v25 = vpop.f32.mrf.mxu1  ;;  %v8458_v62 = vpop.f32.mrf.mxu0 }
 0x327   : > { %v8097_v31 = vadd.f32 %v8096_v25, %v8095_v16  ;;  %v4878_v59 = vadd.f32 %v8134_v4, %v4813_v15 }
 0x328   : > { %v8098_v17 = vpop.f32.mrf.mxu1  ;;  %v5002_v22 = vpop.f32.mrf.mxu0 }
 0x32a   : > { %v8099_v8 = vpop.f32.mrf.mxu1  ;;  %v10474_v16 = vpop.f32.mrf.mxu0 }
 0x32b   : > { %v8100_v6 = vadd.f32 %v8099_v8, %v8098_v17 }
 0x32c   : > { %v10443_v51 = vpop.f32.mrf.mxu1 }
 0x32e   : > { %v8102_v63 = vpop.f32.mrf.mxu1 }
 0x32f   : > { %v8103_v17 = vadd.f32 %v8102_v63, %v10443_v51  ;;  %v5015_v51 = vpop.f32.mrf.mxu0 }
 0x330   : > { %v10447_v12 = vpop.f32.mrf.mxu1 }
 0x331   : > { %v4824_v63 = vadd.f32 %v8103_v17, %v4759_v29 }
 0x332   : > { %v10456_v57 = vpop.f32.mrf.mxu1 }
 0x333   : > { %v4889_v5 = vadd.f32 %v8143_v39, %v4824_v63 }
 0x334   : > { %v10458_v19 = vpop.f32.mrf.mxu1 }
 0x336   : > { %v10461_v41 = vpop.f32.mrf.mxu1 }
 0x337   : > { %v8109_v4 = vadd.f32 %v10461_v41, %v10458_v19 }
 0x339   : > { %v8166_v36 = vpop.f32.mrf.mxu1 }
 0x33b   : > { %v8167_v13 = vpop.f32.mrf.mxu1 }
 0x33c   : > { %v8168_v54 = vadd.f32 %v8167_v13, %v8166_v36  ;;  %v4751_v13 = vadd.f32 %v8057_v35, %v10452_v49 }
 0x33d   : > { %v8169_v45 = vpop.f32.mrf.mxu1 }
 0x33e   : > { %v4935_v38 = vadd.f32 %v8168_v54, %v4870_v40  ;;  %v4816_v3 = vadd.f32 %v8097_v31, %v4751_v13  ;;  %v8069_v31 = vadd.f32 %v10429_v58, %v10425_v47 }
 0x33f   : > { %v8170_v0 = vpop.f32.mrf.mxu1 }
 0x340   : > { %v5000_v37 = vadd.f32 %v4999_v48, %v4935_v38  ;;  %v8171_v52 = vadd.f32 %v8170_v0, %v8169_v45  ;;  %v4756_v48 = vadd.f32 %v8060_v30, %v10452_v49  ;;  %v4881_v28 = vadd.f32 %v8137_v2, %v4816_v3  ;;  %v10876_v2 = vld [vmem:[#allocation23_spill] sm:$0xff] }
 0x341   : > { %v8172_v14 = vpop.f32.mrf.mxu1  ;;  %v4764_v0 = vadd.f32 %v8066_v24, %v10452_v49 }
 0x342   : > { %v5030_v9 = vmax.f32 %v5000_v37, 0.0  ;;  %v4938_v21 = vadd.f32 %v8171_v52, %v4873_v46  ;;  %v4821_v25 = vadd.f32 %v8100_v6, %v4756_v48 }
 0x343   : > { %v8173_v43 = vpop.f32.mrf.mxu1 }
 0x344   : > { %5038 = vst [vmem:[#allocation4 + $0x11] sm:$0xff] %v5030_v9  ;;  %v5003_v26 = vadd.f32 %v5002_v22, %v4938_v21  ;;  %v8174_v38 = vadd.f32 %v8173_v43, %v8172_v14  ;;  %v7523_v1 = vpack.c.bf16 %v5030_v9, %v5030_v9  ;;  %v4886_v40 = vadd.f32 %v8140_v33, %v4821_v25 }
 0x345   : > { %v8175_v44 = vpop.f32.mrf.mxu1  ;;  %v4767_v21 = vadd.f32 %v8069_v31, %v10452_v49  ;;  %v8146_v22 = vadd.f32 %v10441_v34, %v10439_v7  ;;  %v9003_v49 = vld [vmem:[%s10774_s5 + $0x138] sm:$0xff]   ;;  %v9021_v31 = vld [vmem:[%s10774_s5 + $0x160] sm:$0xff]  }
 0x346   : > { %v5031_v27 = vmax.f32 %v5003_v26, 0.0  ;;  %v4943_v53 = vadd.f32 %v8174_v38, %v4878_v59  ;;  %5195 = vst [vmem:[#allocation2 + $0x28] sm:$0xf] %v7523_v1  ;;  %5234 = vst [vmem:[#allocation2 + $0x10] sm:$0xf] %v7523_v1 }
 0x347   : > { %v8176_v8 = vpop.f32.mrf.mxu1  ;;  %v4832_v3 = vadd.f32 %v8109_v4, %v4767_v21 }
 0x348   : > { %5039 = vst [vmem:[#allocation4 + $0x21] sm:$0xff] %v5031_v27  ;;  %v5008_v15 = vadd.f32 %v8457_v11, %v4943_v53  ;;  %v8177_v55 = vadd.f32 %v8176_v8, %v8175_v44  ;;  %v7524_v23 = vpack.c.bf16 %v5031_v27, %v5031_v27  ;;  %v8106_v11 = vadd.f32 %v10456_v57, %v10447_v12 }
 0x349   : > { %v8178_v50 = vpop.f32.mrf.mxu1  ;;  %v8149_v27 = vadd.f32 %v10876_v2, %v10445_v20 }
 0x34a   : > { %v5032_v32 = vmax.f32 %v5008_v15, 0.0  ;;  %v4946_v36 = vadd.f32 %v8177_v55, %v4881_v28  ;;  %5196 = vst [vmem:[#allocation2 + $0x4c] sm:$0xf] %v7524_v23  ;;  %5235 = vst [vmem:[#allocation2 + $0x34] sm:$0xf] %v7524_v23  ;;  %v4829_v52 = vadd.f32 %v8106_v11, %v4764_v0  ;;  %v9007_v55 = vld [vmem:[%s10774_s5 + $0x170] sm:$0xff]  }
 0x34b   : > { %5250 = vst [vmem:[#allocation2 + $0x1c] sm:$0xf] %v7524_v23  ;;  %v8179_v54 = vpop.f32.mrf.mxu1  ;;  %v5047_v45 = vld [vmem:[#allocation4 + $0x10] sm:$0xff]  ;;  %v4897_v23 = vadd.f32 %v8149_v27, %v4832_v3 }
 0x34c   : > { %v5259_v10 = vld [vmem:[#allocation4 + $0x12] sm:$0xff]  ;;  %5040 = vst [vmem:[#allocation4 + $0x31] sm:$0xff] %v5032_v32  ;;  %v5011_v56 = vadd.f32 %v8458_v62, %v4946_v36  ;;  %v8180_v42 = vadd.f32 %v8179_v54, %v8178_v50  ;;  %v7505_v35 = vpack.c.bf16 %v5047_v45, %v5047_v45  ;;  %v7525_v46 = vpack.c.bf16 %v5032_v32, %v5032_v32  ;;  %v10489_v62 = vpop.f32.mrf.mxu0 }
 0x34d   : > { %v7541_v61 = vpack.c.bf16 %v5259_v10, %v5259_v10  ;;  %v8181_v37 = vpop.f32.mrf.mxu1  ;;  %v4894_v26 = vadd.f32 %v8146_v22, %v4829_v52  ;;  %v8999_v17 = vld [vmem:[#allocation2 + $0x4] ss:$36 sps:$4 sm:$0xff]   ;;  %v9009_v32 = vld [vmem:[%s10774_s5 + $0x130] sm:$0xff]   ;;  %v9010_v36 = vld [vmem:[%s10774_s5 + $0x1b8] sm:$0xff]  }
 0x34e   : > { %v5033_v12 = vmax.f32 %v5011_v56, 0.0  ;;  %v4951_v57 = vadd.f32 %v8180_v42, %v4886_v40  ;;  %5089 = vst [vmem:[#allocation2 + $0x24] sm:$0xf] %v7505_v35  ;;  %5128 = vst [vmem:[#allocation2 + $0xc] sm:$0xf] %v7505_v35  ;;  %v5018_v43 = vpop.f32.mrf.mxu0  ;;  %6203 = vmatprep.mubr.bf16.mxu1 %v8999_v17  ;;  %v9015_v56 = vld [vmem:[%s10774_s5 + $0x1f0] sm:$0xff]  }
 0x34f   : > { %5301 = vst [vmem:[#allocation2 + $0x2c] sm:$0xf] %v7541_v61  ;;  %5340 = vst [vmem:[#allocation2 + $0x14] sm:$0xf] %v7541_v61  ;;  %v8182_v18 = vpop.f32.mrf.mxu1  ;;  %v5048_v30 = vld [vmem:[#allocation4 + $0x20] sm:$0xff]  ;;  %v9016_v42 = vld [vmem:[%s10774_s5 + $0x128] sm:$0xff]  }
 0x350   : > { %5197 = vst [vmem:[#allocation2 + $0x70] sm:$0xf] %v7525_v46  ;;  %5236 = vst [vmem:[#allocation2 + $0x58] sm:$0xf] %v7525_v46  ;;  %v5260_v47 = vld [vmem:[#allocation4 + $0x22] sm:$0xff]  ;;  %v5016_v58 = vadd.f32 %v5015_v51, %v4951_v57  ;;  %v8183_v14 = vadd.f32 %v8182_v18, %v8181_v37  ;;  %v7506_v13 = vpack.c.bf16 %v5048_v30, %v5048_v30  ;;  %v9017_v35 = vld [vmem:[%s10774_s5 + $0x1b0] sm:$0xff]  }
 0x351   : > { %5251 = vst [vmem:[#allocation2 + $0x40] sm:$0xf] %v7525_v46  ;;  %5041 = vst [vmem:[#allocation4 + $0x41] sm:$0xff] %v5033_v12  ;;  %v7542_v9 = vpack.c.bf16 %v5260_v47, %v5260_v47  ;;  %v8184_v6 = vpop.f32.mrf.mxu1  ;;  %v7526_v59 = vpack.c.bf16 %v5033_v12, %v5033_v12  ;;  %v9014_v51 = vld [vmem:[%s10774_s5 + $0x168] sm:$0xff]   ;;  %v9035_v3 = vld [vmem:[%s10774_s5 + $0x150] sm:$0xff]  }
 0x352   : > { %v5034_v19 = vmax.f32 %v5016_v58, 0.0  ;;  %v4954_v41 = vadd.f32 %v8183_v14, %v4889_v5  ;;  %5129 = vst [vmem:[#allocation2 + $0x30] sm:$0xf] %v7506_v13  ;;  %5090 = vst [vmem:[#allocation2 + $0x48] sm:$0xf] %v7506_v13  ;;  %v9022_v5 = vld [vmem:[%s10774_s5 + $0x1e8] sm:$0xff]  }
 0x353   : > { %5144 = vst [vmem:[#allocation2 + $0x18] sm:$0xf] %v7506_v13  ;;  %5302 = vst [vmem:[#allocation2 + $0x50] sm:$0xf] %v7542_v9  ;;  %v8185_v38 = vpop.f32.mrf.mxu1  ;;  %v5049_v1 = vld [vmem:[#allocation4 + $0x30] sm:$0xff]  ;;  %v9024_v18 = vld [vmem:[%s10774_s5 + $0x1a8] sm:$0xff]  }
 0x354   : > { %5341 = vst [vmem:[#allocation2 + $0x38] sm:$0xf] %v7542_v9  ;;  %5356 = vst [vmem:[#allocation2 + $0x20] sm:$0xf] %v7542_v9  ;;  %v5261_v48 = vld [vmem:[#allocation4 + $0x32] sm:$0xff]  ;;  %v5019_v7 = vadd.f32 %v5018_v43, %v4954_v41  ;;  %v8186_v34 = vadd.f32 %v8185_v38, %v8184_v6  ;;  %v7507_v60 = vpack.c.bf16 %v5049_v1, %v5049_v1  ;;  %v9029_v6 = vld [vmem:[%s10774_s5 + $0x1e0] sm:$0xff]  }
 0x355   : > { %5198 = vst [vmem:[#allocation2 + $0x94] sm:$0xf] %v7526_v59  ;;  %5237 = vst [vmem:[#allocation2 + $0x7c] sm:$0xf] %v7526_v59  ;;  %v7543_v44 = vpack.c.bf16 %v5261_v48, %v5261_v48  ;;  %v8187_v53 = vpop.f32.mrf.mxu1  ;;  %v8997_v25 = vld [vmem:[#allocation2] ss:$36 sps:$4 sm:$0xff]   ;;  %v7527_v8 = vpack.c.bf16 %v5034_v19, %v5034_v19 }
 0x356   : > { %5252 = vst [vmem:[#allocation2 + $0x64] sm:$0xf] %v7526_v59  ;;  %5042 = vst [vmem:[#allocation4 + $0x51] sm:$0xff] %v5034_v19  ;;  %v5035_v15 = vmax.f32 %v5019_v7, 0.0  ;;  %v4959_v28 = vadd.f32 %v8186_v34, %v4894_v26  ;;  %6204 = vmatmul.mubr.bf16.vlgmr.msra.gmra.mxu1 %v8997_v25  ;;  %v9004_v40 = vld [vmem:[#allocation2 + $0x8] ss:$36 sps:$4 sm:$0xff]  }
 0x357   : > { %5091 = vst [vmem:[#allocation2 + $0x6c] sm:$0xf] %v7507_v60  ;;  %5130 = vst [vmem:[#allocation2 + $0x54] sm:$0xf] %v7507_v60  ;;  %v8188_v29 = vpop.f32.mrf.mxu1  ;;  %8283 = vmatpush3.bf16.msra.mxu1 %v9003_v49  ;;  %v9013_v52 = vld [vmem:[#allocation2 + $0x4c] ss:$36 sps:$4 sm:$0xff]  }
 0x358   : > { %5145 = vst [vmem:[#allocation2 + $0x3c] sm:$0xf] %v7507_v60  ;;  %5303 = vst [vmem:[#allocation2 + $0x74] sm:$0xf] %v7543_v44  ;;  %v5050_v20 = vld [vmem:[#allocation4 + $0x40] sm:$0xff]  ;;  %v5024_v24 = vadd.f32 %v10474_v16, %v4959_v28  ;;  %v8189_v50 = vadd.f32 %v8188_v29, %v8187_v53  ;;  %v7528_v16 = vpack.c.bf16 %v5035_v15, %v5035_v15  ;;  %8284 = vmatprep.subr.bf16.mxu1 %v9007_v55  ;;  %v9028_v58 = vld [vmem:[%s10774_s5 + $0x158] sm:$0xff]  }
 0x359   : > { %5342 = vst [vmem:[#allocation2 + $0x5c] sm:$0xf] %v7543_v44  ;;  %5357 = vst [vmem:[#allocation2 + $0x44] sm:$0xf] %v7543_v44  ;;  %v5262_v33 = vld [vmem:[#allocation4 + $0x42] sm:$0xff]  ;;  %v7508_v63 = vpack.c.bf16 %v5050_v20, %v5050_v20  ;;  %6211 = vmatprep.mubr.bf16.mxu1 %v9013_v52  ;;  %v9030_v59 = vld [vmem:[%s10774_s5 + $0x118] sm:$0xff]  }
 0x35a   : > { %5199 = vst [vmem:[#allocation2 + $0xb8] sm:$0xf] %v7527_v8  ;;  %5238 = vst [vmem:[#allocation2 + $0xa0] sm:$0xf] %v7527_v8  ;;  %v7544_v11 = vpack.c.bf16 %v5262_v33, %v5262_v33  ;;  %v9006_v54 = vld [vmem:[#allocation2 + $0xc] ss:$36 sps:$4 sm:$0xff]   ;;  %v4962_v10 = vadd.f32 %v8189_v50, %v4897_v23 }
 0x35b   : > { %5253 = vst [vmem:[#allocation2 + $0x88] sm:$0xf] %v7527_v8  ;;  %5043 = vst [vmem:[#allocation4 + $0x61] sm:$0xff] %v5035_v15  ;;  %v5036_v45 = vmax.f32 %v5024_v24, 0.0  ;;  %6268 = vmatprep.mubr.bf16.mxu0 %v9006_v54  ;;  %8285 = vmatpush3.bf16.msra.mxu1 %v9009_v32  ;;  %v9031_v19 = vld [vmem:[%s10774_s5 + $0x1a0] sm:$0xff]   ;;  %v9036_v7 = vld [vmem:[%s10774_s5 + $0x1d8] sm:$0xff]  }
 0x35c   : > { %5131 = vst [vmem:[#allocation2 + $0x78] sm:$0xf] %v7508_v63  ;;  %5092 = vst [vmem:[#allocation2 + $0x90] sm:$0xf] %v7508_v63  ;;  %v5027_v0 = vadd.f32 %v10489_v62, %v4962_v10  ;;  %6269 = vmatmul.mubr.bf16.vlgmr.msra.gmra.mxu0 %v9004_v40  ;;  %8286 = vmatprep.subr.bf16.mxu1 %v9014_v51  ;;  %v9023_v62 = vld [vmem:[%s10774_s5 + $0x120] sm:$0xff]   ;;  %v9037_v34 = vld [vmem:[%s10774_s5 + $0x110] sm:$0xff]  }
 0x35d   : > { %5146 = vst [vmem:[#allocation2 + $0x60] sm:$0xf] %v7508_v63  ;;  %5304 = vst [vmem:[#allocation2 + $0x98] sm:$0xf] %v7544_v11  ;;  %v5051_v61 = vld [vmem:[#allocation4 + $0x50] sm:$0xff]  ;;  %v7529_v12 = vpack.c.bf16 %v5036_v45, %v5036_v45  ;;  %8323 = vmatpush3.bf16.msra.mxu0 %v9010_v36  ;;  %v9038_v49 = vld [vmem:[%s10774_s5 + $0x198] sm:$0xff]  }
 0x35e   : > { %5343 = vst [vmem:[#allocation2 + $0x80] sm:$0xf] %v7544_v11  ;;  %5358 = vst [vmem:[#allocation2 + $0x68] sm:$0xf] %v7544_v11  ;;  %v5263_v39 = vld [vmem:[#allocation4 + $0x52] sm:$0xff]  ;;  %v7509_v37 = vpack.c.bf16 %v5051_v61, %v5051_v61  ;;  %v5037_v4 = vmax.f32 %v5027_v0, 0.0  ;;  %8324 = vmatprep.subr.bf16.mxu0 %v9015_v56 }
 0x35f   : > { %5200 = vst [vmem:[#allocation2 + $0xdc] sm:$0xf] %v7528_v16  ;;  %5239 = vst [vmem:[#allocation2 + $0xc4] sm:$0xf] %v7528_v16  ;;  %v7545_v46 = vpack.c.bf16 %v5263_v39, %v5263_v39  ;;  %v9011_v57 = vld [vmem:[#allocation2 + $0x48] ss:$36 sps:$4 sm:$0xff]   ;;  %8287 = vmatpush3.bf16.msra.mxu1 %v9016_v42 }
 0x360   : > { %5254 = vst [vmem:[#allocation2 + $0xac] sm:$0xf] %v7528_v16  ;;  %5044 = vst [vmem:[#allocation4 + $0x71] sm:$0xff] %v5036_v45  ;;  %6212 = vmatmul.mubr.bf16.gmra.mxu1 %v9011_v57  ;;  %v7537_v9 = vpack.c.bf16 %v5037_v4, %v5037_v4  ;;  %v9018_v21 = vld [vmem:[#allocation2 + $0x50] ss:$36 sps:$4 sm:$0xff]   ;;  %8288 = vmatprep.subr.bf16.mxu1 %v9021_v31  ;;  %v9042_v44 = vld [vmem:[%s10774_s5 + $0x148] sm:$0xff]  }
 0x361   : > { %5093 = vst [vmem:[#allocation2 + $0xb4] sm:$0xf] %v7509_v37  ;;  %5132 = vst [vmem:[#allocation2 + $0x9c] sm:$0xf] %v7509_v37  ;;  %8325 = vmatpush3.bf16.msra.mxu0 %v9017_v35  ;;  %v9027_v48 = vld [vmem:[#allocation2 + $0x94] ss:$36 sps:$4 sm:$0xff]  }
 0x362   : > { %5147 = vst [vmem:[#allocation2 + $0x84] sm:$0xf] %v7509_v37  ;;  %5305 = vst [vmem:[#allocation2 + $0xbc] sm:$0xf] %v7545_v46  ;;  %v5052_v30 = vld [vmem:[#allocation4 + $0x60] sm:$0xff]  ;;  %8326 = vmatprep.subr.bf16.mxu0 %v9022_v5  ;;  %6219 = vmatprep.mubr.bf16.mxu1 %v9027_v48  ;;  %v9043_v8 = vld [vmem:[%s10774_s5 + $0x1d0] sm:$0xff]  }
 0x363   : > { %5344 = vst [vmem:[#allocation2 + $0xa4] sm:$0xf] %v7545_v46  ;;  %5359 = vst [vmem:[#allocation2 + $0x8c] sm:$0xf] %v7545_v46  ;;  %v5264_v47 = vld [vmem:[#allocation4 + $0x62] sm:$0xff]  ;;  %v7510_v14 = vpack.c.bf16 %v5052_v30, %v5052_v30  ;;  %8289 = vmatpush3.bf16.msra.mxu1 %v9023_v62  ;;  %v9048_v28 = vld [vmem:[%s10774_s5 + $0x190] sm:$0xff]  }
 0x364   : > { %5201 = vst [vmem:[#allocation2 + $0x100] sm:$0xf] %v7529_v12  ;;  %5240 = vst [vmem:[#allocation2 + $0xe8] sm:$0xf] %v7529_v12  ;;  %v7546_v13 = vpack.c.bf16 %v5264_v47, %v5264_v47  ;;  %v9020_v22 = vld [vmem:[#allocation2 + $0x54] ss:$36 sps:$4 sm:$0xff]   ;;  %8290 = vmatprep.subr.bf16.mxu1 %v9028_v58 }
 0x365   : > { %5255 = vst [vmem:[#allocation2 + $0xd0] sm:$0xf] %v7529_v12  ;;  %5045 = vst [vmem:[#allocation4 + $0x81] sm:$0xff] %v5037_v4  ;;  %6276 = vmatprep.mubr.bf16.mxu0 %v9020_v22  ;;  %8327 = vmatpush3.bf16.msra.mxu0 %v9024_v18  ;;  %v9044_v15 = vld [vmem:[%s10774_s5 + $0x108] sm:$0xff]   ;;  %v9052_v55 = vld [vmem:[%s10774_s5 + $0x140] sm:$0xff]   ;;  %v10877_v42 = vmov 0.0  }
 0x366   : > { %5133 = vst [vmem:[#allocation2 + $0xc0] sm:$0xf] %v7510_v14  ;;  %5094 = vst [vmem:[#allocation2 + $0xd8] sm:$0xf] %v7510_v14  ;;  %6277 = vmatmul.mubr.bf16.gmra.mxu0 %v9018_v21  ;;  %8328 = vmatprep.subr.bf16.mxu0 %v9029_v6  ;;  %v9053_v20 = vld [vmem:[%s10774_s5 + $0x1c8] sm:$0xff]   ;;  %v9054_v24 = vld [vmem:[%s10774_s5 + $0x100] sm:$0xff]  }
 0x367   : > { %5148 = vst [vmem:[#allocation2 + $0xa8] sm:$0xf] %v7510_v14  ;;  %5306 = vst [vmem:[#allocation2 + $0xe0] sm:$0xf] %v7546_v13  ;;  %v5053_v41 = vld [vmem:[#allocation4 + $0x70] sm:$0xff]  ;;  %8291 = vmatpush3.bf16.msra.mxu1 %v9030_v59  ;;  %v9055_v36 = vld [vmem:[%s10774_s5 + $0x188] sm:$0xff]  }
 0x368   : > { %5345 = vst [vmem:[#allocation2 + $0xc8] sm:$0xf] %v7546_v13  ;;  %5360 = vst [vmem:[#allocation2 + $0xb0] sm:$0xf] %v7546_v13  ;;  %v5265_v43 = vld [vmem:[#allocation4 + $0x72] sm:$0xff]  ;;  %v7511_v26 = vpack.c.bf16 %v5053_v41, %v5053_v41  ;;  %8292 = vmatprep.subr.bf16.mxu1 %v9035_v3  ;;  %v9059_v11 = vld [vmem:[%s10774_s5 + $0x1c0] sm:$0xff]  }
 0x369   : > { %5241 = vst [vmem:[#allocation2 + $0x10c] sm:$0xf] %v7537_v9  ;;  %5256 = vst [vmem:[#allocation2 + $0xf4] sm:$0xf] %v7537_v9  ;;  %v7547_v38 = vpack.c.bf16 %v5265_v43, %v5265_v43  ;;  %v9025_v1 = vld [vmem:[#allocation2 + $0x90] ss:$36 sps:$4 sm:$0xff]   ;;  %8329 = vmatpush3.bf16.msra.mxu0 %v9031_v19 }
 0x36a   : > { %5095 = vst [vmem:[#allocation2 + $0xfc] sm:$0xf] %v7511_v26  ;;  %5134 = vst [vmem:[#allocation2 + $0xe4] sm:$0xf] %v7511_v26  ;;  %6220 = vmatmul.mubr.bf16.gmra.mxu1 %v9025_v1  ;;  %v9032_v53 = vld [vmem:[#allocation2 + $0x98] ss:$36 sps:$4 sm:$0xff]   ;;  %8330 = vmatprep.subr.bf16.mxu0 %v9036_v7 }
 0x36b   : > { %5149 = vst [vmem:[#allocation2 + $0xcc] sm:$0xf] %v7511_v26  ;;  %5307 = vst [vmem:[#allocation2 + $0x104] sm:$0xf] %v7547_v38  ;;  %8293 = vmatpush3.bf16.msra.mxu1 %v9037_v34  ;;  %v9041_v29 = vld [vmem:[#allocation2 + $0xdc] ss:$36 sps:$4 sm:$0xff]  }
 0x36c   : > { %5346 = vst [vmem:[#allocation2 + $0xec] sm:$0xf] %v7547_v38  ;;  %5361 = vst [vmem:[#allocation2 + $0xd4] sm:$0xf] %v7547_v38  ;;  %v5054_v60 = vld [vmem:[#allocation4 + $0x80] sm:$0xff]  ;;  %8294 = vmatprep.subr.bf16.mxu1 %v9042_v44  ;;  %6227 = vmatprep.mubr.bf16.mxu1 %v9041_v29  ;;  %v9060_v51 = vld [vmem:[%s10774_s5 + $0x238] sm:$0xff]  }
 0x36d   : > { %v7519_v2 = vpack.c.bf16 %v5054_v60, %v5054_v60  ;;  %v5266_v27 = vld [vmem:[#allocation4 + $0x82] sm:$0xff]  ;;  %8331 = vmatpush3.bf16.msra.mxu0 %v9038_v49  ;;  %v9047_v33 = vld [vmem:[#allocation2 + $0x14] ss:$36 sps:$4 sm:$0xff]   ;;  %v9076_v46 = vld [vmem:[#allocation2 + $0xac] ss:$36 sps:$4 sm:$0xff]  }
 0x36e   : > { %v9034_v25 = vld [vmem:[#allocation2 + $0x9c] ss:$36 sps:$4 sm:$0xff]   ;;  %v7555_v17 = vpack.c.bf16 %v5266_v27, %v5266_v27  ;;  %8332 = vmatprep.subr.bf16.mxu0 %v9043_v8  ;;  %v9045_v40 = vld [vmem:[#allocation2 + $0x10] ss:$36 sps:$4 sm:$0xff]   ;;  %v9069_v10 = vld [vmem:[%s10774_s5 + $0x228] sm:$0xff]  }
 0x36f   : > { %5135 = vst [vmem:[#allocation2 + $0x108] sm:$0xf] %v7519_v2  ;;  %5150 = vst [vmem:[#allocation2 + $0xf0] sm:$0xf] %v7519_v2  ;;  %6284 = vmatprep.mubr.bf16.mxu0 %v9034_v25  ;;  %8295 = vmatpush3.bf16.msra.mxu1 %v9044_v15  ;;  %v9058_v63 = vld [vmem:[#allocation2 + $0x1c] ss:$36 sps:$4 sm:$0xff]  }
 0x370   : > { %5347 = vst [vmem:[#allocation2 + $0x110] sm:$0xf] %v7555_v17  ;;  %5362 = vst [vmem:[#allocation2 + $0xf8] sm:$0xf] %v7555_v17  ;;  %6285 = vmatmul.mubr.bf16.gmra.mxu0 %v9032_v53  ;;  %8296 = vmatprep.subr.bf16.mxu1 %v9052_v55  ;;  %v9064_v54 = vld [vmem:[%s10774_s5 + $0x180] sm:$0xff]   ;;  %v9065_v16 = vld [vmem:[%s10774_s5 + $0x230] sm:$0xff]  }
 0x371   : > { %v9039_v23 = vld [vmem:[#allocation2 + $0xd8] ss:$36 sps:$4 sm:$0xff]   ;;  %8333 = vmatpush3.bf16.msra.mxu0 %v9048_v28  ;;  %v9068_v35 = vld [vmem:[#allocation2 + $0x64] ss:$36 sps:$4 sm:$0xff]   ;;  %v9081_v57 = vld [vmem:[%s10774_s5 + $0x210] sm:$0xff]  }
 0x372   : > { %6228 = vmatmul.mubr.bf16.gmra.mxu1 %v9039_v23  ;;  %v9049_v50 = vld [vmem:[#allocation2 + $0xe0] ss:$36 sps:$4 sm:$0xff]   ;;  %8334 = vmatprep.subr.bf16.mxu0 %v9053_v20  ;;  %v9056_v56 = vld [vmem:[#allocation2 + $0x18] ss:$36 sps:$4 sm:$0xff]   ;;  %v9085_v4 = vld [vmem:[%s10774_s5 + $0x208] sm:$0xff]  }
 0x373   : > { %6333 = vmatprep.mubr.bf16.mxu1 %v9047_v33  ;;  %8297 = vmatpush3.bf16.msra.mxu1 %v9054_v24  ;;  %v9063_v45 = vld [vmem:[#allocation2 + $0x5c] ss:$36 sps:$4 sm:$0xff]   ;;  %v9072_v0 = vld [vmem:[#allocation2 + $0xa4] ss:$36 sps:$4 sm:$0xff]   ;;  %v9084_v62 = vld [vmem:[#allocation2 + $0xf4] ss:$36 sps:$4 sm:$0xff]  }
 0x374   : > { %8463 = vmatprep.subr.bf16.mxu1 %v9060_v51  ;;  %v9061_v61 = vld [vmem:[#allocation2 + $0x58] ss:$36 sps:$4 sm:$0xff]   ;;  %v9073_v39 = vld [vmem:[%s10774_s5 + $0x220] sm:$0xff]   ;;  %v9074_v5 = vld [vmem:[#allocation2 + $0xa8] ss:$36 sps:$4 sm:$0xff]  }
 0x375   : > { %8335 = vmatpush3.bf16.msra.mxu0 %v9055_v36  ;;  %v9077_v31 = vld [vmem:[%s10774_s5 + $0x218] sm:$0xff]   ;;  %v9066_v37 = vld [vmem:[#allocation2 + $0x60] ss:$36 sps:$4 sm:$0xff]   ;;  %v9078_v18 = vld [vmem:[#allocation2 + $0xe8] ss:$36 sps:$4 sm:$0xff]  }
 0x376   : > { %v9051_v32 = vld [vmem:[#allocation2 + $0xe4] ss:$36 sps:$4 sm:$0xff]   ;;  %8336 = vmatprep.subr.bf16.mxu0 %v9059_v11  ;;  %v9082_v58 = vld [vmem:[#allocation2 + $0xf0] ss:$36 sps:$4 sm:$0xff]   ;;  %v6542_v21 = vld [vmem:[%s10776_s7 + $0x78] sm:$0xff] }
 0x377   : > { %6292 = vmatprep.mubr.bf16.mxu0 %v9051_v32  ;;  %v9070_v12 = vld [vmem:[#allocation2 + $0xa0] ss:$36 sps:$4 sm:$0xff]   ;;  %v9080_v52 = vld [vmem:[#allocation2 + $0xec] ss:$36 sps:$4 sm:$0xff]   ;;  %v9090_v9 = vld [vmem:[#allocation2 + $0xf8] ss:$36 sps:$4 sm:$0xff]  }
 0x378   : > { %6293 = vmatmul.mubr.bf16.gmra.mxu0 %v9049_v50  ;;  %v9087_v30 = vld [vmem:[%s10774_s5 + $0x200] sm:$0xff]   ;;  %v9088_v14 = vld [vmem:[#allocation2 + $0x68] ss:$36 sps:$4 sm:$0xff]   ;;  %v9089_v13 = vld [vmem:[#allocation2 + $0xb0] ss:$36 sps:$4 sm:$0xff]  }
 0x379   : > { %6398 = vmatprep.mubr.bf16.mxu0 %v9058_v63  ;;  %8337 = vmatpush3.bf16.msra.mxu0 %v9064_v54  ;;  %v9086_v47 = vld [vmem:[#allocation2 + $0x20] ss:$36 sps:$4 sm:$0xff]   ;;  %v6541_v22 = vld [vmem:[%s10776_s7 + $0x70] sm:$0xff]  ;;  %v6540_v6 = vld [vmem:[%s10776_s7 + $0x68] sm:$0xff] }
 0x37a   : > { %6334 = vmatmul.mubr.bf16.vlgmr.msra.gmra.mxu1 %v9045_v40  ;;  %8487 = vmatprep.subr.mxu0 %v10877_v42  ;;  %v6539_v59 = vld [vmem:[%s10776_s7 + $0x60] sm:$0xff]  ;;  %v6538_v19 = vld [vmem:[%s10776_s7 + $0x58] sm:$0xff]  ;;  %v6537_v41 = vld [vmem:[%s10776_s7 + $0x50] sm:$0xff] }
 0x37b   : > { %6341 = vmatprep.mubr.bf16.mxu1 %v9063_v45  ;;  %8464 = vmatpush3.bf16.msra.mxu1 %v9060_v51  ;;  %v6536_v43 = vld [vmem:[%s10776_s7 + $0x48] sm:$0xff]  ;;  %v6535_v3 = vld [vmem:[%s10776_s7 + $0x40] sm:$0xff]  ;;  %v6534_v26 = vld [vmem:[%s10776_s7 + $0x38] sm:$0xff] }
 0x37c   : > { %8465 = vmatprep.subr.bf16.mxu1 %v9065_v16  ;;  %v6533_v38 = vld [vmem:[%s10776_s7 + $0x30] sm:$0xff]  ;;  %v6532_v1 = vld [vmem:[%s10776_s7 + $0x28] sm:$0xff]  ;;  %v6531_v48 = vld [vmem:[%s10776_s7 + $0x20] sm:$0xff] }
 0x37d   : > { %v6530_v7 = vld [vmem:[%s10776_s7 + $0x18] sm:$0xff]  ;;  %v6529_v34 = vld [vmem:[%s10776_s7 + $0x10] sm:$0xff]  ;;  %v6528_v49 = vld [vmem:[%s10776_s7 + $0x8] sm:$0xff] }
 0x37e   : > { %v6527_v60 = vld [vmem:[%s10776_s7] sm:$0xff] }
 0x37f   : > { %8466 = vmatpush3.bf16.msra.mxu1 %v9065_v16 }
 0x380   : > { %6399 = vmatmul.mubr.bf16.vlgmr.msra.gmra.mxu0 %v9056_v56  ;;  %8467 = vmatprep.subr.bf16.mxu1 %v9069_v10 }
 0x381   : > { %6406 = vmatprep.mubr.bf16.mxu0 %v9068_v35  ;;  %8488 = vmatpush3.msra.mxu0 %v6542_v21 }
 0x382   : > { %6342 = vmatmul.mubr.bf16.gmra.mxu1 %v9061_v61  ;;  %8489 = vmatprep.subr.mxu0 %v10877_v42 }
 0x383   : > { %6349 = vmatprep.mubr.bf16.mxu1 %v9072_v0  ;;  %8468 = vmatpush3.bf16.msra.mxu1 %v9069_v10 }
 0x384   : > { %8469 = vmatprep.subr.bf16.mxu1 %v9073_v39  ;;  %8490 = vmatpush3.msra.mxu0 %v6541_v22 }
 0x385   : > { %8491 = vmatprep.subr.mxu0 %v10877_v42 }
 0x386   : > { %8492 = vmatpush3.msra.mxu0 %v6540_v6 }
 0x387   : > { %8470 = vmatpush3.bf16.msra.mxu1 %v9073_v39  ;;  %8493 = vmatprep.subr.mxu0 %v10877_v42 }
 0x388   : > { %6407 = vmatmul.mubr.bf16.gmra.mxu0 %v9066_v37  ;;  %8471 = vmatprep.subr.bf16.mxu1 %v9077_v31 }
 0x389   : > { %6414 = vmatprep.mubr.bf16.mxu0 %v9076_v46  ;;  %8494 = vmatpush3.msra.mxu0 %v6539_v59 }
 0x38a   : > { %6350 = vmatmul.mubr.bf16.gmra.mxu1 %v9070_v12  ;;  %8495 = vmatprep.subr.mxu0 %v10877_v42 }
 0x38b   : > { %6357 = vmatprep.mubr.bf16.mxu1 %v9080_v52  ;;  %8472 = vmatpush3.bf16.msra.mxu1 %v9077_v31 }
 0x38c   : > { %8473 = vmatprep.subr.bf16.mxu1 %v9081_v57  ;;  %8496 = vmatpush3.msra.mxu0 %v6538_v19 }
 0x38d   : > { %8497 = vmatprep.subr.mxu0 %v10877_v42 }
 0x38e   : > { %8498 = vmatpush3.msra.mxu0 %v6537_v41 }
 0x38f   : > { %8474 = vmatpush3.bf16.msra.mxu1 %v9081_v57  ;;  %8499 = vmatprep.subr.mxu0 %v10877_v42 }
 0x390   : > { %6415 = vmatmul.mubr.bf16.gmra.mxu0 %v9074_v5  ;;  %8475 = vmatprep.subr.bf16.mxu1 %v9085_v4 }
 0x391   : > { %6422 = vmatprep.mubr.bf16.mxu0 %v9084_v62  ;;  %8500 = vmatpush3.msra.mxu0 %v6536_v43 }
 0x392   : > { %6358 = vmatmul.mubr.bf16.gmra.mxu1 %v9078_v18  ;;  %8501 = vmatprep.subr.mxu0 %v10877_v42 }
 0x393   : > { %8476 = vmatpush3.bf16.msra.mxu1 %v9085_v4  ;;  %8479 = vmatprep.mubr.bf16.mxu1 %v9086_v47 }
 0x394   : > { %8477 = vmatprep.subr.bf16.mxu1 %v9087_v30  ;;  %8502 = vmatpush3.msra.mxu0 %v6535_v3 }
 0x395   : > { %8503 = vmatprep.subr.mxu0 %v10877_v42 }
 0x396   : > { %8504 = vmatpush3.msra.mxu0 %v6534_v26  ;;  %v7230_v26 = vld [vmem:[%s10775_s6] ss:$0 sm:$0xff] }
 0x397   : > { %8478 = vmatpush3.bf16.msra.mxu1 %v9087_v30  ;;  %8505 = vmatprep.subr.mxu0 %v10877_v42 }
 0x398   : > { %6423 = vmatmul.mubr.bf16.gmra.mxu0 %v9082_v58 }
 0x399   : > { %8506 = vmatpush3.msra.mxu0 %v6533_v38  ;;  %8519 = vmatprep.mubr.msk.f32.mxu0 %vm9155_vm0, %v10877_v42 }
 0x39a   : > { %8480 = vmatmul.mubr.bf16.vlgmr.msra.gmra.mxu1 %v9088_v14  ;;  %8507 = vmatprep.subr.mxu0 %v10877_v42 }
 0x39b   : > { %8483 = vmatprep.mubr.bf16.mxu1 %v9089_v13  ;;  %8508 = vmatpush3.msra.mxu0 %v6532_v1 }
 0x39c   : > { %8509 = vmatprep.subr.mxu0 %v10877_v42 }
 0x39d   : > { %8510 = vmatpush3.msra.mxu0 %v6531_v48 }
 0x39e   : > { %8511 = vmatprep.subr.mxu0 %v10877_v42 }
 0x39f   : > { %8512 = vmatpush3.msra.mxu0 %v6530_v7 }
 0x3a0   : > { %8513 = vmatprep.subr.mxu0 %v10877_v42 }
 0x3a1   : > { %8514 = vmatpush3.msra.mxu0 %v6529_v34 }
 0x3a2   : > { %8484 = vmatmul.mubr.bf16.gmra.mxu1 %v9090_v9  ;;  %8515 = vmatprep.subr.mxu0 %v10877_v42 }
 0x3a3   : > { %8516 = vmatpush3.msra.mxu0 %v6528_v49 }
 0x3a4   : > { %8517 = vmatprep.subr.mxu0 %v10877_v42 }
 0x3a5   : > { %8518 = vmatpush3.msra.mxu0 %v6527_v60 }
 0x416   : > { %v8218_v44 = vpop.f32.mrf.mxu1 }
 0x418   : > { %v8219_v2 = vpop.f32.mrf.mxu1 }
 0x419   : > { %v8220_v41 = vadd.f32 %v8219_v2, %v8218_v44 }
 0x41a   : > { %v8221_v27 = vpop.f32.mrf.mxu1 }
 0x41c   : > { %v8258_v53 = vpop.f32.mrf.mxu0  ;;  %v8222_v25 = vpop.f32.mrf.mxu1 }
 0x41d   : > { %v8223_v43 = vadd.f32 %v8222_v25, %v8221_v27 }
 0x41e   : > { %v8259_v17 = vpop.f32.mrf.mxu0 }
 0x41f   : > { %v8260_v48 = vadd.f32 %v8259_v17, %v8258_v53 }
 0x420   : > { %v8224_v8 = vpop.f32.mrf.mxu1  ;;  %v8261_v15 = vpop.f32.mrf.mxu0 }
 0x422   : > { %v8225_v28 = vpop.f32.mrf.mxu1  ;;  %v8262_v55 = vpop.f32.mrf.mxu0 }
 0x423   : > { %v8226_v38 = vadd.f32 %v8225_v28, %v8224_v8  ;;  %v8263_v7 = vadd.f32 %v8262_v55, %v8261_v15 }
 0x424   : > { %v8227_v23 = vpop.f32.mrf.mxu1 }
 0x425   : > { %v6214_v2 = vadd.f32 %v8226_v38, %v7230_v26 }
 0x426   : > { %v8264_v29 = vpop.f32.mrf.mxu0  ;;  %v8228_v20 = vpop.f32.mrf.mxu1 }
 0x427   : > { %v8229_v34 = vadd.f32 %v8228_v20, %v8227_v23 }
 0x428   : > { %v8265_v33 = vpop.f32.mrf.mxu0 }
 0x429   : > { %v8266_v60 = vadd.f32 %v8265_v33, %v8264_v29  ;;  %v6217_v28 = vadd.f32 %v8229_v34, %v7230_v26 }
 0x42a   : > { %v8230_v24 = vpop.f32.mrf.mxu1  ;;  %v8267_v50 = vpop.f32.mrf.mxu0 }
 0x42b   : > { %v6279_v15 = vadd.f32 %v8266_v60, %v6214_v2 }
 0x42c   : > { %v8231_v32 = vpop.f32.mrf.mxu1  ;;  %v8268_v36 = vpop.f32.mrf.mxu0 }
 0x42d   : > { %v8269_v27 = vadd.f32 %v8268_v36, %v8267_v50 }
 0x42e   : > { %v8233_v51 = vpop.f32.mrf.mxu1 }
 0x430   : > { %v8270_v63 = vpop.f32.mrf.mxu0  ;;  %v8234_v11 = vpop.f32.mrf.mxu1 }
 0x431   : > { %v8235_v25 = vadd.f32 %v8234_v11, %v8233_v51 }
 0x432   : > { %v8271_v40 = vpop.f32.mrf.mxu0  ;;  %v8236_v54 = vpop.f32.mrf.mxu1 }
 0x433   : > { %v8272_v55 = vadd.f32 %v8271_v40, %v8270_v63  ;;  %v6225_v50 = vadd.f32 %v8235_v25, %v7230_v26 }
 0x434   : > { %v10679_v16 = vpop.f32.mrf.mxu0  ;;  %v8237_v45 = vpop.f32.mrf.mxu1 }
 0x435   : > { %v8238_v23 = vadd.f32 %v8237_v45, %v8236_v54 }
 0x436   : > { %v10681_v10 = vpop.f32.mrf.mxu0  ;;  %v10683_v56 = vpop.f32.mrf.mxu1 }
 0x437   : > { %v8275_v36 = vadd.f32 %v10681_v10, %v10679_v16  ;;  %v6230_v45 = vadd.f32 %v8238_v23, %v7230_v26 }
 0x438   : > { %v10685_v42 = vpop.f32.mrf.mxu0  ;;  %v10687_v35 = vpop.f32.mrf.mxu1 }
 0x439   : > { %10878 = vst [vmem:[#allocation16_spill] sm:$0xff] %v10685_v42  ;;  %10879 = vst [vmem:[#allocation28_spill] sm:$0xff] %v10687_v35  ;;  %v6290_v10 = vadd.f32 %v8275_v36, %v6225_v50 }
 0x43a   : > { %v10689_v61 = vpop.f32.mrf.mxu0  ;;  %v8298_v0 = vpop.f32.mrf.mxu1 }
 0x43b   : > { %10880 = vst [vmem:[#allocation29_spill] sm:$0xff] %v10689_v61 }
 0x43c   : > { %v10691_v39 = vpop.f32.mrf.mxu0  ;;  %v8299_v37 = vpop.f32.mrf.mxu1 }
 0x43d   : > { %10881 = vst [vmem:[#allocation24_spill] sm:$0xff] %v10691_v39  ;;  %v8232_v39 = vadd.f32 %v8231_v32, %v8230_v24 }
 0x43e   : > { %v10693_v31 = vpop.f32.mrf.mxu0  ;;  %v8301_v46 = vpop.f32.mrf.mxu1 }
 0x43f   : > { %10882 = vst [vmem:[#allocation26_spill] sm:$0xff] %v10693_v31  ;;  %v6206_v31 = vadd.f32 %v8220_v41, %v7230_v26  ;;  %v6222_v33 = vadd.f32 %v8232_v39, %v7230_v26 }
 0x440   : > { %v8338_v12 = vpop.f32.mrf.mxu0  ;;  %v8302_v57 = vpop.f32.mrf.mxu1  ;;  %v10887_v39 = vld [vmem:[#allocation16_spill] sm:$0xff] }
 0x441   : > { %v6271_v35 = vadd.f32 %v8260_v48, %v6206_v31  ;;  %v8303_v24 = vadd.f32 %v8302_v57, %v8301_v46  ;;  %v10886_v31 = vld [vmem:[#allocation28_spill] sm:$0xff]  ;;  %v6287_v54 = vadd.f32 %v8272_v55, %v6222_v33  ;;  %v10896_v33 = vld [vmem:[#allocation18_spill] sm:$0xff] }
 0x442   : > { %v8339_v52 = vpop.f32.mrf.mxu0  ;;  %v8304_v4 = vpop.f32.mrf.mxu1 }
 0x443   : > { %v8340_v53 = vadd.f32 %v8339_v52, %v8338_v12  ;;  %v8241_v12 = vadd.f32 %v10886_v31, %v10683_v56 }
 0x444   : > { %v8341_v5 = vpop.f32.mrf.mxu0  ;;  %v8305_v62 = vpop.f32.mrf.mxu1 }
 0x445   : > { %v8306_v61 = vadd.f32 %v8305_v62, %v8304_v4 }
 0x446   : > { %v8342_v18 = vpop.f32.mrf.mxu0  ;;  %v8307_v30 = vpop.f32.mrf.mxu1 }
 0x447   : > { %v6344_v51 = vadd.f32 %v8306_v61, %v6279_v15  ;;  %v8343_v52 = vadd.f32 %v8342_v18, %v8341_v5  ;;  %v10889_v61 = vld [vmem:[#allocation24_spill] sm:$0xff] }
 0x448   : > { %v8344_v47 = vpop.f32.mrf.mxu0  ;;  %v8308_v58 = vpop.f32.mrf.mxu1 }
 0x449   : > { %v8309_v32 = vadd.f32 %v8308_v58, %v8307_v30 }
 0x44a   : > { %v8345_v14 = vpop.f32.mrf.mxu0  ;;  %v8310_v13 = vpop.f32.mrf.mxu1 }
 0x44b   : > { %v8346_v29 = vadd.f32 %v8345_v14, %v8344_v47  ;;  %v10890_v14 = vld [vmem:[#allocation26_spill] sm:$0xff] }
 0x44c   : > { %v8347_v9 = vpop.f32.mrf.mxu0  ;;  %v8311_v21 = vpop.f32.mrf.mxu1 }
 0x44d   : > { %v6409_v4 = vadd.f32 %v8346_v29, %v6344_v51  ;;  %v8312_v58 = vadd.f32 %v8311_v21, %v8310_v13 }
 0x44e   : > { %v8348_v22 = vpop.f32.mrf.mxu0  ;;  %v10695_v6 = vpop.f32.mrf.mxu1 }
 0x44f   : > { %10883 = vst [vmem:[#allocation22_spill] sm:$0xff] %v10695_v6  ;;  %v8349_v63 = vadd.f32 %v8348_v22, %v8347_v9  ;;  %v6233_v9 = vadd.f32 %v8241_v12, %v7230_v26  ;;  %v6352_v25 = vadd.f32 %v8312_v58, %v6287_v54 }
 0x450   : > { %v10697_v59 = vpop.f32.mrf.mxu0  ;;  %v10699_v19 = vpop.f32.mrf.mxu1 }
 0x451   : > { %10884 = vst [vmem:[#allocation30_spill] sm:$0xff] %v10697_v59  ;;  %10885 = vst [vmem:[#allocation25_spill] sm:$0xff] %v10699_v19  ;;  %v6209_v59 = vadd.f32 %v8223_v43, %v7230_v26  ;;  %v8300_v19 = vadd.f32 %v8299_v37, %v8298_v0  ;;  %v6282_v37 = vadd.f32 %v8269_v27, %v6217_v28 }
 0x452   : > { %v8351_v3 = vpop.f32.mrf.mxu0  ;;  %v8316_v1 = vpop.f32.mrf.mxu1 }
 0x453   : > { %v6274_v8 = vadd.f32 %v8263_v7, %v6209_v59  ;;  %v6336_v41 = vadd.f32 %v8300_v19, %v6271_v35  ;;  %v10888_v35 = vld [vmem:[#allocation29_spill] sm:$0xff]  ;;  %v6347_v47 = vadd.f32 %v8309_v32, %v6282_v37  ;;  %v8281_v59 = vadd.f32 %v10890_v14, %v10889_v61  ;;  %v10897_v37 = vld [vmem:[#allocation15_spill] sm:$0xff] }
 0x454   : > { %v10704_v49 = vpop.f32.mrf.mxu0  ;;  %v8317_v6 = vpop.f32.mrf.mxu1  ;;  %v8278_v46 = vadd.f32 %v10888_v35, %v10887_v39 }
 0x455   : > { %v6401_v40 = vadd.f32 %v8340_v53, %v6336_v41  ;;  %v6339_v30 = vadd.f32 %v8303_v24, %v6274_v8  ;;  %v8318_v56 = vadd.f32 %v8317_v6, %v8316_v1  ;;  %v6412_v43 = vadd.f32 %v8349_v63, %v6347_v47  ;;  %v10894_v8 = vld [vmem:[#allocation13_spill] sm:$0xff]  ;;  %v10900_v47 = vld [vmem:[#allocation14_spill] sm:$0xff] }
 0x456   : > { %v8354_v44 = vpop.f32.mrf.mxu0  ;;  %v8319_v42 = vpop.f32.mrf.mxu1  ;;  %v6295_v48 = vadd.f32 %v8278_v46, %v6230_v45  ;;  %v10892_v7 = vld [vmem:[#allocation22_spill] sm:$0xff]  ;;  %v6298_v1 = vadd.f32 %v8281_v59, %v6233_v9 }
 0x457   : > { %v6404_v38 = vadd.f32 %v8343_v52, %v6339_v30  ;;  %v8355_v26 = vadd.f32 %v8354_v44, %v10704_v49  ;;  %v10898_v52 = vld [vmem:[#allocation17_spill] sm:$0xff] }
 0x458   : > { %v8356_v17 = vpop.f32.mrf.mxu0  ;;  %v8320_v20 = vpop.f32.mrf.mxu1  ;;  %v10891_v22 = vld [vmem:[#allocation30_spill] sm:$0xff]  ;;  %v10893_v34 = vld [vmem:[#allocation25_spill] sm:$0xff]  ;;  %v6360_v15 = vadd.f32 %v8318_v56, %v6295_v48 }
 0x459   : > { %v8352_v19 = vadd.f32 %v8351_v3, %v10891_v22  ;;  %v8315_v60 = vadd.f32 %v10893_v34, %v10892_v7  ;;  %v8321_v2 = vadd.f32 %v8320_v20, %v8319_v42  ;;  %v10895_v3 = vld [vmem:[#allocation20_spill] sm:$0xff] }
 0x45a   : > { %v8357_v0 = vpop.f32.mrf.mxu0  ;;  %v8481_v11 = vpop.f32.mrf.mxu1 }
 0x45b   : > { %v6474_v5 = vadd.f32 %v8481_v11, %v6409_v4  ;;  %v8358_v27 = vadd.f32 %v8357_v0, %v8356_v17  ;;  %v6417_v24 = vadd.f32 %v8352_v19, %v6352_v25  ;;  %v6355_v42 = vadd.f32 %v8315_v60, %v6290_v10  ;;  %v10901_v10 = vld [vmem:[#allocation21_spill] sm:$0xff]  ;;  %v6543_v60 = vld [vmem:[%s10777_s8] sm:$0x1] }
 0x45c   : > { %v8359_v57 = vpop.f32.mrf.mxu0  ;;  %v6465_v62 = vpop.f32.mrf.mxu1  ;;  %v6363_v17 = vadd.f32 %v8321_v2, %v6298_v1 }
 0x45d   : > { %v6466_v16 = vadd.f32 %v6465_v62, %v6401_v40  ;;  %v6498_v55 = vadd.f32 %v6474_v5, %v10895_v3  ;;  %v6425_v20 = vadd.f32 %v8358_v27, %v6360_v15  ;;  %v6420_v12 = vadd.f32 %v8355_v26, %v6355_v42 }
 0x45e   : > { %v8482_v18 = vpop.f32.mrf.mxu1  ;;  %v8360_v13 = vpop.f32.mrf.mxu0 }
 0x45f   : > { %v6496_v28 = vadd.f32 %v6466_v16, %v10894_v8  ;;  %v6477_v53 = vadd.f32 %v8482_v18, %v6412_v43  ;;  %v8361_v29 = vadd.f32 %v8360_v13, %v8359_v57  ;;  %v6506_v11 = vmax.f32 %v6498_v55, 0.0  ;;  %v10899_v57 = vld [vmem:[#allocation19_spill] sm:$0xff] }
 0x460   : > { %v6468_v21 = vpop.f32.mrf.mxu1 }
 0x461   : > { %v6469_v6 = vadd.f32 %v6468_v21, %v6404_v38  ;;  %v6504_v0 = vmax.f32 %v6496_v28, 0.0  ;;  %v6499_v50 = vadd.f32 %v6477_v53, %v10897_v37  ;;  %v6428_v40 = vadd.f32 %v8361_v29, %v6363_v17 }
 0x462   : > { %v8485_v23 = vpop.f32.mrf.mxu1 }
 0x463   : > { %v6497_v41 = vadd.f32 %v6469_v6, %v10896_v33  ;;  %v6490_v44 = vadd.f32 %v8485_v23, %v6425_v20  ;;  %v6507_v45 = vmax.f32 %v6499_v50, 0.0 }
 0x464   : > { %v6481_v32 = vpop.f32.mrf.mxu1 }
 0x465   : > { %v6505_v36 = vmax.f32 %v6497_v41, 0.0  ;;  %v6482_v51 = vadd.f32 %v6481_v32, %v6417_v24  ;;  %v6502_v4 = vadd.f32 %v6490_v44, %v10899_v57 }
 0x466   : > { %v8486_v31 = vpop.f32.mrf.mxu1 }
 0x467   : > { %v6512_v49 = vadd.f32 %v6505_v36, %v6504_v0  ;;  %v6500_v63 = vadd.f32 %v6482_v51, %v10898_v52  ;;  %v6493_v35 = vadd.f32 %v8486_v31, %v6428_v40  ;;  %v6510_v59 = vmax.f32 %v6502_v4, 0.0 }
 0x468   : > { %v6484_v54 = vpop.f32.mrf.mxu1 }
 0x469   : > { %v6513_v39 = vadd.f32 %v6512_v49, %v6506_v11  ;;  %v6485_v46 = vadd.f32 %v6484_v54, %v6420_v12  ;;  %v6508_v62 = vmax.f32 %v6500_v63, 0.0  ;;  %v6503_v61 = vadd.f32 %v6493_v35, %v10901_v10 }
 0x46b   : > { %v6514_v30 = vadd.f32 %v6513_v39, %v6507_v45  ;;  %v6501_v58 = vadd.f32 %v6485_v46, %v10900_v47  ;;  %v6511_v5 = vmax.f32 %v6503_v61, 0.0 }
 0x46d   : > { %v6515_v16 = vadd.f32 %v6514_v30, %v6508_v62  ;;  %v6509_v14 = vmax.f32 %v6501_v58, 0.0 }
 0x46f   : > { %v6516_v56 = vadd.f32 %v6515_v16, %v6509_v14 }
 0x471   : > { %v6517_v18 = vadd.f32 %v6516_v56, %v6510_v59 }
 0x473   : > { %v6518_v9 = vadd.f32 %v6517_v18, %v6511_v5 }
 0x475   : > { %v6519_v22 = vrot.slane %v6518_v9, 4 }
 0x477   : > { %v6520_v19 = vadd.f32 %v6519_v22, %v6518_v9 }
 0x479   : > { %v6521_v43 = vrot.slane %v6520_v19, 2 }
 0x47b   : > { %v6522_v38 = vadd.f32 %v6521_v43, %v6520_v19 }
 0x47d   : > { %v6523_v48 = vrot.slane %v6522_v38, 1 }
 0x47f   : > { %v6524_v7 = vadd.f32 %v6523_v48, %v6522_v38 }
 0x481   : > { %v6526_v34 = vmul.f32 0.015625, %v6524_v7 }
 0x483   : > { %8520 = vmatmul.mubr.f32.vlgmr.msra.gmra.mxu0 %v6526_v34 }
 0x543   : > { %v6610_v2 = vpop.f32.mrf.mxu0 }
 0x544   : > { %v6611_v27 = vadd.f32 %v6610_v2, %v6543_v60 }
 0x545   : > { %v8521_v13 = vpop.f32.mrf.mxu0 }
 0x546   : > { %6614 = vst [vmem:[%s324_s14] sm:$0x1] %v6611_v27 }
 0x547   : > { %9105 = shalt.err (!%p9102_p3)
}
 0x548   : > { %s9106_s29 = scalar_lea.hbm %s10734_s23, 16  ;;  %s9110_s14 = scalar_lea.hbm %s10778_s9, 32 }
 0x549   : > { %p9107_p4 = scmp.ne.s32.totalorder %s10734_s23, %s9106_s29  ;;  %p9111_p9 = scmp.lt.s32.totalorder %s10734_s23, %s10778_s9 }
 0x54a   : > { %p9112_p10 = scmp.lt.s32.totalorder %s9110_s14, %s9106_s29 }
 0x54b   : > { %p9108_p7 = pnand %p9107_p4, %p9245_p5 }
 0x54c   : > { %p9113_p11 = por %p9112_p10, %p9111_p9 }
 0x54d   : > { %p9109_p8 = pneg %p9108_p7 }
 0x54f   : > { %p9114_p12 = pnand %p9113_p11, %p9109_p8 }
 0x551   : > { %9117 = shalt.err (!%p9114_p12)
}
 0x552   : > { %8523 = dma.vmem_to_hbm [thread:$0]  (%p9245_p5), %s6629_s16, 16, %s10734_s23, %s6616_s27  }
 0x553 PF: > { %p8529_p13 = scmp.ge.s32.totalorder %s9152_s12, 2  ;;  %s6640_s22 = sand.u32 1, %s9140_s30  }
 0x554   : > { %s6641_s25 = scalar_lea.sflag [#allocation6], %s6640_s22 }
 0x555   : > { %p8526_p0 = pnand %p8529_p13, %p9249_p6 }
 0x557   : > { %p8527_p1 = pneg %p8526_p0 }
 0x559   : > { %9135 = dma.done.wait (%p8527_p1), %s6641_s25, 16  }
 0x55a   : > { %9137 = vsyncadd (%p8527_p1), %s6641_s25, 4294967280  ;;  %p19_p2 = scmp.ge.s32.totalorder %s9232_s15, 4   ;;  %s10902_s30 = smov %s9144_s10 }
 0x55b   : > { %s10903_s10 = smov %s9148_s11  ;;  %s10904_s11 = smov %s9243_s18 }
 0x55c   : > { %s10905_s12 = smov %s9232_s15  ;;  %21 = sbr.rel (!%p19_p2) target bundleno = 3 (0x3), region = 108 }
 0x561   :  { %6645 = vsyncpa [#allocation6], 1 }
 0x562   :  { %6647 = vsyncpa [#allocation6 + $0x1], 1 }

</bundles_post_ra>
